<compile_context>
chip_gen: v5e
topology: v5e:2x2
jax: 0.10.0
libtpu: 0.0.40
codegen_flags: <defaults>
</compile_context>

<pallas_src>
import functools
import math

import jax
import jax.numpy as jnp
from jax.experimental import pallas as pl
from jax.experimental.pallas import tpu as pltpu

LEAKY_SLOPE = 0.01      # nn.LeakyReLU() default negative slope
MASK_FILL = -9e15       # logit value for non-edges
LANE = 128


def _round_up(x, m):
    return (x + m - 1) // m * m


# ---------------------------------------------------------------------------
# Kernel 1: fused projection for all heads at once
#   P = X @ W_all + b_all, per-head column block (width f_aug = f_acc + LANE):
#     [0, f_out)      -> Wh
#     f_out           -> literal 1.0 (ones column; zero weight + bias 1.0)
#     (f_out, f_acc)  -> 0.0 padding
#     f_acc           -> s1 = Wh·a1 + (b·a1 + a_b)   (self / query term)
#     f_acc + 1       -> s2 = Wh·a2 + b·a2           (neighbour / key term)
# ---------------------------------------------------------------------------
def _proj_kernel(x_ref, w_ref, b_ref, wh_ref, s12_ref, *, f_acc, f_aug):
    # x / w are pre-cast bf16; f32 accumulation on the MXU.
    p = jnp.dot(x_ref[...], w_ref[...], preferred_element_type=jnp.float32)
    p = p + b_ref[...]                              # [1, H*f_aug] bias row
    heads = wh_ref.shape[0]
    for h in range(heads):                          # static unroll over heads
        base = h * f_aug                            # lane-aligned (mult of 128)
        wh_ref[h, :, :] = p[:, base:base + f_acc].astype(wh_ref.dtype)
        s12_ref[h, :, :] = p[:, base + f_acc:base + f_acc + 2]


# ---------------------------------------------------------------------------
# Kernel 2: flash-style masked-softmax attention, heads fused in the body,
# online over key tiles (grid = (Nq/tq, Nk/tk), k innermost / "arbitrary").
# ---------------------------------------------------------------------------
def _attn_kernel(s1_ref, s2_ref, wh_ref, adj_ref, o_ref, m_sc, *, f_out):
    k = pl.program_id(1)
    heads = o_ref.shape[0]

    @pl.when(k == 0)
    def _init():
        m_sc[...] = jnp.full(m_sc.shape, -jnp.inf, m_sc.dtype)
        o_ref[...] = jnp.zeros(o_ref.shape, o_ref.dtype)

    edge = adj_ref[...] != 0                        # [tq, tk], shared by heads

    for h in range(heads):                          # static unroll over heads
        e = s1_ref[h] + s2_ref[h]                   # [tq,1]+[1,tk] -> [tq,tk]
        e = jnp.maximum(e, LEAKY_SLOPE * e)         # LeakyReLU (mul + max)
        e = jnp.where(edge, e, MASK_FILL)           # scalar mask fill

        m_prev = m_sc[h]
        m_new = jnp.maximum(m_prev, jnp.max(e, axis=1, keepdims=True))
        scale = jnp.exp(m_prev - m_new)
        p = jnp.exp(e - m_new).astype(jnp.bfloat16)
        # Wh carries a literal ones column at f_out, so p @ Wh also carries
        # the running softmax denominator in o_ref[h][:, f_out].
        o_ref[h] = scale * o_ref[h] + jnp.dot(
            p, wh_ref[h], preferred_element_type=jnp.float32)
        m_sc[h] = m_new

    @pl.when(k == pl.num_programs(1) - 1)
    def _finalize():
        for h in range(heads):
            vals = o_ref[h]                                       # [tq, f_acc]
            col = jax.lax.broadcasted_iota(jnp.int32, vals.shape, 1)
            l = jnp.max(jnp.where(col == f_out, vals, -jnp.inf),
                        axis=1, keepdims=True)                    # denominator
            inv = pl.reciprocal(l, approx=True)
            # Rows with no edge at all: the sparse reference yields zeros
            # there (running max never rose above the mask fill).
            has_edge = m_sc[h] > (0.5 * MASK_FILL)
            o_ref[h] = jnp.where(has_edge, vals * inv, 0.0)


# ---------------------------------------------------------------------------
# Wrapper
# ---------------------------------------------------------------------------
@functools.partial(jax.jit, static_argnames=("tq", "tk"))
def graph_attention_forward(features, adj, fc_w, fc_b, a_w, a_b, *,
                            tq=512, tk=512):
    """Dense multi-head GraphAttention forward.

    features : [N, F_in]          float32 node features
    adj      : [N, N]             adj[i, j] != 0  <=>  j in rows[i]
    fc_w     : [H, F_out, F_in]   per-head nn.Linear weight
    fc_b     : [H, F_out]         per-head nn.Linear bias
    a_w      : [H, 2 * F_out]     per-head attention Linear weight (squeezed)
    a_b      : [H]                per-head attention Linear bias
    returns  : [H, N, F_out]      stacked per-head outputs
    """
    n, f_in = features.shape
    heads, f_out, _ = fc_w.shape

    tq = max(LANE, _round_up(tq, LANE))
    tk = max(LANE, _round_up(tk, LANE))
    assert max(tq, tk) % min(tq, tk) == 0, "tq / tk must divide each other"
    t1 = max(tq, tk)                          # kernel-1 row tile
    np_ = _round_up(n, t1)
    f_in_p = _round_up(f_in, LANE)
    f_acc = _round_up(f_out + 1, LANE)        # Wh width incl. the ones column
    f_aug = f_acc + LANE                      # + [s1 | s2] lanes per head

    # ---- parameter folding: a-projections fused into the X @ W matmul ----
    w = jnp.transpose(fc_w, (0, 2, 1))        # [H, F_in, F_out]
    a1 = a_w[:, :f_out]                       # self / query term
    a2 = a_w[:, f_out:]                       # neighbour / key term
    w1 = jnp.einsum("hio,ho->hi", w, a1)      # W @ a1
    w2 = jnp.einsum("hio,ho->hi", w, a2)      # W @ a2
    c1 = jnp.einsum("ho,ho->h", fc_b, a1) + a_b
    c2 = jnp.einsum("ho,ho->h", fc_b, a2)

    w_aug = jnp.zeros((heads, f_in_p, f_aug), jnp.float32)
    w_aug = w_aug.at[:, :f_in, :f_out].set(w)
    w_aug = w_aug.at[:, :f_in, f_acc].set(w1)
    w_aug = w_aug.at[:, :f_in, f_acc + 1].set(w2)

    b_aug = jnp.zeros((heads, f_aug), jnp.float32)
    b_aug = b_aug.at[:, :f_out].set(fc_b)
    b_aug = b_aug.at[:, f_out].set(1.0)       # -> literal ones column in Wh
    b_aug = b_aug.at[:, f_acc].set(c1)
    b_aug = b_aug.at[:, f_acc + 1].set(c2)

    # Fold heads along columns: X is read exactly once in kernel 1.
    w_all = jnp.transpose(w_aug, (1, 0, 2)).reshape(
        f_in_p, heads * f_aug).astype(jnp.bfloat16)
    b_all = b_aug.reshape(1, heads * f_aug)   # bias stays f32 (tiny)

    x_p = jnp.zeros((np_, f_in_p), jnp.float32).at[:n, :f_in].set(features)
    x_p = x_p.astype(jnp.bfloat16)            # pre-cast: half the X HBM traffic
    adj_p = jnp.zeros((np_, np_), jnp.int8).at[:n, :n].set(
        (adj != 0).astype(jnp.int8))          # int8 mask: 4x less HBM than f32

    # ---- kernel 1: fused projection (all heads, X read once) --------------
    wh, s12 = pl.pallas_call(
        functools.partial(_proj_kernel, f_acc=f_acc, f_aug=f_aug),
        out_shape=(
            jax.ShapeDtypeStruct((heads, np_, f_acc), jnp.bfloat16),
            jax.ShapeDtypeStruct((heads, np_, 2), jnp.float32),
        ),
        grid=(np_ // t1,),
        in_specs=[
            pl.BlockSpec((t1, f_in_p), lambda m: (m, 0)),
            pl.BlockSpec((f_in_p, heads * f_aug), lambda m: (0, 0)),
            pl.BlockSpec((1, heads * f_aug), lambda m: (0, 0)),
        ],
        out_specs=(
            pl.BlockSpec((heads, t1, f_acc), lambda m: (0, m, 0)),
            pl.BlockSpec((heads, t1, 2), lambda m: (0, m, 0)),
        ),
        compiler_params=pltpu.CompilerParams(
            dimension_semantics=("parallel",)),
    )(x_p, w_all, b_all)

    # s1 is consumed per query tile, s2 per key tile (lane-major row so the
    # hot loop has no transposes). Both are tiny [H, N] slabs.
    s1 = s12[:, :, 0:1]                                  # [H, N, 1]
    s2_row = jnp.transpose(s12[:, :, 1:2], (0, 2, 1))    # [H, 1, N]

    # ---- kernel 2: tiled online-softmax attention, heads fused ------------
    out_p = pl.pallas_call(
        functools.partial(_attn_kernel, f_out=f_out),
        out_shape=jax.ShapeDtypeStruct((heads, np_, f_acc), jnp.float32),
        grid=(np_ // tq, np_ // tk),
        in_specs=[
            pl.BlockSpec((heads, tq, 1), lambda i, k: (0, i, 0)),      # s1
            pl.BlockSpec((heads, 1, tk), lambda i, k: (0, 0, k)),      # s2 row
            pl.BlockSpec((heads, tk, f_acc), lambda i, k: (0, k, 0)),  # Wh keys
            pl.BlockSpec((tq, tk), lambda i, k: (i, k)),               # adjacency
        ],
        out_specs=pl.BlockSpec((heads, tq, f_acc), lambda i, k: (0, i, 0)),
        scratch_shapes=[
            pltpu.VMEM((heads, tq, 1), jnp.float32),    # running max
        ],
        compiler_params=pltpu.CompilerParams(
            dimension_semantics=("parallel", "arbitrary")),
    )(s1, s2_row, wh, adj_p)

    return out_p[:, :n, :f_out]


# ---------------------------------------------------------------------------
# Pure-JAX reference (dense equivalent of the PyTorch module, eval mode)
# ---------------------------------------------------------------------------
def graph_attention_reference(features, adj, fc_w, fc_b, a_w, a_b):
    heads, f_out, _ = fc_w.shape
    mask = adj != 0
    outs = []
    for k in range(heads):
        wh = features @ fc_w[k].T + fc_b[k]
        s1 = wh @ a_w[k, :f_out] + a_b[k]
        s2 = wh @ a_w[k, f_out:]
        e = s1[:, None] + s2[None, :]
        e = jnp.where(e > 0, e, LEAKY_SLOPE * e)
        logits = jnp.where(mask, e, MASK_FILL)
        att = jax.nn.softmax(logits, axis=1)
        out = att @ wh
        out = jnp.where(mask.any(axis=1, keepdims=True), out, 0.0)
        outs.append(out)
    return jnp.stack(outs, axis=0)


if __name__ == "__main__":
    key = jax.random.PRNGKey(0)
    N, F_IN, F_OUT, HEADS = 200, 48, 32, 2

    ks = jax.random.split(key, 4 * HEADS + 2)
    features = jax.random.normal(ks[-1], (N, F_IN), jnp.float32)

    # Random directed graph with self loops; node 7 left fully isolated to
    # exercise the empty-neighbourhood path (sparse semantics -> zeros).
    adj = (jax.random.uniform(ks[-2], (N, N)) > 0.7).astype(jnp.float32)
    adj = jnp.maximum(adj, jnp.eye(N, dtype=jnp.float32))
    adj = adj.at[7, :].set(0.0)

    def _linear_init(kw, kb, fan_out, fan_in):
        bound = 1.0 / math.sqrt(fan_in)
        w = jax.random.uniform(kw, (fan_out, fan_in), jnp.float32, -bound, bound)
        b = jax.random.uniform(kb, (fan_out,), jnp.float32, -bound, bound)
        return w, b

    fw, fb, aw, ab = [], [], [], []
    for h in range(HEADS):
        w, b = _linear_init(ks[4 * h + 0], ks[4 * h + 1], F_OUT, F_IN)
        fw.append(w)
        fb.append(b)
        wa, ba = _linear_init(ks[4 * h + 2], ks[4 * h + 3], 1, 2 * F_OUT)
        aw.append(wa[0])
        ab.append(ba[0])
    fc_w, fc_b = jnp.stack(fw), jnp.stack(fb)
    a_w, a_b = jnp.stack(aw), jnp.stack(ab)

    # Small graph -> small tiles; production defaults are tq=tk=512.
    out = graph_attention_forward(features, adj, fc_w, fc_b, a_w, a_b,
                                  tq=128, tk=128)
    out = jax.block_until_ready(out)

    ref = graph_attention_reference(features, adj, fc_w, fc_b, a_w, a_b)
    assert out.shape == (HEADS, N, F_OUT)
    # bf16 MXU operands with f32 accumulation -> small (~1e-3..1e-2) deviations.
    assert bool(jnp.allclose(out, ref, atol=2e-2, rtol=2e-2)), "mismatch vs reference"
    assert bool(jnp.all(out[:, 7, :] == 0.0)), "isolated node must map to zeros"

    print("KERNEL_OK")
</pallas_src>

<mosaic_0001>
module attributes {stable_mosaic.version = 11 : i64} {
  func.func @_proj_kernel(%arg0: i32, %arg1: memref<128x128xbf16, #tpu.memory_space<vmem>>, %arg2: memref<128x512xbf16, #tpu.memory_space<vmem>>, %arg3: memref<1x512xf32, #tpu.memory_space<vmem>>, %arg4: memref<2x128x128xbf16, #tpu.memory_space<vmem>>, %arg5: memref<2x128x2xf32, #tpu.memory_space<vmem>>) attributes {dimension_semantics = [#tpu.dimension_semantics<parallel>], iteration_bounds = array<i64: 2>, scalar_prefetch = 0 : i64, scratch_operands = 0 : i64, tpu.core_type = #tpu.core_type<tc>, window_params = [{transform_indices = @transform_0, window_bounds = array<i64: 128, 128>}, {pipeline_mode = #tpu.pipeline_mode<synchronous>, transform_indices = @transform_1, window_bounds = array<i64: 128, 512>}, {pipeline_mode = #tpu.pipeline_mode<synchronous>, transform_indices = @transform_2, window_bounds = array<i64: 1, 512>}, {transform_indices = @transform_3, window_bounds = array<i64: 2, 128, 128>}, {transform_indices = @transform_4, window_bounds = array<i64: 2, 128, 2>}]} {
    %c0 = arith.constant 0 : index
    %c0_0 = arith.constant 0 : index
    %0 = vector.load %arg1[%c0, %c0_0] : memref<128x128xbf16, #tpu.memory_space<vmem>>, vector<128x128xbf16>
    %c0_1 = arith.constant 0 : index
    %c0_2 = arith.constant 0 : index
    %1 = vector.load %arg2[%c0_1, %c0_2] : memref<128x512xbf16, #tpu.memory_space<vmem>>, vector<128x512xbf16>
    %cst = arith.constant dense<0.000000e+00> : vector<128x512xf32>
    %2 = tpu.matmul %0, %1, %cst {dimension_numbers = #tpu.dot_dimension_numbers<[1], [0], [0], [1], [0, 0, 1, 1], [], []>} : vector<128x128xbf16>, vector<128x512xbf16>, vector<128x512xf32> -> vector<128x512xf32>
    %c0_3 = arith.constant 0 : index
    %c0_4 = arith.constant 0 : index
    %3 = vector.load %arg3[%c0_3, %c0_4] : memref<1x512xf32, #tpu.memory_space<vmem>>, vector<1x512xf32>
    %4 = vector.broadcast %3 : vector<1x512xf32> to vector<128x512xf32>
    %5 = arith.addf %2, %4 : vector<128x512xf32>
    %6 = vector.extract_strided_slice %5 {offsets = [0, 0], sizes = [128, 128], strides = [1, 1]} : vector<128x512xf32> to vector<128x128xf32>
    %7 = arith.truncf %6 : vector<128x128xf32> to vector<128x128xbf16>
    %c0_5 = arith.constant 0 : index
    %c0_6 = arith.constant 0 : index
    %c0_7 = arith.constant 0 : index
    %8 = vector.load %arg4[%c0_5, %c0_6, %c0_7] : memref<2x128x128xbf16, #tpu.memory_space<vmem>>, vector<1x128x128xbf16>
    %9 = vector.shape_cast %8 : vector<1x128x128xbf16> to vector<128x128xbf16>
    %10 = vector.shape_cast %7 : vector<128x128xbf16> to vector<1x128x128xbf16>
    tpu.vector_store %arg4[%c0_5, %c0_6, %c0_7], %10 {strides = array<i32>} : memref<2x128x128xbf16, #tpu.memory_space<vmem>>, vector<1x128x128xbf16>,
    %11 = vector.extract_strided_slice %5 {offsets = [0, 128], sizes = [128, 2], strides = [1, 1]} : vector<128x512xf32> to vector<128x2xf32>
    %c0_8 = arith.constant 0 : index
    %c0_9 = arith.constant 0 : index
    %c0_10 = arith.constant 0 : index
    %12 = vector.load %arg5[%c0_8, %c0_9, %c0_10] : memref<2x128x2xf32, #tpu.memory_space<vmem>>, vector<1x128x2xf32>
    %13 = vector.shape_cast %12 : vector<1x128x2xf32> to vector<128x2xf32>
    %14 = vector.shape_cast %11 : vector<128x2xf32> to vector<1x128x2xf32>
    tpu.vector_store %arg5[%c0_8, %c0_9, %c0_10], %14 {strides = array<i32>} : memref<2x128x2xf32, #tpu.memory_space<vmem>>, vector<1x128x2xf32>,
    %15 = vector.extract_strided_slice %5 {offsets = [0, 256], sizes = [128, 128], strides = [1, 1]} : vector<128x512xf32> to vector<128x128xf32>
    %16 = arith.truncf %15 : vector<128x128xf32> to vector<128x128xbf16>
    %c1 = arith.constant 1 : index
    %c0_11 = arith.constant 0 : index
    %c0_12 = arith.constant 0 : index
    %17 = vector.load %arg4[%c1, %c0_11, %c0_12] : memref<2x128x128xbf16, #tpu.memory_space<vmem>>, vector<1x128x128xbf16>
    %18 = vector.shape_cast %17 : vector<1x128x128xbf16> to vector<128x128xbf16>
    %19 = vector.shape_cast %16 : vector<128x128xbf16> to vector<1x128x128xbf16>
    tpu.vector_store %arg4[%c1, %c0_11, %c0_12], %19 {strides = array<i32>} : memref<2x128x128xbf16, #tpu.memory_space<vmem>>, vector<1x128x128xbf16>,
    %20 = vector.extract_strided_slice %5 {offsets = [0, 384], sizes = [128, 2], strides = [1, 1]} : vector<128x512xf32> to vector<128x2xf32>
    %c1_13 = arith.constant 1 : index
    %c0_14 = arith.constant 0 : index
    %c0_15 = arith.constant 0 : index
    %21 = vector.load %arg5[%c1_13, %c0_14, %c0_15] : memref<2x128x2xf32, #tpu.memory_space<vmem>>, vector<1x128x2xf32>
    %22 = vector.shape_cast %21 : vector<1x128x2xf32> to vector<128x2xf32>
    %23 = vector.shape_cast %20 : vector<128x2xf32> to vector<1x128x2xf32>
    tpu.vector_store %arg5[%c1_13, %c0_14, %c0_15], %23 {strides = array<i32>} : memref<2x128x2xf32, #tpu.memory_space<vmem>>, vector<1x128x2xf32>,
    return
  }
  func.func @transform_0(%arg0: i32) -> (i32, i32) {
    %c0_i32 = arith.constant 0 : i32
    %c0_i32_0 = arith.constant 0 : i32
    return %arg0, %c0_i32 : i32, i32
  }
  func.func @transform_1(%arg0: i32) -> (i32, i32) {
    %c0_i32 = arith.constant 0 : i32
    %c0_i32_0 = arith.constant 0 : i32
    %c0_i32_1 = arith.constant 0 : i32
    return %c0_i32, %c0_i32_0 : i32, i32
  }
  func.func @transform_2(%arg0: i32) -> (i32, i32) {
    %c0_i32 = arith.constant 0 : i32
    %c0_i32_0 = arith.constant 0 : i32
    %c0_i32_1 = arith.constant 0 : i32
    return %c0_i32, %c0_i32_0 : i32, i32
  }
  func.func @transform_3(%arg0: i32) -> (i32, i32, i32) {
    %c0_i32 = arith.constant 0 : i32
    %c0_i32_0 = arith.constant 0 : i32
    %c0_i32_1 = arith.constant 0 : i32
    return %c0_i32, %arg0, %c0_i32_0 : i32, i32, i32
  }
  func.func @transform_4(%arg0: i32) -> (i32, i32, i32) {
    %c0_i32 = arith.constant 0 : i32
    %c0_i32_0 = arith.constant 0 : i32
    %c0_i32_1 = arith.constant 0 : i32
    return %c0_i32, %arg0, %c0_i32_0 : i32, i32, i32
  }
}

module attributes {stable_mosaic.version = 11 : i64} {
  func.func @_attn_kernel(%arg0: i32, %arg1: i32, %arg2: memref<2x128x1xf32, #tpu.memory_space<vmem>>, %arg3: memref<2x1x128xf32, #tpu.memory_space<vmem>>, %arg4: memref<2x128x128xbf16, #tpu.memory_space<vmem>>, %arg5: memref<128x128xi8, #tpu.memory_space<vmem>>, %arg6: memref<2x128x128xf32, #tpu.memory_space<vmem>>, %arg7: memref<2x128x1xf32, #tpu.memory_space<vmem>>) attributes {dimension_semantics = [#tpu.dimension_semantics<parallel>, #tpu.dimension_semantics<arbitrary>], iteration_bounds = array<i64: 2, 2>, scalar_prefetch = 0 : i64, scratch_operands = 1 : i64, tpu.core_type = #tpu.core_type<tc>, window_params = [{transform_indices = @transform_0, window_bounds = array<i64: 2, 128, 1>}, {transform_indices = @transform_1, window_bounds = array<i64: 2, 1, 128>}, {transform_indices = @transform_2, window_bounds = array<i64: 2, 128, 128>}, {transform_indices = @transform_3, window_bounds = array<i64: 128, 128>}, {transform_indices = @transform_4, window_bounds = array<i64: 2, 128, 128>}]} {
    %c0_i32 = arith.constant 0 : i32
    %0 = arith.cmpi eq, %arg1, %c0_i32 : i32
    %1 = arith.extui %0 : i1 to i32
    %c0_i32_0 = arith.constant 0 : i32
    %2 = arith.cmpi ne, %1, %c0_i32_0 : i32
    scf.if %2 {
      %cst_51 = arith.constant 0xFF800000 : f32
      %83 = vector.broadcast %cst_51 : f32 to vector<2x128x1xf32>
      %c0_52 = arith.constant 0 : index
      %c0_53 = arith.constant 0 : index
      %c0_54 = arith.constant 0 : index
      %84 = vector.load %arg7[%c0_52, %c0_53, %c0_54] : memref<2x128x1xf32, #tpu.memory_space<vmem>>, vector<2x128x1xf32>
      tpu.vector_store %arg7[%c0_52, %c0_53, %c0_54], %83 {strides = array<i32>} : memref<2x128x1xf32, #tpu.memory_space<vmem>>, vector<2x128x1xf32>,
      %cst_55 = arith.constant 0.000000e+00 : f32
      %85 = vector.broadcast %cst_55 : f32 to vector<2x128x128xf32>
      %c0_56 = arith.constant 0 : index
      %c0_57 = arith.constant 0 : index
      %c0_58 = arith.constant 0 : index
      %86 = vector.load %arg6[%c0_56, %c0_57, %c0_58] : memref<2x128x128xf32, #tpu.memory_space<vmem>>, vector<2x128x128xf32>
      tpu.vector_store %arg6[%c0_56, %c0_57, %c0_58], %85 {strides = array<i32>} : memref<2x128x128xf32, #tpu.memory_space<vmem>>, vector<2x128x128xf32>,
    } else {
    }
    %c0 = arith.constant 0 : index
    %c0_1 = arith.constant 0 : index
    %3 = vector.load %arg5[%c0, %c0_1] : memref<128x128xi8, #tpu.memory_space<vmem>>, vector<128x128xi8>
    %c0_i8 = arith.constant 0 : i8
    %4 = vector.broadcast %c0_i8 : i8 to vector<128x128xi8>
    %5 = arith.cmpi ne, %3, %4 : vector<128x128xi8>
    %c0_2 = arith.constant 0 : index
    %c0_3 = arith.constant 0 : index
    %c0_4 = arith.constant 0 : index
    %6 = vector.load %arg2[%c0_2, %c0_3, %c0_4] : memref<2x128x1xf32, #tpu.memory_space<vmem>>, vector<1x128x1xf32>
    %7 = vector.shape_cast %6 : vector<1x128x1xf32> to vector<128x1xf32>
    %c0_5 = arith.constant 0 : index
    %c0_6 = arith.constant 0 : index
    %c0_7 = arith.constant 0 : index
    %8 = vector.load %arg3[%c0_5, %c0_6, %c0_7] : memref<2x1x128xf32, #tpu.memory_space<vmem>>, vector<1x1x128xf32>
    %9 = vector.shape_cast %8 : vector<1x1x128xf32> to vector<1x128xf32>
    %10 = vector.broadcast %7 : vector<128x1xf32> to vector<128x128xf32>
    %11 = vector.broadcast %9 : vector<1x128xf32> to vector<128x128xf32>
    %12 = arith.addf %10, %11 : vector<128x128xf32>
    %cst = arith.constant 0.00999999977 : f32
    %13 = vector.broadcast %cst : f32 to vector<128x128xf32>
    %14 = arith.mulf %13, %12 : vector<128x128xf32>
    %15 = arith.maximumf %12, %14 : vector<128x128xf32>
    %cst_8 = arith.constant -9.000000e+15 : f32
    %16 = vector.broadcast %cst_8 : f32 to vector<128x128xf32>
    %17 = arith.select %5, %15, %16 : vector<128x128xi1>, vector<128x128xf32>
    %c0_9 = arith.constant 0 : index
    %c0_10 = arith.constant 0 : index
    %c0_11 = arith.constant 0 : index
    %18 = vector.load %arg7[%c0_9, %c0_10, %c0_11] : memref<2x128x1xf32, #tpu.memory_space<vmem>>, vector<1x128x1xf32>
    %19 = vector.shape_cast %18 : vector<1x128x1xf32> to vector<128x1xf32>
    %cst_12 = arith.constant dense<0xFF800000> : vector<128xf32>
    %20 = vector.multi_reduction <maximumf>, %17, %cst_12 [1] : vector<128x128xf32> to vector<128xf32>
    %21 = vector.shape_cast %20 : vector<128xf32> to vector<128x1xf32>
    %22 = arith.maximumf %19, %21 : vector<128x1xf32>
    %23 = arith.subf %19, %22 : vector<128x1xf32>
    %24 = math.exp %23 : vector<128x1xf32>
    %25 = vector.broadcast %22 : vector<128x1xf32> to vector<128x128xf32>
    %26 = arith.subf %17, %25 : vector<128x128xf32>
    %27 = math.exp %26 : vector<128x128xf32>
    %28 = arith.truncf %27 : vector<128x128xf32> to vector<128x128xbf16>
    %c0_13 = arith.constant 0 : index
    %c0_14 = arith.constant 0 : index
    %c0_15 = arith.constant 0 : index
    %29 = vector.load %arg6[%c0_13, %c0_14, %c0_15] : memref<2x128x128xf32, #tpu.memory_space<vmem>>, vector<1x128x128xf32>
    %30 = vector.shape_cast %29 : vector<1x128x128xf32> to vector<128x128xf32>
    %31 = vector.broadcast %24 : vector<128x1xf32> to vector<128x128xf32>
    %32 = arith.mulf %31, %30 : vector<128x128xf32>
    %c0_16 = arith.constant 0 : index
    %c0_17 = arith.constant 0 : index
    %c0_18 = arith.constant 0 : index
    %33 = vector.load %arg4[%c0_16, %c0_17, %c0_18] : memref<2x128x128xbf16, #tpu.memory_space<vmem>>, vector<1x128x128xbf16>
    %34 = vector.shape_cast %33 : vector<1x128x128xbf16> to vector<128x128xbf16>
    %cst_19 = arith.constant dense<0.000000e+00> : vector<128x128xf32>
    %35 = tpu.matmul %28, %34, %cst_19 {dimension_numbers = #tpu.dot_dimension_numbers<[1], [0], [0], [1], [0, 0, 1, 1], [], []>} : vector<128x128xbf16>, vector<128x128xbf16>, vector<128x128xf32> -> vector<128x128xf32>
    %36 = arith.addf %32, %35 : vector<128x128xf32>
    %c0_20 = arith.constant 0 : index
    %c0_21 = arith.constant 0 : index
    %c0_22 = arith.constant 0 : index
    %37 = vector.load %arg6[%c0_20, %c0_21, %c0_22] : memref<2x128x128xf32, #tpu.memory_space<vmem>>, vector<1x128x128xf32>
    %38 = vector.shape_cast %37 : vector<1x128x128xf32> to vector<128x128xf32>
    %39 = vector.shape_cast %36 : vector<128x128xf32> to vector<1x128x128xf32>
    tpu.vector_store %arg6[%c0_20, %c0_21, %c0_22], %39 {strides = array<i32>} : memref<2x128x128xf32, #tpu.memory_space<vmem>>, vector<1x128x128xf32>,
    %c0_23 = arith.constant 0 : index
    %c0_24 = arith.constant 0 : index
    %c0_25 = arith.constant 0 : index
    %40 = vector.load %arg7[%c0_23, %c0_24, %c0_25] : memref<2x128x1xf32, #tpu.memory_space<vmem>>, vector<1x128x1xf32>
    %41 = vector.shape_cast %40 : vector<1x128x1xf32> to vector<128x1xf32>
    %42 = vector.shape_cast %22 : vector<128x1xf32> to vector<1x128x1xf32>
    tpu.vector_store %arg7[%c0_23, %c0_24, %c0_25], %42 {strides = array<i32>} : memref<2x128x1xf32, #tpu.memory_space<vmem>>, vector<1x128x1xf32>,
    %c1 = arith.constant 1 : index
    %c0_26 = arith.constant 0 : index
    %c0_27 = arith.constant 0 : index
    %43 = vector.load %arg2[%c1, %c0_26, %c0_27] : memref<2x128x1xf32, #tpu.memory_space<vmem>>, vector<1x128x1xf32>
    %44 = vector.shape_cast %43 : vector<1x128x1xf32> to vector<128x1xf32>
    %c1_28 = arith.constant 1 : index
    %c0_29 = arith.constant 0 : index
    %c0_30 = arith.constant 0 : index
    %45 = vector.load %arg3[%c1_28, %c0_29, %c0_30] : memref<2x1x128xf32, #tpu.memory_space<vmem>>, vector<1x1x128xf32>
    %46 = vector.shape_cast %45 : vector<1x1x128xf32> to vector<1x128xf32>
    %47 = vector.broadcast %44 : vector<128x1xf32> to vector<128x128xf32>
    %48 = vector.broadcast %46 : vector<1x128xf32> to vector<128x128xf32>
    %49 = arith.addf %47, %48 : vector<128x128xf32>
    %cst_31 = arith.constant 0.00999999977 : f32
    %50 = vector.broadcast %cst_31 : f32 to vector<128x128xf32>
    %51 = arith.mulf %50, %49 : vector<128x128xf32>
    %52 = arith.maximumf %49, %51 : vector<128x128xf32>
    %cst_32 = arith.constant -9.000000e+15 : f32
    %53 = vector.broadcast %cst_32 : f32 to vector<128x128xf32>
    %54 = arith.select %5, %52, %53 : vector<128x128xi1>, vector<128x128xf32>
    %c1_33 = arith.constant 1 : index
    %c0_34 = arith.constant 0 : index
    %c0_35 = arith.constant 0 : index
    %55 = vector.load %arg7[%c1_33, %c0_34, %c0_35] : memref<2x128x1xf32, #tpu.memory_space<vmem>>, vector<1x128x1xf32>
    %56 = vector.shape_cast %55 : vector<1x128x1xf32> to vector<128x1xf32>
    %cst_36 = arith.constant dense<0xFF800000> : vector<128xf32>
    %57 = vector.multi_reduction <maximumf>, %54, %cst_36 [1] : vector<128x128xf32> to vector<128xf32>
    %58 = vector.shape_cast %57 : vector<128xf32> to vector<128x1xf32>
    %59 = arith.maximumf %56, %58 : vector<128x1xf32>
    %60 = arith.subf %56, %59 : vector<128x1xf32>
    %61 = math.exp %60 : vector<128x1xf32>
    %62 = vector.broadcast %59 : vector<128x1xf32> to vector<128x128xf32>
    %63 = arith.subf %54, %62 : vector<128x128xf32>
    %64 = math.exp %63 : vector<128x128xf32>
    %65 = arith.truncf %64 : vector<128x128xf32> to vector<128x128xbf16>
    %c1_37 = arith.constant 1 : index
    %c0_38 = arith.constant 0 : index
    %c0_39 = arith.constant 0 : index
    %66 = vector.load %arg6[%c1_37, %c0_38, %c0_39] : memref<2x128x128xf32, #tpu.memory_space<vmem>>, vector<1x128x128xf32>
    %67 = vector.shape_cast %66 : vector<1x128x128xf32> to vector<128x128xf32>
    %68 = vector.broadcast %61 : vector<128x1xf32> to vector<128x128xf32>
    %69 = arith.mulf %68, %67 : vector<128x128xf32>
    %c1_40 = arith.constant 1 : index
    %c0_41 = arith.constant 0 : index
    %c0_42 = arith.constant 0 : index
    %70 = vector.load %arg4[%c1_40, %c0_41, %c0_42] : memref<2x128x128xbf16, #tpu.memory_space<vmem>>, vector<1x128x128xbf16>
    %71 = vector.shape_cast %70 : vector<1x128x128xbf16> to vector<128x128xbf16>
    %cst_43 = arith.constant dense<0.000000e+00> : vector<128x128xf32>
    %72 = tpu.matmul %65, %71, %cst_43 {dimension_numbers = #tpu.dot_dimension_numbers<[1], [0], [0], [1], [0, 0, 1, 1], [], []>} : vector<128x128xbf16>, vector<128x128xbf16>, vector<128x128xf32> -> vector<128x128xf32>
    %73 = arith.addf %69, %72 : vector<128x128xf32>
    %c1_44 = arith.constant 1 : index
    %c0_45 = arith.constant 0 : index
    %c0_46 = arith.constant 0 : index
    %74 = vector.load %arg6[%c1_44, %c0_45, %c0_46] : memref<2x128x128xf32, #tpu.memory_space<vmem>>, vector<1x128x128xf32>
    %75 = vector.shape_cast %74 : vector<1x128x128xf32> to vector<128x128xf32>
    %76 = vector.shape_cast %73 : vector<128x128xf32> to vector<1x128x128xf32>
    tpu.vector_store %arg6[%c1_44, %c0_45, %c0_46], %76 {strides = array<i32>} : memref<2x128x128xf32, #tpu.memory_space<vmem>>, vector<1x128x128xf32>,
    %c1_47 = arith.constant 1 : index
    %c0_48 = arith.constant 0 : index
    %c0_49 = arith.constant 0 : index
    %77 = vector.load %arg7[%c1_47, %c0_48, %c0_49] : memref<2x128x1xf32, #tpu.memory_space<vmem>>, vector<1x128x1xf32>
    %78 = vector.shape_cast %77 : vector<1x128x1xf32> to vector<128x1xf32>
    %79 = vector.shape_cast %59 : vector<128x1xf32> to vector<1x128x1xf32>
    tpu.vector_store %arg7[%c1_47, %c0_48, %c0_49], %79 {strides = array<i32>} : memref<2x128x1xf32, #tpu.memory_space<vmem>>, vector<1x128x1xf32>,
    %c1_i32 = arith.constant 1 : i32
    %80 = arith.cmpi eq, %arg1, %c1_i32 : i32
    %81 = arith.extui %80 : i1 to i32
    %c0_i32_50 = arith.constant 0 : i32
    %82 = arith.cmpi ne, %81, %c0_i32_50 : i32
    scf.if %82 {
      %c0_51 = arith.constant 0 : index
      %c0_52 = arith.constant 0 : index
      %c0_53 = arith.constant 0 : index
      %83 = vector.load %arg6[%c0_51, %c0_52, %c0_53] : memref<2x128x128xf32, #tpu.memory_space<vmem>>, vector<1x128x128xf32>
      %84 = vector.shape_cast %83 : vector<1x128x128xf32> to vector<128x128xf32>
      %85 = tpu.iota {dimensions = array<i32: 1>} : vector<128x128xi32>
      %c32_i32 = arith.constant 32 : i32
      %86 = vector.broadcast %c32_i32 : i32 to vector<128x128xi32>
      %87 = arith.cmpi eq, %85, %86 : vector<128x128xi32>
      %cst_54 = arith.constant 0xFF800000 : f32
      %88 = vector.broadcast %cst_54 : f32 to vector<128x128xf32>
      %89 = arith.select %87, %84, %88 : vector<128x128xi1>, vector<128x128xf32>
      %cst_55 = arith.constant dense<0xFF800000> : vector<128xf32>
      %90 = vector.multi_reduction <maximumf>, %89, %cst_55 [1] : vector<128x128xf32> to vector<128xf32>
      %91 = vector.shape_cast %90 : vector<128xf32> to vector<128x1xf32>
      %92 = tpu.reciprocal %91 {approx = true} : vector<128x1xf32> -> vector<128x1xf32>
      %c0_56 = arith.constant 0 : index
      %c0_57 = arith.constant 0 : index
      %c0_58 = arith.constant 0 : index
      %93 = vector.load %arg7[%c0_56, %c0_57, %c0_58] : memref<2x128x1xf32, #tpu.memory_space<vmem>>, vector<1x128x1xf32>
      %94 = vector.shape_cast %93 : vector<1x128x1xf32> to vector<128x1xf32>
      %cst_59 = arith.constant -4.500000e+15 : f32
      %95 = vector.broadcast %cst_59 : f32 to vector<128x1xf32>
      %96 = arith.cmpf ogt, %94, %95 : vector<128x1xf32>
      %97 = vector.broadcast %92 : vector<128x1xf32> to vector<128x128xf32>
      %98 = arith.mulf %84, %97 : vector<128x128xf32>
      %cst_60 = arith.constant 0.000000e+00 : f32
      %99 = vector.shape_cast %96 : vector<128x1xi1> to vector<128x1xi1>
      %100 = vector.broadcast %99 : vector<128x1xi1> to vector<128x128xi1>
      %101 = vector.broadcast %cst_60 : f32 to vector<128x128xf32>
      %102 = arith.select %100, %98, %101 : vector<128x128xi1>, vector<128x128xf32>
      %c0_61 = arith.constant 0 : index
      %c0_62 = arith.constant 0 : index
      %c0_63 = arith.constant 0 : index
      %103 = vector.load %arg6[%c0_61, %c0_62, %c0_63] : memref<2x128x128xf32, #tpu.memory_space<vmem>>, vector<1x128x128xf32>
      %104 = vector.shape_cast %103 : vector<1x128x128xf32> to vector<128x128xf32>
      %105 = vector.shape_cast %102 : vector<128x128xf32> to vector<1x128x128xf32>
      tpu.vector_store %arg6[%c0_61, %c0_62, %c0_63], %105 {strides = array<i32>} : memref<2x128x128xf32, #tpu.memory_space<vmem>>, vector<1x128x128xf32>,
      %c1_64 = arith.constant 1 : index
      %c0_65 = arith.constant 0 : index
      %c0_66 = arith.constant 0 : index
      %106 = vector.load %arg6[%c1_64, %c0_65, %c0_66] : memref<2x128x128xf32, #tpu.memory_space<vmem>>, vector<1x128x128xf32>
      %107 = vector.shape_cast %106 : vector<1x128x128xf32> to vector<128x128xf32>
      %108 = tpu.iota {dimensions = array<i32: 1>} : vector<128x128xi32>
      %c32_i32_67 = arith.constant 32 : i32
      %109 = vector.broadcast %c32_i32_67 : i32 to vector<128x128xi32>
      %110 = arith.cmpi eq, %108, %109 : vector<128x128xi32>
      %cst_68 = arith.constant 0xFF800000 : f32
      %111 = vector.broadcast %cst_68 : f32 to vector<128x128xf32>
      %112 = arith.select %110, %107, %111 : vector<128x128xi1>, vector<128x128xf32>
      %cst_69 = arith.constant dense<0xFF800000> : vector<128xf32>
      %113 = vector.multi_reduction <maximumf>, %112, %cst_69 [1] : vector<128x128xf32> to vector<128xf32>
      %114 = vector.shape_cast %113 : vector<128xf32> to vector<128x1xf32>
      %115 = tpu.reciprocal %114 {approx = true} : vector<128x1xf32> -> vector<128x1xf32>
      %c1_70 = arith.constant 1 : index
      %c0_71 = arith.constant 0 : index
      %c0_72 = arith.constant 0 : index
      %116 = vector.load %arg7[%c1_70, %c0_71, %c0_72] : memref<2x128x1xf32, #tpu.memory_space<vmem>>, vector<1x128x1xf32>
      %117 = vector.shape_cast %116 : vector<1x128x1xf32> to vector<128x1xf32>
      %cst_73 = arith.constant -4.500000e+15 : f32
      %118 = vector.broadcast %cst_73 : f32 to vector<128x1xf32>
      %119 = arith.cmpf ogt, %117, %118 : vector<128x1xf32>
      %120 = vector.broadcast %115 : vector<128x1xf32> to vector<128x128xf32>
      %121 = arith.mulf %107, %120 : vector<128x128xf32>
      %cst_74 = arith.constant 0.000000e+00 : f32
      %122 = vector.shape_cast %119 : vector<128x1xi1> to vector<128x1xi1>
      %123 = vector.broadcast %122 : vector<128x1xi1> to vector<128x128xi1>
      %124 = vector.broadcast %cst_74 : f32 to vector<128x128xf32>
      %125 = arith.select %123, %121, %124 : vector<128x128xi1>, vector<128x128xf32>
      %c1_75 = arith.constant 1 : index
      %c0_76 = arith.constant 0 : index
      %c0_77 = arith.constant 0 : index
      %126 = vector.load %arg6[%c1_75, %c0_76, %c0_77] : memref<2x128x128xf32, #tpu.memory_space<vmem>>, vector<1x128x128xf32>
      %127 = vector.shape_cast %126 : vector<1x128x128xf32> to vector<128x128xf32>
      %128 = vector.shape_cast %125 : vector<128x128xf32> to vector<1x128x128xf32>
      tpu.vector_store %arg6[%c1_75, %c0_76, %c0_77], %128 {strides = array<i32>} : memref<2x128x128xf32, #tpu.memory_space<vmem>>, vector<1x128x128xf32>,
    } else {
    }
    return
  }
  func.func @transform_0(%arg0: i32, %arg1: i32) -> (i32, i32, i32) {
    %c0_i32 = arith.constant 0 : i32
    %c0_i32_0 = arith.constant 0 : i32
    %c0_i32_1 = arith.constant 0 : i32
    return %c0_i32, %arg0, %c0_i32_0 : i32, i32, i32
  }
  func.func @transform_1(%arg0: i32, %arg1: i32) -> (i32, i32, i32) {
    %c0_i32 = arith.constant 0 : i32
    %c0_i32_0 = arith.constant 0 : i32
    %c0_i32_1 = arith.constant 0 : i32
    return %c0_i32, %c0_i32_0, %arg1 : i32, i32, i32
  }
  func.func @transform_2(%arg0: i32, %arg1: i32) -> (i32, i32, i32) {
    %c0_i32 = arith.constant 0 : i32
    %c0_i32_0 = arith.constant 0 : i32
    %c0_i32_1 = arith.constant 0 : i32
    return %c0_i32, %arg1, %c0_i32_0 : i32, i32, i32
  }
  func.func @transform_3(%arg0: i32, %arg1: i32) -> (i32, i32) {
    %c0_i32 = arith.constant 0 : i32
    return %arg0, %arg1 : i32, i32
  }
  func.func @transform_4(%arg0: i32, %arg1: i32) -> (i32, i32, i32) {
    %c0_i32 = arith.constant 0 : i32
    %c0_i32_0 = arith.constant 0 : i32
    %c0_i32_1 = arith.constant 0 : i32
    return %c0_i32, %arg0, %c0_i32_0 : i32, i32, i32
  }
}

</mosaic_0001>

<bundles_post_ra>
// kernel: graph_attention_forward.2
= control target key start
LH: loop header
LB: loop body
LE: loop exit
PB: predicated region body
PF: predicated region fallthrough
CT: control target
= control target key end

     0   :  { %s1603_s15 = smov 0   ;;  %s1605_s16 = smov 0   ;;  %s2102_s0 = inlined_call_operand.vmem [shape: bf16[256,128], index: 0, kind: input, shape index: {}]   ;;  %s2103_s1 = inlined_call_operand.vmem [shape: bf16[128,512], index: 1, kind: input, shape index: {}]   ;;  %s2104_s2 = inlined_call_operand.vmem [shape: f32[1,512], index: 2, kind: input, shape index: {}]   ;;  %s2105_s3 = inlined_call_operand.vmem [shape: bf16[2,256,128], index: 3, kind: output, shape index: {0}]   ;;  %s2106_s4 = inlined_call_operand.vmem [shape: f32[2,256,2], index: 4, kind: output, shape index: {1}]  }
   0x1   :  { %s1607_s17 = smov 0  }
   0x2 LB: > { %s1616_s18 = sadd.s32 4294967295, %s1576_s17   ;;  %s1618_s19 = sadd.s32 1, %s1576_s17   ;;  %s1576_s17 = sphi %s1607_s17, %s2110_s17   ;;  %s1572_s16 = sphi %s1605_s16, %s2109_s16   ;;  %s1568_s15 = sphi %s1603_s15, %s2108_s15  }
   0x3   : > { %s87_s20 = ssub.s32 %s1576_s17, %s1618_s19  ;;  %s90_s21 = sadd.s32 1, %s1572_s16 }
   0x4   : > { %p88_p0 = scmp.eq.s32.totalorder %s87_s20, 0  ;;  %p100_p1 = scmp.ne.s32.totalorder %s1572_s16, %s1568_s15 }
   0x5   : > { %p101_p2 = scmp.eq.s32.totalorder %s1616_s18, 1  ;;  %p1188_p3 = scmp.ge.s32.totalorder %s1576_s17, 1 }
   0x6   : > { %s1626_s22 = scalar_select %p88_p0, %s1572_s16, %s90_s21  }
   0x7   : > { %p1628_p4 = por %p101_p2, %p100_p1  ;;  %p166_p5 = scmp.lt.s32.totalorder %s1576_s17, 3 }
   0x9   : > { %p167_p6 = pnand %p1188_p3, %p166_p5 }
   0xa   : > { %s1191_s6 = sshll.u32 (!%p167_p6), %s1616_s18, 4 }
   0xb   : > { %170 = sbr.rel (%p167_p6) target bundleno = 350 (0x15e), region = 32  ;;  %p196_p7 = scmp.lt.s32.totalorder (!%p167_p6), %s1191_s6, 31 }
  0x10   : > { %v1339_v0 = vld [vmem:[%s2103_s1 + $0xe0] sm:$0xf]  ;;  %v1431_v1 = vld [vmem:[%s2103_s1 + $0xec] sm:$0xf0]  ;;  %v1429_v2 = vld [vmem:[%s2103_s1 + $0xe4] sm:$0xf] }
  0x11   : > { %v1340_v3 = vor.u32 %v1431_v1, %v1339_v0  ;;  %v1341_v4 = vld [vmem:[%s2103_s1 + $0xf0] sm:$0xf0]  ;;  %v1347_v5 = vld [vmem:[%s2103_s1 + $0xe8] sm:$0xf]  ;;  %v1432_v6 = vld [vmem:[%s2103_s1 + $0xf4] sm:$0xf0] }
  0x12   : > { %v1344_v7 = vor.u32 %v1429_v2, %v1341_v4  ;;  %v1348_v8 = vor.u32 %v1432_v6, %v1347_v5  ;;  %v1430_v9 = vld [vmem:[%s2103_s1 + $0xec] sm:$0xf]  ;;  %v1349_v10 = vld [vmem:[%s2103_s1 + $0xf8] sm:$0xf0]  ;;  %v1323_v11 = vld [vmem:[%s2103_s1 + $0xc0] sm:$0xf] }
  0x13   : > { %469 = vmatpush.bf16.msra.mxu0 %v1340_v3  ;;  %v1352_v12 = vor.u32 %v1430_v9, %v1349_v10  ;;  %v1427_v13 = vld [vmem:[%s2103_s1 + $0xcc] sm:$0xf0]  ;;  %v1425_v14 = vld [vmem:[%s2103_s1 + $0xc4] sm:$0xf]  ;;  %v1325_v15 = vld [vmem:[%s2103_s1 + $0xd0] sm:$0xf0] }
  0x14   : > { %518 = vmatpush.bf16.msra.mxu1 %v1344_v7  ;;  %567 = vmatpush.bf16.msra.mxu2 %v1348_v8  ;;  %v1324_v16 = vor.u32 %v1427_v13, %v1323_v11  ;;  %v1328_v17 = vor.u32 %v1425_v14, %v1325_v15  ;;  %v1331_v18 = vld [vmem:[%s2103_s1 + $0xc8] sm:$0xf]  ;;  %v1428_v19 = vld [vmem:[%s2103_s1 + $0xd4] sm:$0xf0]  ;;  %v1426_v20 = vld [vmem:[%s2103_s1 + $0xcc] sm:$0xf] }
  0x15   : > { %616 = vmatpush.bf16.msra.mxu3 %v1352_v12  ;;  %v1332_v21 = vor.u32 %v1428_v19, %v1331_v18  ;;  %v1333_v22 = vld [vmem:[%s2103_s1 + $0xd8] sm:$0xf0]  ;;  %v1307_v23 = vld [vmem:[%s2103_s1 + $0xa0] sm:$0xf]  ;;  %v1423_v24 = vld [vmem:[%s2103_s1 + $0xac] sm:$0xf0] }
  0x16   : > { %v1336_v25 = vor.u32 %v1426_v20, %v1333_v22  ;;  %v1421_v26 = vld [vmem:[%s2103_s1 + $0xa4] sm:$0xf]  ;;  %v1309_v27 = vld [vmem:[%s2103_s1 + $0xb0] sm:$0xf0]  ;;  %v1315_v28 = vld [vmem:[%s2103_s1 + $0xa8] sm:$0xf]  ;;  %v1308_v29 = vor.u32 %v1423_v24, %v1307_v23 }
  0x17   : > { %470 = vmatpush.bf16.msra.mxu0 %v1324_v16  ;;  %v1424_v30 = vld [vmem:[%s2103_s1 + $0xb4] sm:$0xf0]  ;;  %v1422_v31 = vld [vmem:[%s2103_s1 + $0xac] sm:$0xf]  ;;  %v1317_v32 = vld [vmem:[%s2103_s1 + $0xb8] sm:$0xf0]  ;;  %v1312_v33 = vor.u32 %v1421_v26, %v1309_v27 }
  0x18   : > { %519 = vmatpush.bf16.msra.mxu1 %v1328_v17  ;;  %568 = vmatpush.bf16.msra.mxu2 %v1332_v21  ;;  %v1316_v34 = vor.u32 %v1424_v30, %v1315_v28  ;;  %v1291_v35 = vld [vmem:[%s2103_s1 + $0x80] sm:$0xf]  ;;  %v1419_v36 = vld [vmem:[%s2103_s1 + $0x8c] sm:$0xf0]  ;;  %v1417_v37 = vld [vmem:[%s2103_s1 + $0x84] sm:$0xf]  ;;  %v1320_v38 = vor.u32 %v1422_v31, %v1317_v32 }
  0x19   : > { %617 = vmatpush.bf16.msra.mxu3 %v1336_v25  ;;  %v1293_v39 = vld [vmem:[%s2103_s1 + $0x90] sm:$0xf0]  ;;  %v1299_v40 = vld [vmem:[%s2103_s1 + $0x88] sm:$0xf]  ;;  %v1420_v41 = vld [vmem:[%s2103_s1 + $0x94] sm:$0xf0]  ;;  %v1292_v44 = vor.u32 %v1419_v36, %v1291_v35 }
  0x1a   : > { %v1418_v42 = vld [vmem:[%s2103_s1 + $0x8c] sm:$0xf]  ;;  %v1301_v43 = vld [vmem:[%s2103_s1 + $0x98] sm:$0xf0]  ;;  %v1296_v45 = vor.u32 %v1417_v37, %v1293_v39  ;;  %v1300_v46 = vor.u32 %v1420_v41, %v1299_v40  ;;  %v1275_v47 = vld [vmem:[%s2103_s1 + $0x60] sm:$0xf] }
  0x1b   : > { %471 = vmatpush.bf16.msra.mxu0 %v1308_v29  ;;  %v1415_v48 = vld [vmem:[%s2103_s1 + $0x6c] sm:$0xf0]  ;;  %v1413_v49 = vld [vmem:[%s2103_s1 + $0x64] sm:$0xf]  ;;  %v1304_v50 = vor.u32 %v1418_v42, %v1301_v43  ;;  %v1277_v51 = vld [vmem:[%s2103_s1 + $0x70] sm:$0xf0] }
  0x1c   : > { %520 = vmatpush.bf16.msra.mxu1 %v1312_v33  ;;  %569 = vmatpush.bf16.msra.mxu2 %v1316_v34  ;;  %v1283_v52 = vld [vmem:[%s2103_s1 + $0x68] sm:$0xf]  ;;  %v1416_v53 = vld [vmem:[%s2103_s1 + $0x74] sm:$0xf0]  ;;  %v1414_v54 = vld [vmem:[%s2103_s1 + $0x6c] sm:$0xf]  ;;  %v1276_v56 = vor.u32 %v1415_v48, %v1275_v47  ;;  %v1280_v57 = vor.u32 %v1413_v49, %v1277_v51 }
  0x1d   : > { %618 = vmatpush.bf16.msra.mxu3 %v1320_v38  ;;  %v1285_v55 = vld [vmem:[%s2103_s1 + $0x78] sm:$0xf0]  ;;  %v1284_v58 = vor.u32 %v1416_v53, %v1283_v52  ;;  %v1259_v59 = vld [vmem:[%s2103_s1 + $0x40] sm:$0xf]  ;;  %v1411_v60 = vld [vmem:[%s2103_s1 + $0x4c] sm:$0xf0] }
  0x1e   : > { %v1409_v61 = vld [vmem:[%s2103_s1 + $0x44] sm:$0xf]  ;;  %v1288_v62 = vor.u32 %v1414_v54, %v1285_v55  ;;  %v1261_v63 = vld [vmem:[%s2103_s1 + $0x50] sm:$0xf0]  ;;  %v1267_v0 = vld [vmem:[%s2103_s1 + $0x48] sm:$0xf]  ;;  %v1260_v4 = vor.u32 %v1411_v60, %v1259_v59 }
  0x1f   : > { %472 = vmatpush.bf16.msra.mxu0 %v1292_v44  ;;  %v1412_v1 = vld [vmem:[%s2103_s1 + $0x54] sm:$0xf0]  ;;  %v1410_v2 = vld [vmem:[%s2103_s1 + $0x4c] sm:$0xf]  ;;  %v1269_v3 = vld [vmem:[%s2103_s1 + $0x58] sm:$0xf0]  ;;  %v1264_v6 = vor.u32 %v1409_v61, %v1261_v63 }
  0x20   : > { %521 = vmatpush.bf16.msra.mxu1 %v1296_v45  ;;  %570 = vmatpush.bf16.msra.mxu2 %v1300_v46  ;;  %v1243_v5 = vld [vmem:[%s2103_s1 + $0x20] sm:$0xf]  ;;  %v1268_v7 = vor.u32 %v1412_v1, %v1267_v0  ;;  %v1407_v8 = vld [vmem:[%s2103_s1 + $0x2c] sm:$0xf0]  ;;  %v1405_v9 = vld [vmem:[%s2103_s1 + $0x24] sm:$0xf]  ;;  %v1272_v11 = vor.u32 %v1410_v2, %v1269_v3 }
  0x21   : > { %619 = vmatpush.bf16.msra.mxu3 %v1304_v50  ;;  %v1245_v10 = vld [vmem:[%s2103_s1 + $0x30] sm:$0xf0]  ;;  %v1251_v12 = vld [vmem:[%s2103_s1 + $0x28] sm:$0xf]  ;;  %v1408_v13 = vld [vmem:[%s2103_s1 + $0x34] sm:$0xf0]  ;;  %v1244_v16 = vor.u32 %v1407_v8, %v1243_v5 }
  0x22   : > { %v1406_v14 = vld [vmem:[%s2103_s1 + $0x2c] sm:$0xf]  ;;  %v1253_v15 = vld [vmem:[%s2103_s1 + $0x38] sm:$0xf0]  ;;  %v1227_v17 = vld [vmem:[%s2103_s1] sm:$0xf]  ;;  %v1248_v18 = vor.u32 %v1405_v9, %v1245_v10  ;;  %v1252_v19 = vor.u32 %v1408_v13, %v1251_v12 }
  0x23   : > { %473 = vmatpush.bf16.msra.mxu0 %v1276_v56  ;;  %v1403_v20 = vld [vmem:[%s2103_s1 + $0xc] sm:$0xf0]  ;;  %v1401_v21 = vld [vmem:[%s2103_s1 + $0x4] sm:$0xf]  ;;  %s2112_s6 = smov (!%p196_p7, %s1191_s6), 31  ;;  %v1256_v22 = vor.u32 %v1406_v14, %v1253_v15  ;;  %vm697_vm0 = vcmask 15360  }
  0x24   : > { %522 = vmatpush.bf16.msra.mxu1 %v1280_v57  ;;  %571 = vmatpush.bf16.msra.mxu2 %v1284_v58  ;;  %v1229_v23 = vld [vmem:[%s2103_s1 + $0x10] sm:$0xf0]  ;;  %v1235_v24 = vld [vmem:[%s2103_s1 + $0x8] sm:$0xf]  ;;  %v1404_v25 = vld [vmem:[%s2103_s1 + $0x14] sm:$0xf0]  ;;  %v1228_v28 = vor.u32 %v1403_v20, %v1227_v17 }
  0x25   : > { %620 = vmatpush.bf16.msra.mxu3 %v1288_v62  ;;  %v1402_v26 = vld [vmem:[%s2103_s1 + $0xc] sm:$0xf]  ;;  %v1237_v27 = vld [vmem:[%s2103_s1 + $0x18] sm:$0xf0]  ;;  %s1192_s8 = sshll.u32 %s2112_s6, 2  ;;  %v1232_v29 = vor.u32 %v1401_v21, %v1229_v23  ;;  %v1236_v30 = vor.u32 %v1404_v25, %v1235_v24  ;;  %s186_s6 = sand.u32 1, %s1568_s15  }
  0x26   : > { %s1828_s11 = scalar_lea.vmem %s2102_s0, %s1192_s8  ;;  %v1240_v31 = vor.u32 %v1402_v26, %v1237_v27  ;;  %v251_v40 = vld [vmem:[%s2104_s2] sm:$0xf]  ;;  %s1190_s14 = sshll.u32 %s186_s6, 8 }
  0x27   : > { %474 = vmatpush.bf16.msra.mxu0 %v1260_v4  ;;  %v1393_v32 = vld [vmem:[%s1828_s11] sm:$0xff]  ;;  %v1394_v33 = vld [vmem:[%s1828_s11 + $0x8] sm:$0xff]  ;;  %v1395_v34 = vld [vmem:[%s1828_s11 + $0x10] sm:$0xff]  ;;  %v1842_v41 = vperm.slane %v251_v40, 1  ;;  %s1845_s17 = scalar_lea.vmem [#allocation3], %s1190_s14  ;;  %v1849_v45 = vperm.slane %v251_v40, 0 }
  0x28   : > { %523 = vmatpush.bf16.msra.mxu1 %v1264_v6  ;;  %572 = vmatpush.bf16.msra.mxu2 %v1268_v7  ;;  %v1396_v35 = vld [vmem:[%s1828_s11 + $0x18] sm:$0xff]  ;;  %v1397_v36 = vld [vmem:[%s1828_s11 + $0x20] sm:$0xff]  ;;  %v1398_v37 = vld [vmem:[%s1828_s11 + $0x28] sm:$0xff]  ;;  %v1851_v46 = vperm.slane %v251_v40, 3  ;;  %s1189_s15 = sshll.u32 %s186_s6, 7  ;;  %v1859_v56 = vperm.slane %v251_v40, 2 }
  0x29   : > { %621 = vmatpush.bf16.msra.mxu3 %v1272_v11  ;;  %v1399_v38 = vld [vmem:[%s1828_s11 + $0x30] sm:$0xff]  ;;  %v1400_v39 = vld [vmem:[%s1828_s11 + $0x38] sm:$0xff]  ;;  %s1863_s20 = scalar_lea.vmem [#allocation2], %s1189_s15  ;;  %s1433_s21 = sshll.u32 (%p1628_p4), %s1616_s18, 6 }
  0x2a   : > { %s777_s26 = scalar_lea.vmem (%p1628_p4), %s2105_s3, %s1433_s21 }
  0x2b   : > { %475 = vmatpush.bf16.msra.mxu0 %v1244_v16 }
  0x2c   : > { %524 = vmatpush.bf16.msra.mxu1 %v1248_v18  ;;  %573 = vmatpush.bf16.msra.mxu2 %v1252_v19 }
  0x2d   : > { %622 = vmatpush.bf16.msra.mxu3 %v1256_v22 }
  0x2f   : > { %476 = vmatpush.bf16.msra.mxu0 %v1228_v28 }
  0x30   : > { %525 = vmatpush.bf16.msra.mxu1 %v1232_v29  ;;  %574 = vmatpush.bf16.msra.mxu2 %v1236_v30 }
  0x31   : > { %623 = vmatpush.bf16.msra.mxu3 %v1240_v31 }
  0x32   : > { %477 = vmatmul.bf16.vlgmr.msra.gmra.mxu0 %v1393_v32 }
  0x33   : > { %526 = vmatmul.bf16.vlgmr.msra.gmra.mxu1 %v1393_v32  ;;  %575 = vmatmul.bf16.vlgmr.msra.gmra.mxu2 %v1393_v32 }
  0x34   : > { %624 = vmatmul.bf16.vlgmr.msra.gmra.mxu3 %v1393_v32 }
  0x42   : > { %482 = vmatmul.bf16.gmra.mxu0 %v1394_v33 }
  0x43   : > { %531 = vmatmul.bf16.gmra.mxu1 %v1394_v33  ;;  %580 = vmatmul.bf16.gmra.mxu2 %v1394_v33 }
  0x44   : > { %629 = vmatmul.bf16.gmra.mxu3 %v1394_v33 }
  0x52   : > { %487 = vmatmul.bf16.gmra.mxu0 %v1395_v34 }
  0x53   : > { %536 = vmatmul.bf16.gmra.mxu1 %v1395_v34  ;;  %585 = vmatmul.bf16.gmra.mxu2 %v1395_v34 }
  0x54   : > { %634 = vmatmul.bf16.gmra.mxu3 %v1395_v34 }
  0x62   : > { %492 = vmatmul.bf16.gmra.mxu0 %v1396_v35 }
  0x63   : > { %541 = vmatmul.bf16.gmra.mxu1 %v1396_v35  ;;  %590 = vmatmul.bf16.gmra.mxu2 %v1396_v35 }
  0x64   : > { %639 = vmatmul.bf16.gmra.mxu3 %v1396_v35 }
  0x72   : > { %497 = vmatmul.bf16.gmra.mxu0 %v1397_v36 }
  0x73   : > { %546 = vmatmul.bf16.gmra.mxu1 %v1397_v36  ;;  %595 = vmatmul.bf16.gmra.mxu2 %v1397_v36 }
  0x74   : > { %644 = vmatmul.bf16.gmra.mxu3 %v1397_v36 }
  0x82   : > { %502 = vmatmul.bf16.gmra.mxu0 %v1398_v37 }
  0x83   : > { %551 = vmatmul.bf16.gmra.mxu1 %v1398_v37  ;;  %600 = vmatmul.bf16.gmra.mxu2 %v1398_v37 }
  0x84   : > { %649 = vmatmul.bf16.gmra.mxu3 %v1398_v37 }
  0x92   : > { %507 = vmatmul.bf16.gmra.mxu0 %v1399_v38 }
  0x93   : > { %556 = vmatmul.bf16.gmra.mxu1 %v1399_v38  ;;  %605 = vmatmul.bf16.gmra.mxu2 %v1399_v38 }
  0x94   : > { %654 = vmatmul.bf16.gmra.mxu3 %v1399_v38 }
  0xa2   : > { %512 = vmatmul.bf16.gmra.mxu0 %v1400_v39 }
  0xa3   : > { %561 = vmatmul.bf16.gmra.mxu1 %v1400_v39  ;;  %610 = vmatmul.bf16.gmra.mxu2 %v1400_v39 }
  0xa4   : > { %659 = vmatmul.bf16.gmra.mxu3 %v1400_v39 }
  0xaf   : > { %v478_v42 = vpop.f32.mrf.mxu0 }
  0xb0   : > { %v527_v43 = vpop.f32.mrf.mxu1  ;;  %v479_v50 = vadd.f32 %v478_v42, %v1849_v45 }
  0xb1   : > { %v528_v44 = vadd.f32 %v527_v43, %v1842_v41 }
  0xb3   : > { %698 = vst.msk [vmem:[%s1845_s17] sm:$0xff] %vm697_vm0, %v528_v44 }
  0xb6   : > { %v576_v47 = vpop.f32.mrf.mxu2 }
  0xb7   : > { %v625_v48 = vpop.f32.mrf.mxu3  ;;  %v480_v49 = vpop.f32.mrf.mxu0  ;;  %v577_v58 = vadd.f32 %v576_v47, %v1859_v56 }
  0xb8   : > { %v626_v51 = vadd.f32 %v625_v48, %v1851_v46  ;;  %v481_v52 = vadd.f32 %v480_v49, %v1849_v45  ;;  %v529_v53 = vpop.f32.mrf.mxu1 }
  0xb9   : > { %v530_v54 = vadd.f32 %v529_v53, %v1842_v41 }
  0xba   : > { %1369 = vst.msk [vmem:[%s1845_s17 + $0x80] sm:$0xff] %vm697_vm0, %v626_v51  ;;  %v1438_v55 = vpack.c.bf16 %v481_v52, %v479_v50 }
  0xbb   : > { %699 = vst.msk [vmem:[%s1845_s17 + $0x8] sm:$0xff] %vm697_vm0, %v530_v54 }
  0xbc   : > { %1439 = vst [vmem:[%s1863_s20] sm:$0xff] %v1438_v55  }
  0xbe   : > { %v578_v57 = vpop.f32.mrf.mxu2 }
  0xbf   : > { %v579_v59 = vadd.f32 %v578_v57, %v1859_v56  ;;  %v627_v60 = vpop.f32.mrf.mxu3  ;;  %v483_v61 = vpop.f32.mrf.mxu0 }
  0xc0   : > { %v628_v62 = vadd.f32 %v627_v60, %v1851_v46  ;;  %v532_v63 = vpop.f32.mrf.mxu1  ;;  %v484_v5 = vadd.f32 %v483_v61, %v1849_v45 }
  0xc1   : > { %v1478_v0 = vpack.c.bf16 %v579_v59, %v577_v58  ;;  %v533_v1 = vadd.f32 %v532_v63, %v1842_v41 }
  0xc2   : > { %1370 = vst.msk [vmem:[%s1845_s17 + $0x88] sm:$0xff] %vm697_vm0, %v628_v62 }
  0xc3   : > { %1522 = vst [vmem:[%s1863_s20 + $0x40] sm:$0xff] %v1478_v0  }
  0xc4   : > { %700 = vst.msk [vmem:[%s1845_s17 + $0x10] sm:$0xff] %vm697_vm0, %v533_v1 }
  0xc6   : > { %v581_v2 = vpop.f32.mrf.mxu2 }
  0xc7   : > { %v630_v3 = vpop.f32.mrf.mxu3  ;;  %v485_v4 = vpop.f32.mrf.mxu0  ;;  %v582_v12 = vadd.f32 %v581_v2, %v1859_v56 }
  0xc8   : > { %v631_v6 = vadd.f32 %v630_v3, %v1851_v46  ;;  %v486_v7 = vadd.f32 %v485_v4, %v1849_v45  ;;  %v534_v8 = vpop.f32.mrf.mxu1 }
  0xc9   : > { %v535_v9 = vadd.f32 %v534_v8, %v1842_v41 }
  0xca   : > { %1371 = vst.msk [vmem:[%s1845_s17 + $0x90] sm:$0xff] %vm697_vm0, %v631_v6  ;;  %v1443_v10 = vpack.c.bf16 %v486_v7, %v484_v5 }
  0xcb   : > { %701 = vst.msk [vmem:[%s1845_s17 + $0x18] sm:$0xff] %vm697_vm0, %v535_v9 }
  0xcc   : > { %1515 = vst [vmem:[%s1863_s20 + $0x8] sm:$0xff] %v1443_v10  }
  0xce   : > { %v583_v11 = vpop.f32.mrf.mxu2 }
  0xcf   : > { %v584_v13 = vadd.f32 %v583_v11, %v1859_v56  ;;  %v632_v14 = vpop.f32.mrf.mxu3  ;;  %v488_v15 = vpop.f32.mrf.mxu0 }
  0xd0   : > { %v633_v16 = vadd.f32 %v632_v14, %v1851_v46  ;;  %v537_v17 = vpop.f32.mrf.mxu1  ;;  %v489_v23 = vadd.f32 %v488_v15, %v1849_v45 }
  0xd1   : > { %v1483_v18 = vpack.c.bf16 %v584_v13, %v582_v12  ;;  %v538_v19 = vadd.f32 %v537_v17, %v1842_v41 }
  0xd2   : > { %1372 = vst.msk [vmem:[%s1845_s17 + $0x98] sm:$0xff] %vm697_vm0, %v633_v16 }
  0xd3   : > { %1523 = vst [vmem:[%s1863_s20 + $0x48] sm:$0xff] %v1483_v18  }
  0xd4   : > { %702 = vst.msk [vmem:[%s1845_s17 + $0x20] sm:$0xff] %vm697_vm0, %v538_v19 }
  0xd6   : > { %v586_v20 = vpop.f32.mrf.mxu2 }
  0xd7   : > { %v635_v21 = vpop.f32.mrf.mxu3  ;;  %v490_v22 = vpop.f32.mrf.mxu0  ;;  %v587_v30 = vadd.f32 %v586_v20, %v1859_v56 }
  0xd8   : > { %v636_v24 = vadd.f32 %v635_v21, %v1851_v46  ;;  %v491_v25 = vadd.f32 %v490_v22, %v1849_v45  ;;  %v539_v26 = vpop.f32.mrf.mxu1 }
  0xd9   : > { %v540_v27 = vadd.f32 %v539_v26, %v1842_v41 }
  0xda   : > { %1373 = vst.msk [vmem:[%s1845_s17 + $0xa0] sm:$0xff] %vm697_vm0, %v636_v24  ;;  %v1448_v28 = vpack.c.bf16 %v491_v25, %v489_v23 }
  0xdb   : > { %703 = vst.msk [vmem:[%s1845_s17 + $0x28] sm:$0xff] %vm697_vm0, %v540_v27 }
  0xdc   : > { %1516 = vst [vmem:[%s1863_s20 + $0x10] sm:$0xff] %v1448_v28  }
  0xde   : > { %v588_v29 = vpop.f32.mrf.mxu2 }
  0xdf   : > { %v589_v31 = vadd.f32 %v588_v29, %v1859_v56  ;;  %v637_v32 = vpop.f32.mrf.mxu3  ;;  %v493_v33 = vpop.f32.mrf.mxu0 }
  0xe0   : > { %v638_v34 = vadd.f32 %v637_v32, %v1851_v46  ;;  %v542_v35 = vpop.f32.mrf.mxu1  ;;  %v494_v42 = vadd.f32 %v493_v33, %v1849_v45 }
  0xe1   : > { %v1488_v36 = vpack.c.bf16 %v589_v31, %v587_v30  ;;  %v543_v37 = vadd.f32 %v542_v35, %v1842_v41 }
  0xe2   : > { %1374 = vst.msk [vmem:[%s1845_s17 + $0xa8] sm:$0xff] %vm697_vm0, %v638_v34 }
  0xe3   : > { %1524 = vst [vmem:[%s1863_s20 + $0x50] sm:$0xff] %v1488_v36  }
  0xe4   : > { %704 = vst.msk [vmem:[%s1845_s17 + $0x30] sm:$0xff] %vm697_vm0, %v543_v37 }
  0xe6   : > { %v591_v38 = vpop.f32.mrf.mxu2 }
  0xe7   : > { %v640_v39 = vpop.f32.mrf.mxu3  ;;  %v495_v40 = vpop.f32.mrf.mxu0  ;;  %v592_v51 = vadd.f32 %v591_v38, %v1859_v56 }
  0xe8   : > { %v641_v43 = vadd.f32 %v640_v39, %v1851_v46  ;;  %v496_v44 = vadd.f32 %v495_v40, %v1849_v45  ;;  %v544_v47 = vpop.f32.mrf.mxu1 }
  0xe9   : > { %v545_v48 = vadd.f32 %v544_v47, %v1842_v41 }
  0xea   : > { %1375 = vst.msk [vmem:[%s1845_s17 + $0xb0] sm:$0xff] %vm697_vm0, %v641_v43  ;;  %v1453_v49 = vpack.c.bf16 %v496_v44, %v494_v42 }
  0xeb   : > { %705 = vst.msk [vmem:[%s1845_s17 + $0x38] sm:$0xff] %vm697_vm0, %v545_v48 }
  0xec   : > { %1517 = vst [vmem:[%s1863_s20 + $0x18] sm:$0xff] %v1453_v49  }
  0xee   : > { %v593_v50 = vpop.f32.mrf.mxu2 }
  0xef   : > { %v594_v52 = vadd.f32 %v593_v50, %v1859_v56  ;;  %v642_v53 = vpop.f32.mrf.mxu3  ;;  %v498_v54 = vpop.f32.mrf.mxu0 }
  0xf0   : > { %v643_v55 = vadd.f32 %v642_v53, %v1851_v46  ;;  %v547_v57 = vpop.f32.mrf.mxu1  ;;  %v499_v63 = vadd.f32 %v498_v54, %v1849_v45 }
  0xf1   : > { %v1493_v58 = vpack.c.bf16 %v594_v52, %v592_v51  ;;  %v548_v59 = vadd.f32 %v547_v57, %v1842_v41 }
  0xf2   : > { %1376 = vst.msk [vmem:[%s1845_s17 + $0xb8] sm:$0xff] %vm697_vm0, %v643_v55 }
  0xf3   : > { %1525 = vst [vmem:[%s1863_s20 + $0x58] sm:$0xff] %v1493_v58  }
  0xf4   : > { %706 = vst.msk [vmem:[%s1845_s17 + $0x40] sm:$0xff] %vm697_vm0, %v548_v59 }
  0xf6   : > { %v596_v60 = vpop.f32.mrf.mxu2 }
  0xf7   : > { %v645_v61 = vpop.f32.mrf.mxu3  ;;  %v500_v62 = vpop.f32.mrf.mxu0  ;;  %v597_v6 = vadd.f32 %v596_v60, %v1859_v56 }
  0xf8   : > { %v646_v0 = vadd.f32 %v645_v61, %v1851_v46  ;;  %v501_v1 = vadd.f32 %v500_v62, %v1849_v45  ;;  %v549_v2 = vpop.f32.mrf.mxu1 }
  0xf9   : > { %v550_v3 = vadd.f32 %v549_v2, %v1842_v41 }
  0xfa   : > { %1377 = vst.msk [vmem:[%s1845_s17 + $0xc0] sm:$0xff] %vm697_vm0, %v646_v0  ;;  %v1458_v4 = vpack.c.bf16 %v501_v1, %v499_v63 }
  0xfb   : > { %707 = vst.msk [vmem:[%s1845_s17 + $0x48] sm:$0xff] %vm697_vm0, %v550_v3 }
  0xfc   : > { %1518 = vst [vmem:[%s1863_s20 + $0x20] sm:$0xff] %v1458_v4  }
  0xfe   : > { %v598_v5 = vpop.f32.mrf.mxu2 }
  0xff   : > { %v599_v7 = vadd.f32 %v598_v5, %v1859_v56  ;;  %v647_v8 = vpop.f32.mrf.mxu3  ;;  %v503_v9 = vpop.f32.mrf.mxu0 }
 0x100   : > { %v648_v10 = vadd.f32 %v647_v8, %v1851_v46  ;;  %v552_v11 = vpop.f32.mrf.mxu1  ;;  %v504_v17 = vadd.f32 %v503_v9, %v1849_v45  ;;  %v826_v9 = vld [vmem:[%s1863_s20 + $0x40] sm:$0xff] (%p1628_p4)  }
 0x101   : > { %v1498_v12 = vpack.c.bf16 %v599_v7, %v597_v6  ;;  %v553_v13 = vadd.f32 %v552_v11, %v1842_v41  ;;  %v834_v11 = vld [vmem:[%s1863_s20 + $0x50] sm:$0xff] (%p1628_p4)   ;;  %827 = vst [vmem:[%s777_s26 + $0x80] sm:$0xff] (%p1628_p4), %v826_v9  }
 0x102   : > { %1378 = vst.msk [vmem:[%s1845_s17 + $0xc8] sm:$0xff] %vm697_vm0, %v648_v10  ;;  %v830_v10 = vld [vmem:[%s1863_s20 + $0x48] sm:$0xff] (%p1628_p4)  }
 0x103   : > { %1526 = vst [vmem:[%s1863_s20 + $0x60] sm:$0xff] %v1498_v12   ;;  %v810_v5 = vld [vmem:[%s1863_s20 + $0x20] sm:$0xff] (%p1628_p4)   ;;  %v838_v12 = vld [vmem:[%s1863_s20 + $0x58] sm:$0xff] (%p1628_p4)  }
 0x104   : > { %708 = vst.msk [vmem:[%s1845_s17 + $0x50] sm:$0xff] %vm697_vm0, %v553_v13 }
 0x105   : > { %811 = vst [vmem:[%s777_s26 + $0x20] sm:$0xff] (%p1628_p4), %v810_v5  }
 0x106   : > { %v601_v14 = vpop.f32.mrf.mxu2  ;;  %831 = vst [vmem:[%s777_s26 + $0x88] sm:$0xff] (%p1628_p4), %v830_v10  }
 0x107   : > { %v650_v15 = vpop.f32.mrf.mxu3  ;;  %v505_v16 = vpop.f32.mrf.mxu0  ;;  %v602_v24 = vadd.f32 %v601_v14, %v1859_v56  ;;  %835 = vst [vmem:[%s777_s26 + $0x90] sm:$0xff] (%p1628_p4), %v834_v11  }
 0x108   : > { %v651_v18 = vadd.f32 %v650_v15, %v1851_v46  ;;  %v506_v19 = vadd.f32 %v505_v16, %v1849_v45  ;;  %v554_v20 = vpop.f32.mrf.mxu1  ;;  %839 = vst [vmem:[%s777_s26 + $0x98] sm:$0xff] (%p1628_p4), %v838_v12  }
 0x109   : > { %v555_v21 = vadd.f32 %v554_v20, %v1842_v41 }
 0x10a   : > { %1379 = vst.msk [vmem:[%s1845_s17 + $0xd0] sm:$0xff] %vm697_vm0, %v651_v18  ;;  %v1463_v22 = vpack.c.bf16 %v506_v19, %v504_v17  ;;  %v842_v13 = vld [vmem:[%s1863_s20 + $0x60] sm:$0xff] (%p1628_p4)  }
 0x10b   : > { %709 = vst.msk [vmem:[%s1845_s17 + $0x58] sm:$0xff] %vm697_vm0, %v555_v21 }
 0x10c   : > { %1519 = vst [vmem:[%s1863_s20 + $0x28] sm:$0xff] %v1463_v22  }
 0x10d   : > { %843 = vst [vmem:[%s777_s26 + $0xa0] sm:$0xff] (%p1628_p4), %v842_v13  }
 0x10e   : > { %v603_v23 = vpop.f32.mrf.mxu2 }
 0x10f   : > { %v604_v25 = vadd.f32 %v603_v23, %v1859_v56  ;;  %v652_v26 = vpop.f32.mrf.mxu3  ;;  %v508_v27 = vpop.f32.mrf.mxu0 }
 0x110   : > { %v653_v28 = vadd.f32 %v652_v26, %v1851_v46  ;;  %v557_v29 = vpop.f32.mrf.mxu1  ;;  %v509_v35 = vadd.f32 %v508_v27, %v1849_v45 }
 0x111   : > { %v1503_v30 = vpack.c.bf16 %v604_v25, %v602_v24  ;;  %v558_v31 = vadd.f32 %v557_v29, %v1842_v41 }
 0x112   : > { %1380 = vst.msk [vmem:[%s1845_s17 + $0xd8] sm:$0xff] %vm697_vm0, %v653_v28 }
 0x113   : > { %1527 = vst [vmem:[%s1863_s20 + $0x68] sm:$0xff] %v1503_v30   ;;  %v814_v6 = vld [vmem:[%s1863_s20 + $0x28] sm:$0xff] (%p1628_p4)  }
 0x114   : > { %710 = vst.msk [vmem:[%s1845_s17 + $0x60] sm:$0xff] %vm697_vm0, %v558_v31 }
 0x115   : > { %815 = vst [vmem:[%s777_s26 + $0x28] sm:$0xff] (%p1628_p4), %v814_v6  }
 0x116   : > { %v606_v32 = vpop.f32.mrf.mxu2 }
 0x117   : > { %v655_v33 = vpop.f32.mrf.mxu3  ;;  %v510_v34 = vpop.f32.mrf.mxu0  ;;  %v607_v43 = vadd.f32 %v606_v32, %v1859_v56 }
 0x118   : > { %v656_v36 = vadd.f32 %v655_v33, %v1851_v46  ;;  %v511_v37 = vadd.f32 %v510_v34, %v1849_v45  ;;  %v559_v38 = vpop.f32.mrf.mxu1 }
 0x119   : > { %v560_v39 = vadd.f32 %v559_v38, %v1842_v41 }
 0x11a   : > { %1381 = vst.msk [vmem:[%s1845_s17 + $0xe0] sm:$0xff] %vm697_vm0, %v656_v36  ;;  %v1468_v40 = vpack.c.bf16 %v511_v37, %v509_v35  ;;  %v846_v14 = vld [vmem:[%s1863_s20 + $0x68] sm:$0xff] (%p1628_p4)  }
 0x11b   : > { %711 = vst.msk [vmem:[%s1845_s17 + $0x68] sm:$0xff] %vm697_vm0, %v560_v39 }
 0x11c   : > { %1520 = vst [vmem:[%s1863_s20 + $0x30] sm:$0xff] %v1468_v40  }
 0x11d   : > { %847 = vst [vmem:[%s777_s26 + $0xa8] sm:$0xff] (%p1628_p4), %v846_v14  }
 0x11e   : > { %v608_v42 = vpop.f32.mrf.mxu2 }
 0x11f   : > { %v609_v44 = vadd.f32 %v608_v42, %v1859_v56  ;;  %v657_v47 = vpop.f32.mrf.mxu3  ;;  %v513_v48 = vpop.f32.mrf.mxu0 }
 0x120   : > { %v658_v49 = vadd.f32 %v657_v47, %v1851_v46  ;;  %v562_v50 = vpop.f32.mrf.mxu1  ;;  %v514_v57 = vadd.f32 %v513_v48, %v1849_v45 }
 0x121   : > { %v1508_v51 = vpack.c.bf16 %v609_v44, %v607_v43  ;;  %v563_v52 = vadd.f32 %v562_v50, %v1842_v41 }
 0x122   : > { %1382 = vst.msk [vmem:[%s1845_s17 + $0xe8] sm:$0xff] %vm697_vm0, %v658_v49 }
 0x123   : > { %1528 = vst [vmem:[%s1863_s20 + $0x70] sm:$0xff] %v1508_v51   ;;  %v818_v7 = vld [vmem:[%s1863_s20 + $0x30] sm:$0xff] (%p1628_p4)  }
 0x124   : > { %712 = vst.msk [vmem:[%s1845_s17 + $0x70] sm:$0xff] %vm697_vm0, %v563_v52 }
 0x125   : > { %819 = vst [vmem:[%s777_s26 + $0x30] sm:$0xff] (%p1628_p4), %v818_v7  }
 0x126   : > { %v611_v53 = vpop.f32.mrf.mxu2 }
 0x127   : > { %v660_v54 = vpop.f32.mrf.mxu3  ;;  %v515_v55 = vpop.f32.mrf.mxu0  ;;  %v612_v0 = vadd.f32 %v611_v53, %v1859_v56 }
 0x128   : > { %v661_v58 = vadd.f32 %v660_v54, %v1851_v46  ;;  %v516_v59 = vadd.f32 %v515_v55, %v1849_v45  ;;  %v564_v60 = vpop.f32.mrf.mxu1  ;;  %v798_v45 = vld [vmem:[%s1863_s20 + $0x8] sm:$0xff] (%p1628_p4)  }
 0x129   : > { %v565_v61 = vadd.f32 %v564_v60, %v1842_v41  ;;  %v794_v41 = vld [vmem:[%s1863_s20] sm:$0xff] (%p1628_p4)   ;;  %799 = vst [vmem:[%s777_s26 + $0x8] sm:$0xff] (%p1628_p4), %v798_v45  }
 0x12a   : > { %1383 = vst.msk [vmem:[%s1845_s17 + $0xf0] sm:$0xff] %vm697_vm0, %v661_v58  ;;  %v1473_v62 = vpack.c.bf16 %v516_v59, %v514_v57  ;;  %v850_v15 = vld [vmem:[%s1863_s20 + $0x70] sm:$0xff] (%p1628_p4)  }
 0x12b   : > { %713 = vst.msk [vmem:[%s1845_s17 + $0x78] sm:$0xff] %vm697_vm0, %v565_v61 }
 0x12c   : > { %1521 = vst [vmem:[%s1863_s20 + $0x38] sm:$0xff] %v1473_v62  }
 0x12d   : > { %795 = vst [vmem:[%s777_s26] sm:$0xff] (%p1628_p4), %v794_v41  }
 0x12e   : > { %v613_v63 = vpop.f32.mrf.mxu2  ;;  %851 = vst [vmem:[%s777_s26 + $0xb0] sm:$0xff] (%p1628_p4), %v850_v15  }
 0x12f   : > { %v614_v1 = vadd.f32 %v613_v63, %v1859_v56  ;;  %v662_v2 = vpop.f32.mrf.mxu3  ;;  %774 = sbr.rel (!%p1628_p4) target bundleno = 316 (0x13c), region = 36  ;;  %v806_v56 = vld [vmem:[%s1863_s20 + $0x18] sm:$0xff] (%p1628_p4)  }
 0x130   : > { %v663_v3 = vadd.f32 %v662_v2, %v1851_v46  ;;  %v802_v46 = vld [vmem:[%s1863_s20 + $0x10] sm:$0xff] (%p1628_p4)   ;;  %807 = vst [vmem:[%s777_s26 + $0x18] sm:$0xff] (%p1628_p4), %v806_v56  }
 0x131   : > { %v1513_v4 = vpack.c.bf16 %v614_v1, %v612_v0  ;;  %803 = vst [vmem:[%s777_s26 + $0x10] sm:$0xff] (%p1628_p4), %v802_v46  }
 0x132   : > { %1384 = vst.msk [vmem:[%s1845_s17 + $0xf8] sm:$0xff] %vm697_vm0, %v663_v3 }
 0x133   : > { %1529 = vst [vmem:[%s1863_s20 + $0x78] sm:$0xff] %v1513_v4   ;;  %v822_v8 = vld [vmem:[%s1863_s20 + $0x38] sm:$0xff] (%p1628_p4)  }
 0x134   : > { %823 = vst [vmem:[%s777_s26 + $0x38] sm:$0xff] %v822_v8  }
 0x13a   : > { %v854_v16 = vld [vmem:[%s1863_s20 + $0x78] sm:$0xff]  }
 0x13b   : > { %855 = vst [vmem:[%s777_s26 + $0xb8] sm:$0xff] %v854_v16  }
 0x13c PF: > { %945 = sbr.rel (!%p1628_p4) target bundleno = 350 (0x15e), region = 77  ;;  %s1434_s27 = sshll.u32 (%p1628_p4), %s1616_s18, 7  ;;  %v1039_v17 = vld [vmem:[%s1845_s17] sm:$0xff] (%p1628_p4)  ;;  %v1041_v18 = vld [vmem:[%s1845_s17 + $0x8] sm:$0xff] (%p1628_p4)  ;;  %v1043_v19 = vld [vmem:[%s1845_s17 + $0x10] sm:$0xff] (%p1628_p4) }
 0x13d   : > { %s2028_s30 = scalar_lea.vmem (%p1628_p4), %s2106_s4, %s1434_s27  ;;  %v1045_v20 = vld [vmem:[%s1845_s17 + $0x18] sm:$0xff] (%p1628_p4)  ;;  %v1047_v21 = vld [vmem:[%s1845_s17 + $0x20] sm:$0xff] (%p1628_p4)  ;;  %v1049_v22 = vld [vmem:[%s1845_s17 + $0x28] sm:$0xff] (%p1628_p4) }
 0x13e   : > { %1040 = vst [vmem:[%s2028_s30] sm:$0xff] (%p1628_p4), %v1039_v17  ;;  %v1051_v23 = vld [vmem:[%s1845_s17 + $0x30] sm:$0xff] (%p1628_p4)  ;;  %v1053_v24 = vld [vmem:[%s1845_s17 + $0x38] sm:$0xff] (%p1628_p4)  ;;  %v1055_v25 = vld [vmem:[%s1845_s17 + $0x40] sm:$0xff] (%p1628_p4) }
 0x13f   : > { %1042 = vst [vmem:[%s2028_s30 + $0x8] sm:$0xff] (%p1628_p4), %v1041_v18  ;;  %v1057_v26 = vld [vmem:[%s1845_s17 + $0x48] sm:$0xff] (%p1628_p4)  ;;  %v1059_v27 = vld [vmem:[%s1845_s17 + $0x50] sm:$0xff] (%p1628_p4)  ;;  %v1061_v28 = vld [vmem:[%s1845_s17 + $0x58] sm:$0xff] (%p1628_p4) }
 0x140   : > { %1044 = vst [vmem:[%s2028_s30 + $0x10] sm:$0xff] (%p1628_p4), %v1043_v19  ;;  %v1063_v29 = vld [vmem:[%s1845_s17 + $0x60] sm:$0xff] (%p1628_p4)  ;;  %v1065_v30 = vld [vmem:[%s1845_s17 + $0x68] sm:$0xff] (%p1628_p4)  ;;  %v1067_v31 = vld [vmem:[%s1845_s17 + $0x70] sm:$0xff] (%p1628_p4) }
 0x141   : > { %1046 = vst [vmem:[%s2028_s30 + $0x18] sm:$0xff] %v1045_v20  ;;  %v1069_v32 = vld [vmem:[%s1845_s17 + $0x78] sm:$0xff]  ;;  %v1071_v33 = vld [vmem:[%s1845_s17 + $0x80] sm:$0xff]  ;;  %v1073_v34 = vld [vmem:[%s1845_s17 + $0x88] sm:$0xff] }
 0x142   : > { %1048 = vst [vmem:[%s2028_s30 + $0x20] sm:$0xff] %v1047_v21  ;;  %v1075_v35 = vld [vmem:[%s1845_s17 + $0x90] sm:$0xff]  ;;  %v1077_v36 = vld [vmem:[%s1845_s17 + $0x98] sm:$0xff]  ;;  %v1079_v37 = vld [vmem:[%s1845_s17 + $0xa0] sm:$0xff] }
 0x143   : > { %1050 = vst [vmem:[%s2028_s30 + $0x28] sm:$0xff] %v1049_v22  ;;  %v1081_v38 = vld [vmem:[%s1845_s17 + $0xa8] sm:$0xff]  ;;  %v1083_v39 = vld [vmem:[%s1845_s17 + $0xb0] sm:$0xff]  ;;  %v1085_v40 = vld [vmem:[%s1845_s17 + $0xb8] sm:$0xff] }
 0x144   : > { %1052 = vst [vmem:[%s2028_s30 + $0x30] sm:$0xff] %v1051_v23  ;;  %v1087_v42 = vld [vmem:[%s1845_s17 + $0xc0] sm:$0xff]  ;;  %v1089_v43 = vld [vmem:[%s1845_s17 + $0xc8] sm:$0xff]  ;;  %v1091_v44 = vld [vmem:[%s1845_s17 + $0xd0] sm:$0xff] }
 0x145   : > { %1054 = vst [vmem:[%s2028_s30 + $0x38] sm:$0xff] %v1053_v24  ;;  %v1093_v47 = vld [vmem:[%s1845_s17 + $0xd8] sm:$0xff]  ;;  %v1095_v48 = vld [vmem:[%s1845_s17 + $0xe0] sm:$0xff]  ;;  %v1097_v49 = vld [vmem:[%s1845_s17 + $0xe8] sm:$0xff] }
 0x146   : > { %1056 = vst [vmem:[%s2028_s30 + $0x40] sm:$0xff] %v1055_v25  ;;  %v1099_v50 = vld [vmem:[%s1845_s17 + $0xf0] sm:$0xff]  ;;  %v1101_v51 = vld [vmem:[%s1845_s17 + $0xf8] sm:$0xff] }
 0x147   : > { %1058 = vst [vmem:[%s2028_s30 + $0x48] sm:$0xff] %v1057_v26 }
 0x148   : > { %1060 = vst [vmem:[%s2028_s30 + $0x50] sm:$0xff] %v1059_v27 }
 0x149   : > { %1062 = vst [vmem:[%s2028_s30 + $0x58] sm:$0xff] %v1061_v28 }
 0x14a   : > { %1064 = vst [vmem:[%s2028_s30 + $0x60] sm:$0xff] %v1063_v29 }
 0x14b   : > { %1066 = vst [vmem:[%s2028_s30 + $0x68] sm:$0xff] %v1065_v30 }
 0x14c   : > { %1068 = vst [vmem:[%s2028_s30 + $0x70] sm:$0xff] %v1067_v31 }
 0x14d   : > { %1070 = vst [vmem:[%s2028_s30 + $0x78] sm:$0xff] %v1069_v32 }
 0x14e   : > { %1072 = vst [vmem:[%s2028_s30 + $0x100] sm:$0xff] %v1071_v33 }
 0x14f   : > { %1074 = vst [vmem:[%s2028_s30 + $0x108] sm:$0xff] %v1073_v34 }
 0x150   : > { %1076 = vst [vmem:[%s2028_s30 + $0x110] sm:$0xff] %v1075_v35 }
 0x151   : > { %1078 = vst [vmem:[%s2028_s30 + $0x118] sm:$0xff] %v1077_v36 }
 0x152   : > { %1080 = vst [vmem:[%s2028_s30 + $0x120] sm:$0xff] %v1079_v37 }
 0x153   : > { %1082 = vst [vmem:[%s2028_s30 + $0x128] sm:$0xff] %v1081_v38 }
 0x154   : > { %1084 = vst [vmem:[%s2028_s30 + $0x130] sm:$0xff] %v1083_v39 }
 0x155   : > { %1086 = vst [vmem:[%s2028_s30 + $0x138] sm:$0xff] %v1085_v40 }
 0x156   : > { %1088 = vst [vmem:[%s2028_s30 + $0x140] sm:$0xff] %v1087_v42 }
 0x157   : > { %1090 = vst [vmem:[%s2028_s30 + $0x148] sm:$0xff] %v1089_v43 }
 0x158   : > { %1092 = vst [vmem:[%s2028_s30 + $0x150] sm:$0xff] %v1091_v44 }
 0x159   : > { %1094 = vst [vmem:[%s2028_s30 + $0x158] sm:$0xff] %v1093_v47 }
 0x15a   : > { %1096 = vst [vmem:[%s2028_s30 + $0x160] sm:$0xff] %v1095_v48 }
 0x15b   : > { %1098 = vst [vmem:[%s2028_s30 + $0x168] sm:$0xff] %v1097_v49 }
 0x15c   : > { %1100 = vst [vmem:[%s2028_s30 + $0x170] sm:$0xff] %v1099_v50 }
 0x15d   : > { %1102 = vst [vmem:[%s2028_s30 + $0x178] sm:$0xff] %v1101_v51 }
 0x15e PF: > { %p12_p8 = scmp.ge.s32.totalorder %s1618_s19, 4   ;;  %s2108_s15 = smov %s1572_s16 }
 0x15f   : > { %s2109_s16 = smov %s1626_s22  ;;  %s2110_s17 = smov %s1618_s19 }
 0x160   :  { %14 = sbr.rel (!%p12_p8) target bundleno = 2 (0x2), region = 155 }

// kernel: graph_attention_forward.3
= control target key start
LH: loop header
LB: loop body
LE: loop exit
PB: predicated region body
PF: predicated region fallthrough
CT: control target
= control target key end

     0   :  { %s5297_s0 = inlined_call_operand.vmem [shape: f32[2,256,1], index: 0, kind: input, shape index: {}]   ;;  %s5298_s1 = inlined_call_operand.vmem [shape: f32[2,1,256], index: 1, kind: input, shape index: {}]   ;;  %s5299_s2 = inlined_call_operand.vmem [shape: bf16[2,256,128], index: 2, kind: input, shape index: {}]   ;;  %s5300_s3 = inlined_call_operand.vmem [shape: s8[256,256], index: 3, kind: input, shape index: {}]   ;;  %s5301_s4 = inlined_call_operand.vmem [shape: f32[2,256,128], index: 4, kind: output, shape index: {}]  }
   0x1   :  { %5317 = sst [smem:[#allocation24_spill]] %s5297_s0 }
   0x2   :  { %s3668_s15 = smov 0   ;;  %s3670_s16 = smov 0  }
   0x3   :  { %s3672_s17 = smov 0   ;;  %s3674_s18 = smov 0  }
   0x4   :  { %s3676_s19 = smov 0   ;;  %s3678_s20 = smov 0  }
   0x5   :  { %s3680_s21 = smov 0   ;;  %s3682_s22 = smov 0  }
   0x6   :  { %s3684_s23 = smov 0   ;;  %s3686_s24 = smov 0  }
   0x7   :  { %s3688_s25 = smov 0  }
   0x8 LB: > { %s3034_s26 = sadd.s32 4294967295, %s3637_s25   ;;  %s23_s27 = sadd.s32 1, %s3629_s23  ;;  %s3637_s25 = sphi %s3688_s25, %s14_s25   ;;  %s3633_s24 = sphi %s3686_s24, %s5397_s24   ;;  %s3629_s23 = sphi %s3684_s23, %s5396_s23   ;;  %s3625_s22 = sphi %s3682_s22, %s5395_s22   ;;  %s3621_s21 = sphi %s3680_s21, %s5394_s21   ;;  %s3617_s20 = sphi %s3678_s20, %s5393_s20   ;;  %s3613_s19 = sphi %s3676_s19, %s5392_s19   ;;  %s3609_s18 = sphi %s3674_s18, %s5391_s18   ;;  %s3605_s17 = sphi %s3672_s17, %s5390_s17   ;;  %s3601_s16 = sphi %s3670_s16, %s5389_s16   ;;  %s3597_s15 = sphi %s3668_s15, %s5388_s15  }
   0x9   : > { %p24_p0 = scmp.ge.s32.totalorder %s23_s27, 2  ;;  %s26_s28 = sadd.s32 1, %s3633_s24 }
   0xa   : > { %s33_s29 = sadd.s32 1, %s3617_s20  ;;  %p40_p1 = scmp.ne.s32.totalorder %s3617_s20, %s3613_s19 }
   0xb   : > { %s5399_s27 = smov (%p24_p0, %s23_s27), 0  ;;  %s5401_s28 = smov (!%p24_p0, %s26_s28), %s3633_s24 }
   0xc   : > { %5318 = sst [smem:[#allocation8_spill]] %s5399_s27  ;;  %p41_p2 = scmp.eq.s32.totalorder %s3637_s25, 0 }
   0xd   : > { %s56_s30 = ssub.s32 %s3629_s23, %s5399_s27  ;;  %p28_p3 = scmp.ge.s32.totalorder %s5401_s28, 2 }
   0xe   : > { %p57_p4 = scmp.eq.s32.totalorder %s56_s30, 0  ;;  %p3740_p5 = por %p41_p2, %p40_p1 }
   0xf   : > { %s59_s6 = sadd.s32 1, %s3609_s18  ;;  %s5403_s28 = smov (%p28_p3, %s5401_s28), 0 }
  0x10   : > { %5320 = sst [smem:[#allocation9_spill]] %s5403_s28  ;;  %s30_s8 = ssub.s32 %s3633_s24, %s5403_s28 }
  0x11   : > { %s3748_s7 = scalar_select %p57_p4, %s3609_s18, %s59_s6  }
  0x12   : > { %p66_p6 = scmp.ne.s32.totalorder %s3609_s18, %s3605_s17  ;;  %p31_p7 = scmp.eq.s32.totalorder %s30_s8, 0 }
  0x13   : > { %s110_s9 = sor.u32 %s56_s30, %s30_s8  ;;  %s113_s12 = sadd.s32 1, %s3601_s16 }
  0x14   : > { %p3756_p8 = por %p66_p6, %p41_p2  ;;  %p111_p9 = scmp.eq.s32.totalorder %s110_s9, 0 }
  0x15   : > { %s3761_s11 = scalar_select %p31_p7, %s3617_s20, %s33_s29  }
  0x16   : > { %p120_p10 = scmp.ne.s32.totalorder %s3601_s16, %s3597_s15  ;;  %p150_p12 = scmp.eq.s32.totalorder %s3034_s26, 3 }
  0x17   : > { %5322 = sst [smem:[#allocation10_spill]] %s3761_s11  ;;  %p3037_p0 = scmp.ge.s32.totalorder %s3637_s25, 4 }
  0x18   : > { %s3767_s13 = scalar_select %p111_p9, %s3601_s16, %s113_s12  }
  0x19   : > { %p3771_p11 = por %p120_p10, %p41_p2  ;;  %p3778_p13 = por %p150_p12, %p40_p1 }
  0x1a   : > { %172 = sbr.rel (%p3037_p0) target bundleno = 108 (0x6c), region = 16 }
  0x1f   : > { %175 = sbr.rel (!%p3740_p5) target bundleno = 73 (0x49), region = 20  ;;  %s177_s29 = sand.u32 (%p3740_p5), 1, %s3617_s20  }
  0x20   : > { %s3223_s6 = sshll.u32 (%p3740_p5), %s3633_s24, 7  ;;  %s3038_s8 = sshll.u32 (%p3740_p5), %s177_s29, 8 }
  0x21   : > { %s5325_s0 = sld [smem:[#allocation24_spill]] (%p3740_p5)  ;;  %s3795_s5 = scalar_lea.vmem (%p3740_p5), [#allocation3], %s3038_s8 }
  0x27   : > { %s3790_s26 = scalar_lea.vmem %s5325_s0, %s3223_s6 }
  0x28   : > { %v273_v0 = vld [vmem:[%s3790_s26] sm:$0xff]  ;;  %v275_v1 = vld [vmem:[%s3790_s26 + $0x8] sm:$0xff]  ;;  %v277_v2 = vld [vmem:[%s3790_s26 + $0x10] sm:$0xff] }
  0x29   : > { %274 = vst [vmem:[%s3795_s5] sm:$0xff] %v273_v0  ;;  %v279_v3 = vld [vmem:[%s3790_s26 + $0x18] sm:$0xff]  ;;  %v281_v4 = vld [vmem:[%s3790_s26 + $0x20] sm:$0xff]  ;;  %v283_v5 = vld [vmem:[%s3790_s26 + $0x28] sm:$0xff] }
  0x2a   : > { %276 = vst [vmem:[%s3795_s5 + $0x8] sm:$0xff] %v275_v1  ;;  %v285_v6 = vld [vmem:[%s3790_s26 + $0x30] sm:$0xff]  ;;  %v287_v7 = vld [vmem:[%s3790_s26 + $0x38] sm:$0xff]  ;;  %v289_v8 = vld [vmem:[%s3790_s26 + $0x40] sm:$0xff] }
  0x2b   : > { %278 = vst [vmem:[%s3795_s5 + $0x10] sm:$0xff] %v277_v2  ;;  %v291_v9 = vld [vmem:[%s3790_s26 + $0x48] sm:$0xff]  ;;  %v293_v10 = vld [vmem:[%s3790_s26 + $0x50] sm:$0xff]  ;;  %v295_v11 = vld [vmem:[%s3790_s26 + $0x58] sm:$0xff] }
  0x2c   : > { %280 = vst [vmem:[%s3795_s5 + $0x18] sm:$0xff] %v279_v3  ;;  %v297_v12 = vld [vmem:[%s3790_s26 + $0x60] sm:$0xff]  ;;  %v299_v13 = vld [vmem:[%s3790_s26 + $0x68] sm:$0xff]  ;;  %v301_v14 = vld [vmem:[%s3790_s26 + $0x70] sm:$0xff] }
  0x2d   : > { %282 = vst [vmem:[%s3795_s5 + $0x20] sm:$0xff] %v281_v4  ;;  %v303_v15 = vld [vmem:[%s3790_s26 + $0x78] sm:$0xff]  ;;  %v305_v16 = vld [vmem:[%s3790_s26 + $0x100] sm:$0xff]  ;;  %v307_v17 = vld [vmem:[%s3790_s26 + $0x108] sm:$0xff] }
  0x2e   : > { %284 = vst [vmem:[%s3795_s5 + $0x28] sm:$0xff] %v283_v5  ;;  %v309_v18 = vld [vmem:[%s3790_s26 + $0x110] sm:$0xff]  ;;  %v311_v19 = vld [vmem:[%s3790_s26 + $0x118] sm:$0xff]  ;;  %v313_v20 = vld [vmem:[%s3790_s26 + $0x120] sm:$0xff] }
  0x2f   : > { %286 = vst [vmem:[%s3795_s5 + $0x30] sm:$0xff] %v285_v6  ;;  %v315_v21 = vld [vmem:[%s3790_s26 + $0x128] sm:$0xff]  ;;  %v317_v22 = vld [vmem:[%s3790_s26 + $0x130] sm:$0xff]  ;;  %v319_v23 = vld [vmem:[%s3790_s26 + $0x138] sm:$0xff] }
  0x30   : > { %288 = vst [vmem:[%s3795_s5 + $0x38] sm:$0xff] %v287_v7  ;;  %v321_v24 = vld [vmem:[%s3790_s26 + $0x140] sm:$0xff]  ;;  %v323_v25 = vld [vmem:[%s3790_s26 + $0x148] sm:$0xff]  ;;  %v325_v26 = vld [vmem:[%s3790_s26 + $0x150] sm:$0xff] }
  0x31   : > { %290 = vst [vmem:[%s3795_s5 + $0x40] sm:$0xff] %v289_v8  ;;  %v327_v27 = vld [vmem:[%s3790_s26 + $0x158] sm:$0xff]  ;;  %v329_v28 = vld [vmem:[%s3790_s26 + $0x160] sm:$0xff]  ;;  %v331_v29 = vld [vmem:[%s3790_s26 + $0x168] sm:$0xff] }
  0x32   : > { %292 = vst [vmem:[%s3795_s5 + $0x48] sm:$0xff] %v291_v9  ;;  %v333_v30 = vld [vmem:[%s3790_s26 + $0x170] sm:$0xff]  ;;  %v335_v31 = vld [vmem:[%s3790_s26 + $0x178] sm:$0xff] }
  0x33   : > { %294 = vst [vmem:[%s3795_s5 + $0x50] sm:$0xff] %v293_v10 }
  0x34   : > { %296 = vst [vmem:[%s3795_s5 + $0x58] sm:$0xff] %v295_v11 }
  0x35   : > { %298 = vst [vmem:[%s3795_s5 + $0x60] sm:$0xff] %v297_v12 }
  0x36   : > { %300 = vst [vmem:[%s3795_s5 + $0x68] sm:$0xff] %v299_v13 }
  0x37   : > { %302 = vst [vmem:[%s3795_s5 + $0x70] sm:$0xff] %v301_v14 }
  0x38   : > { %304 = vst [vmem:[%s3795_s5 + $0x78] sm:$0xff] %v303_v15 }
  0x39   : > { %306 = vst [vmem:[%s3795_s5 + $0x80] sm:$0xff] %v305_v16 }
  0x3a   : > { %308 = vst [vmem:[%s3795_s5 + $0x88] sm:$0xff] %v307_v17 }
  0x3b   : > { %310 = vst [vmem:[%s3795_s5 + $0x90] sm:$0xff] %v309_v18 }
  0x3c   : > { %312 = vst [vmem:[%s3795_s5 + $0x98] sm:$0xff] %v311_v19 }
  0x3d   : > { %314 = vst [vmem:[%s3795_s5 + $0xa0] sm:$0xff] %v313_v20 }
  0x3e   : > { %316 = vst [vmem:[%s3795_s5 + $0xa8] sm:$0xff] %v315_v21 }
  0x3f   : > { %318 = vst [vmem:[%s3795_s5 + $0xb0] sm:$0xff] %v317_v22 }
  0x40   : > { %320 = vst [vmem:[%s3795_s5 + $0xb8] sm:$0xff] %v319_v23 }
  0x41   : > { %322 = vst [vmem:[%s3795_s5 + $0xc0] sm:$0xff] %v321_v24 }
  0x42   : > { %324 = vst [vmem:[%s3795_s5 + $0xc8] sm:$0xff] %v323_v25 }
  0x43   : > { %326 = vst [vmem:[%s3795_s5 + $0xd0] sm:$0xff] %v325_v26 }
  0x44   : > { %328 = vst [vmem:[%s3795_s5 + $0xd8] sm:$0xff] %v327_v27 }
  0x45   : > { %330 = vst [vmem:[%s3795_s5 + $0xe0] sm:$0xff] %v329_v28 }
  0x46   : > { %332 = vst [vmem:[%s3795_s5 + $0xe8] sm:$0xff] %v331_v29 }
  0x47   : > { %334 = vst [vmem:[%s3795_s5 + $0xf0] sm:$0xff] %v333_v30 }
  0x48   : > { %336 = vst [vmem:[%s3795_s5 + $0xf8] sm:$0xff] %v335_v31 }
  0x49 PF: > { %342 = sbr.rel (!%p3756_p8) target bundleno = 78 (0x4e), region = 58  ;;  %s344_s29 = sand.u32 (%p3756_p8), 1, %s3609_s18  }
  0x4a   : > { %s347_s9 = scalar_lea.vmem (%p3756_p8), %s5298_s1, %s3629_s23  ;;  %s3041_s12 = sshll.u32 (%p3756_p8), %s344_s29, 1 }
  0x4b   : > { %v364_v32 = vld [vmem:[%s347_s9] sm:$0x1] (%p3756_p8)  ;;  %v366_v33 = vld [vmem:[%s347_s9 + $0x2] sm:$0x1] (%p3756_p8)  ;;  %s346_s0 = scalar_lea.vmem (%p3756_p8), [#allocation4], %s3041_s12 }
  0x4c   : > { %365 = vst [vmem:[%s346_s0] sm:$0x1] (%p3756_p8), %v364_v32 }
  0x4d   : > { %367 = vst [vmem:[%s346_s0 + $0x1] sm:$0x1] (%p3756_p8), %v366_v33 }
  0x4e PF: > { %387 = sbr.rel (!%p3756_p8) target bundleno = 98 (0x62), region = 92  ;;  %s389_s26 = sand.u32 (%p3756_p8), 1, %s3609_s18  }
  0x4f   : > { %s3224_s5 = sshll.u32 (%p3756_p8), %s3629_s23, 6  ;;  %s3042_s28 = sshll.u32 (%p3756_p8), %s389_s26, 7 }
  0x50   : > { %s3872_s6 = scalar_lea.vmem (%p3756_p8), %s5299_s2, %s3224_s5  ;;  %s391_s0 = scalar_lea.vmem (%p3756_p8), [#allocation5], %s3042_s28 }
  0x51   : > { %v411_v34 = vld [vmem:[%s3872_s6] sm:$0xff] (%p3756_p8)   ;;  %v415_v35 = vld [vmem:[%s3872_s6 + $0x8] sm:$0xff] (%p3756_p8)   ;;  %v419_v36 = vld [vmem:[%s3872_s6 + $0x10] sm:$0xff] (%p3756_p8)  }
  0x52   : > { %412 = vst [vmem:[%s391_s0] sm:$0xff] (%p3756_p8), %v411_v34   ;;  %v423_v37 = vld [vmem:[%s3872_s6 + $0x18] sm:$0xff] (%p3756_p8)   ;;  %v427_v38 = vld [vmem:[%s3872_s6 + $0x20] sm:$0xff] (%p3756_p8)   ;;  %v431_v39 = vld [vmem:[%s3872_s6 + $0x28] sm:$0xff] (%p3756_p8)  }
  0x53   : > { %416 = vst [vmem:[%s391_s0 + $0x8] sm:$0xff] %v415_v35   ;;  %v435_v40 = vld [vmem:[%s3872_s6 + $0x30] sm:$0xff]   ;;  %v439_v41 = vld [vmem:[%s3872_s6 + $0x38] sm:$0xff]   ;;  %v443_v42 = vld [vmem:[%s3872_s6 + $0x80] sm:$0xff]  }
  0x54   : > { %420 = vst [vmem:[%s391_s0 + $0x10] sm:$0xff] %v419_v36   ;;  %v447_v43 = vld [vmem:[%s3872_s6 + $0x88] sm:$0xff]   ;;  %v451_v44 = vld [vmem:[%s3872_s6 + $0x90] sm:$0xff]   ;;  %v455_v45 = vld [vmem:[%s3872_s6 + $0x98] sm:$0xff]  }
  0x55   : > { %424 = vst [vmem:[%s391_s0 + $0x18] sm:$0xff] %v423_v37   ;;  %v459_v46 = vld [vmem:[%s3872_s6 + $0xa0] sm:$0xff]   ;;  %v463_v47 = vld [vmem:[%s3872_s6 + $0xa8] sm:$0xff]   ;;  %v467_v48 = vld [vmem:[%s3872_s6 + $0xb0] sm:$0xff]  }
  0x56   : > { %428 = vst [vmem:[%s391_s0 + $0x20] sm:$0xff] %v427_v38   ;;  %v471_v49 = vld [vmem:[%s3872_s6 + $0xb8] sm:$0xff]  }
  0x57   : > { %432 = vst [vmem:[%s391_s0 + $0x28] sm:$0xff] %v431_v39  }
  0x58   : > { %436 = vst [vmem:[%s391_s0 + $0x30] sm:$0xff] %v435_v40  }
  0x59   : > { %440 = vst [vmem:[%s391_s0 + $0x38] sm:$0xff] %v439_v41  }
  0x5a   : > { %444 = vst [vmem:[%s391_s0 + $0x40] sm:$0xff] %v443_v42  }
  0x5b   : > { %448 = vst [vmem:[%s391_s0 + $0x48] sm:$0xff] %v447_v43  }
  0x5c   : > { %452 = vst [vmem:[%s391_s0 + $0x50] sm:$0xff] %v451_v44  }
  0x5d   : > { %456 = vst [vmem:[%s391_s0 + $0x58] sm:$0xff] %v455_v45  }
  0x5e   : > { %460 = vst [vmem:[%s391_s0 + $0x60] sm:$0xff] %v459_v46  }
  0x5f   : > { %464 = vst [vmem:[%s391_s0 + $0x68] sm:$0xff] %v463_v47  }
  0x60   : > { %468 = vst [vmem:[%s391_s0 + $0x70] sm:$0xff] %v467_v48  }
  0x61   : > { %472 = vst [vmem:[%s391_s0 + $0x78] sm:$0xff] %v471_v49  }
  0x62 PF: > { %562 = sbr.rel (!%p3771_p11) target bundleno = 108 (0x6c), region = 133  ;;  %s564_s27 = sand.u32 (%p3771_p11), 1, %s3601_s16  }
  0x63   : > { %s3225_s28 = sshll.u32 (%p3771_p11), %s3633_s24, 3  ;;  %s3045_s10 = sshll.u32 (%p3771_p11), %s564_s27, 5 }
  0x64   : > { %s569_s11 = sadd.s32 (%p3771_p11), %s3629_s23, %s3225_s28  ;;  %s566_s26 = scalar_lea.vmem (%p3771_p11), [#allocation6], %s3045_s10 }
  0x65   : > { %s3048_s29 = sshll.u32 (%p3771_p11), %s569_s11, 3 }
  0x66   : > { %s571_s12 = scalar_lea.vmem (%p3771_p11), %s5300_s3, %s3048_s29 }
  0x67   : > { %v606_v50 = vld [vmem:[%s571_s12] sm:$0xff]  ;;  %v608_v51 = vld [vmem:[%s571_s12 + $0x10] sm:$0xff] }
  0x68   : > { %v610_v52 = vld [vmem:[%s571_s12 + $0x20] sm:$0xff]  ;;  %607 = vst [vmem:[%s566_s26] sm:$0xff] %v606_v50  ;;  %v612_v53 = vld [vmem:[%s571_s12 + $0x30] sm:$0xff] }
  0x69   : > { %609 = vst [vmem:[%s566_s26 + $0x8] sm:$0xff] %v608_v51 }
  0x6a   : > { %611 = vst [vmem:[%s566_s26 + $0x10] sm:$0xff] %v610_v52 }
  0x6b   : > { %613 = vst [vmem:[%s566_s26 + $0x18] sm:$0xff] %v612_v53 }
  0x6c PF: > { %p3049_p1 = scmp.ge.s32.totalorder %s3637_s25, 1  ;;  %p618_p2 = scmp.lt.s32.totalorder %s3637_s25, 5 }
  0x6e   : > { %p619_p3 = pnand %p3049_p1, %p618_p2 }
  0x70   : > { %622 = sbr.rel (%p619_p3) target bundleno = 1622 (0x656), region = 171 }
  0x75   : > { %s625_s14 = sand.u32 1, %s3613_s19   ;;  %s632_s5 = sand.u32 1, %s3605_s17  }
  0x76   : > { %s3050_s6 = sshll.u32 %s625_s14, 8  ;;  %s3902_s0 = sshll.u32 %s632_s5, 1 }
  0x77   : > { %s3052_s27 = sshll.u32 %s632_s5, 7  ;;  %s646_s28 = sand.u32 1, %s3597_s15  }
  0x78   : > { %s3053_s10 = sshll.u32 %s646_s28, 5  ;;  %s3905_s11 = scalar_lea.vmem [#allocation3], %s3050_s6 }
  0x79   : > { %s634_s29 = scalar_lea.vmem [#allocation4], %s3902_s0  ;;  %s3908_s8 = scalar_lea.vmem [#allocation5], %s3052_s27 }
  0x7a   : > { %s3910_s9 = scalar_lea.vmem [#allocation6], %s3053_s10  ;;  %s3912_s12 = scalar_lea.vmem [#allocation7], %s3050_s6 }
  0x7b   : > { %p3055_p4 = scmp.ne.s32.totalorder %s3621_s21, 0 }
  0x7d   : > { %691 = sbr.rel (%p3055_p4) target bundleno = 195 (0xc3), region = 191 }
  0x82   : > { %vm692_vm0 = vcmask 7168   ;;  %v3639_v54 = vmov -inf   ;;  %v3640_v55 = vmov 0.0  }
  0x83   : > { %693 = vst.msk [vmem:[#allocation2] sm:$0xff] %vm692_vm0, %v3639_v54 }
  0x84   : > { %694 = vst.msk [vmem:[#allocation2 + $0x8] sm:$0xff] %vm692_vm0, %v3639_v54 }
  0x85   : > { %695 = vst.msk [vmem:[#allocation2 + $0x10] sm:$0xff] %vm692_vm0, %v3639_v54 }
  0x86   : > { %696 = vst.msk [vmem:[#allocation2 + $0x18] sm:$0xff] %vm692_vm0, %v3639_v54 }
  0x87   : > { %697 = vst.msk [vmem:[#allocation2 + $0x20] sm:$0xff] %vm692_vm0, %v3639_v54 }
  0x88   : > { %698 = vst.msk [vmem:[#allocation2 + $0x28] sm:$0xff] %vm692_vm0, %v3639_v54 }
  0x89   : > { %699 = vst.msk [vmem:[#allocation2 + $0x30] sm:$0xff] %vm692_vm0, %v3639_v54 }
  0x8a   : > { %700 = vst.msk [vmem:[#allocation2 + $0x38] sm:$0xff] %vm692_vm0, %v3639_v54 }
  0x8b   : > { %701 = vst.msk [vmem:[#allocation2 + $0x40] sm:$0xff] %vm692_vm0, %v3639_v54 }
  0x8c   : > { %702 = vst.msk [vmem:[#allocation2 + $0x48] sm:$0xff] %vm692_vm0, %v3639_v54 }
  0x8d   : > { %703 = vst.msk [vmem:[#allocation2 + $0x50] sm:$0xff] %vm692_vm0, %v3639_v54 }
  0x8e   : > { %704 = vst.msk [vmem:[#allocation2 + $0x58] sm:$0xff] %vm692_vm0, %v3639_v54 }
  0x8f   : > { %705 = vst.msk [vmem:[#allocation2 + $0x60] sm:$0xff] %vm692_vm0, %v3639_v54 }
  0x90   : > { %706 = vst.msk [vmem:[#allocation2 + $0x68] sm:$0xff] %vm692_vm0, %v3639_v54 }
  0x91   : > { %707 = vst.msk [vmem:[#allocation2 + $0x70] sm:$0xff] %vm692_vm0, %v3639_v54 }
  0x92   : > { %708 = vst.msk [vmem:[#allocation2 + $0x78] sm:$0xff] %vm692_vm0, %v3639_v54 }
  0x93   : > { %709 = vst.msk [vmem:[#allocation2 + $0x80] sm:$0xff] %vm692_vm0, %v3639_v54 }
  0x94   : > { %710 = vst.msk [vmem:[#allocation2 + $0x88] sm:$0xff] %vm692_vm0, %v3639_v54 }
  0x95   : > { %711 = vst.msk [vmem:[#allocation2 + $0x90] sm:$0xff] %vm692_vm0, %v3639_v54 }
  0x96   : > { %712 = vst.msk [vmem:[#allocation2 + $0x98] sm:$0xff] %vm692_vm0, %v3639_v54 }
  0x97   : > { %713 = vst.msk [vmem:[#allocation2 + $0xa0] sm:$0xff] %vm692_vm0, %v3639_v54 }
  0x98   : > { %714 = vst.msk [vmem:[#allocation2 + $0xa8] sm:$0xff] %vm692_vm0, %v3639_v54 }
  0x99   : > { %715 = vst.msk [vmem:[#allocation2 + $0xb0] sm:$0xff] %vm692_vm0, %v3639_v54 }
  0x9a   : > { %716 = vst.msk [vmem:[#allocation2 + $0xb8] sm:$0xff] %vm692_vm0, %v3639_v54 }
  0x9b   : > { %717 = vst.msk [vmem:[#allocation2 + $0xc0] sm:$0xff] %vm692_vm0, %v3639_v54 }
  0x9c   : > { %718 = vst.msk [vmem:[#allocation2 + $0xc8] sm:$0xff] %vm692_vm0, %v3639_v54 }
  0x9d   : > { %719 = vst.msk [vmem:[#allocation2 + $0xd0] sm:$0xff] %vm692_vm0, %v3639_v54 }
  0x9e   : > { %720 = vst.msk [vmem:[#allocation2 + $0xd8] sm:$0xff] %vm692_vm0, %v3639_v54 }
  0x9f   : > { %721 = vst.msk [vmem:[#allocation2 + $0xe0] sm:$0xff] %vm692_vm0, %v3639_v54 }
  0xa0   : > { %722 = vst.msk [vmem:[#allocation2 + $0xe8] sm:$0xff] %vm692_vm0, %v3639_v54 }
  0xa1   : > { %723 = vst.msk [vmem:[#allocation2 + $0xf0] sm:$0xff] %vm692_vm0, %v3639_v54 }
  0xa2   : > { %724 = vst.msk [vmem:[#allocation2 + $0xf8] sm:$0xff] %vm692_vm0, %v3639_v54 }
  0xa3   : > { %725 = vst [vmem:[%s3912_s12] sm:$0xff] %v3640_v55 }
  0xa4   : > { %726 = vst [vmem:[%s3912_s12 + $0x8] sm:$0xff] %v3640_v55 }
  0xa5   : > { %727 = vst [vmem:[%s3912_s12 + $0x10] sm:$0xff] %v3640_v55 }
  0xa6   : > { %728 = vst [vmem:[%s3912_s12 + $0x18] sm:$0xff] %v3640_v55 }
  0xa7   : > { %729 = vst [vmem:[%s3912_s12 + $0x20] sm:$0xff] %v3640_v55 }
  0xa8   : > { %730 = vst [vmem:[%s3912_s12 + $0x28] sm:$0xff] %v3640_v55 }
  0xa9   : > { %731 = vst [vmem:[%s3912_s12 + $0x30] sm:$0xff] %v3640_v55 }
  0xaa   : > { %732 = vst [vmem:[%s3912_s12 + $0x38] sm:$0xff] %v3640_v55 }
  0xab   : > { %733 = vst [vmem:[%s3912_s12 + $0x40] sm:$0xff] %v3640_v55 }
  0xac   : > { %734 = vst [vmem:[%s3912_s12 + $0x48] sm:$0xff] %v3640_v55 }
  0xad   : > { %735 = vst [vmem:[%s3912_s12 + $0x50] sm:$0xff] %v3640_v55 }
  0xae   : > { %736 = vst [vmem:[%s3912_s12 + $0x58] sm:$0xff] %v3640_v55 }
  0xaf   : > { %737 = vst [vmem:[%s3912_s12 + $0x60] sm:$0xff] %v3640_v55 }
  0xb0   : > { %738 = vst [vmem:[%s3912_s12 + $0x68] sm:$0xff] %v3640_v55 }
  0xb1   : > { %739 = vst [vmem:[%s3912_s12 + $0x70] sm:$0xff] %v3640_v55 }
  0xb2   : > { %740 = vst [vmem:[%s3912_s12 + $0x78] sm:$0xff] %v3640_v55 }
  0xb3   : > { %741 = vst [vmem:[%s3912_s12 + $0x80] sm:$0xff] %v3640_v55 }
  0xb4   : > { %742 = vst [vmem:[%s3912_s12 + $0x88] sm:$0xff] %v3640_v55 }
  0xb5   : > { %743 = vst [vmem:[%s3912_s12 + $0x90] sm:$0xff] %v3640_v55 }
  0xb6   : > { %744 = vst [vmem:[%s3912_s12 + $0x98] sm:$0xff] %v3640_v55 }
  0xb7   : > { %745 = vst [vmem:[%s3912_s12 + $0xa0] sm:$0xff] %v3640_v55 }
  0xb8   : > { %746 = vst [vmem:[%s3912_s12 + $0xa8] sm:$0xff] %v3640_v55 }
  0xb9   : > { %747 = vst [vmem:[%s3912_s12 + $0xb0] sm:$0xff] %v3640_v55 }
  0xba   : > { %748 = vst [vmem:[%s3912_s12 + $0xb8] sm:$0xff] %v3640_v55 }
  0xbb   : > { %749 = vst [vmem:[%s3912_s12 + $0xc0] sm:$0xff] %v3640_v55 }
  0xbc   : > { %750 = vst [vmem:[%s3912_s12 + $0xc8] sm:$0xff] %v3640_v55 }
  0xbd   : > { %751 = vst [vmem:[%s3912_s12 + $0xd0] sm:$0xff] %v3640_v55 }
  0xbe   : > { %752 = vst [vmem:[%s3912_s12 + $0xd8] sm:$0xff] %v3640_v55 }
  0xbf   : > { %753 = vst [vmem:[%s3912_s12 + $0xe0] sm:$0xff] %v3640_v55 }
  0xc0   : > { %754 = vst [vmem:[%s3912_s12 + $0xe8] sm:$0xff] %v3640_v55 }
  0xc1   : > { %755 = vst [vmem:[%s3912_s12 + $0xf0] sm:$0xff] %v3640_v55 }
  0xc2   : > { %756 = vst [vmem:[%s3912_s12 + $0xf8] sm:$0xff] %v3640_v55 }
  0xc3 PF: > { %v767_v56 = vld [vmem:[%s3905_s11 + $0x10] sm:$0xff]  ;;  %v765_v57 = vld [vmem:[%s3905_s11] sm:$0xff]  ;;  %v3641_v58 = vmov 0   ;;  %v768_v60 = vld [vmem:[%s3905_s11 + $0x18] sm:$0xff]  ;;  %p3185_p5 = scmp.ne.s32.totalorder %s3621_s21, 1 }
  0xc4   : > { %3352 = vset.pattern.permute.xlu1 %v3641_v58  ;;  %3351 = vset.pattern.permute.xlu0 %v3641_v58  ;;  %v769_v59 = vld [vmem:[%s3905_s11 + $0x20] sm:$0xff]  ;;  %v766_v61 = vld [vmem:[%s3905_s11 + $0x8] sm:$0xff]  ;;  %v772_v63 = vld [vmem:[%s3905_s11 + $0x38] sm:$0xff] }
  0xc5   : > { %794 = vperm.xlu1 %3352, %v767_v56   ;;  %784 = vperm.xlu0 %3351, %v765_v57   ;;  %v770_v62 = vld [vmem:[%s3905_s11 + $0x28] sm:$0xff]  ;;  %v771_v0 = vld [vmem:[%s3905_s11 + $0x30] sm:$0xff]  ;;  %v773_v1 = vld [vmem:[%s3905_s11 + $0x40] sm:$0xff] }
  0xc6   : > { %3353 = vset.pattern.permute.xlu2 %v3641_v58  ;;  %v775_v2 = vld [vmem:[%s3905_s11 + $0x50] sm:$0xff]  ;;  %v774_v3 = vld [vmem:[%s3905_s11 + $0x48] sm:$0xff]  ;;  %v776_v4 = vld [vmem:[%s3905_s11 + $0x58] sm:$0xff] }
  0xc7   : > { %804 = vperm.xlu2 %3353, %v769_v59   ;;  %v778_v5 = vld [vmem:[%s3905_s11 + $0x68] sm:$0xff]  ;;  %v777_v6 = vld [vmem:[%s3905_s11 + $0x60] sm:$0xff]  ;;  %v779_v7 = vld [vmem:[%s3905_s11 + $0x70] sm:$0xff] }
  0xc8   : > { %v3089_v8 = vld [vmem:[%s3905_s11 + $0x88] sm:$0xff]  ;;  %v780_v9 = vld [vmem:[%s3905_s11 + $0x78] sm:$0xff]  ;;  %v3088_v10 = vld [vmem:[%s3905_s11 + $0x80] sm:$0xff] }
  0xc9   : > { %v3090_v11 = vld [vmem:[%s3905_s11 + $0x90] sm:$0xff]  ;;  %v757_v12 = vld [vmem:[%s3910_s9] sm:$0xff]  ;;  %v4009_v32 = vld [vmem:[%s634_s29] ss:$0 sm:$0xff] }
  0xca   : > { %vm761_vm1 = vnez %v757_v12  ;;  %v758_v14 = vld [vmem:[%s3910_s9 + $0x8] sm:$0xff]  ;;  %v759_v31 = vld [vmem:[%s3910_s9 + $0x10] sm:$0xff] }
  0xcb   : > { %v913_v13 = vsel %vm761_vm1, 16843009, %v3641_v58  ;;  %vm762_vm2 = vnez %v758_v14  ;;  %vm763_vm6 = vnez %v759_v31 }
  0xcc   : > { %v919_v15 = vunpack.c.2.s8 %v913_v13  ;;  %v917_v16 = vunpack.c.0.s8 %v913_v13  ;;  %v914_v17 = vsel %vm762_vm2, 16843009, %v3641_v58  ;;  %v918_v22 = vunpack.c.1.s8 %v913_v13 }
  0xcd   : > { %799 = vperm.xlu1 %3352, %v768_v60   ;;  %789 = vperm.xlu0 %3351, %v766_v61   ;;  %v921_v20 = vunpack.c.0.s8 %v914_v17  ;;  %v920_v25 = vunpack.c.3.s8 %v913_v13  ;;  %v923_v34 = vunpack.c.2.s8 %v914_v17  ;;  %v924_v36 = vunpack.c.3.s8 %v914_v17 }
  0xce   : > { %v937_v18 = vpack.c.b16 %v919_v15, %v919_v15  ;;  %v933_v19 = vpack.c.b16 %v917_v16, %v917_v16  ;;  %v935_v26 = vpack.c.b16 %v918_v22, %v918_v22  ;;  %v4021_v49 = vsel %vm763_vm6, 16843009, %v3641_v58 }
  0xcf   : > { %809 = vperm.xlu2 %3353, %v770_v62   ;;  %v941_v24 = vpack.c.b16 %v921_v20, %v921_v20  ;;  %v939_v29 = vpack.c.b16 %v920_v25, %v920_v25  ;;  %v945_v46 = vpack.c.b16 %v923_v34, %v923_v34  ;;  %v947_v48 = vpack.c.b16 %v924_v36, %v924_v36  ;;  %v4473_v36 = vld [vmem:[#allocation2 + $0x80] sm:$0xff] }
  0xd0   : > { %v938_v21 = vpack.c.b8 %v937_v18, %v937_v18  ;;  %v934_v23 = vpack.c.b8 %v933_v19, %v933_v19  ;;  %v936_v30 = vpack.c.b8 %v935_v26, %v935_v26  ;;  %v922_v52 = vunpack.c.1.s8 %v914_v17 }
  0xd1   : > { %v942_v27 = vpack.c.b8 %v941_v24, %v941_v24  ;;  %v940_v38 = vpack.c.b8 %v939_v29, %v939_v29  ;;  %v946_v60 = vpack.c.b8 %v945_v46, %v945_v46  ;;  %v926_v61 = vunpack.c.1.s8 %v4021_v49 }
  0xd2   : > { %vm967_vm3 = vnez %v938_v21  ;;  %vm965_vm4 = vnez %v934_v23  ;;  %vm966_vm7 = vnez %v936_v30  ;;  %v925_v22 = vunpack.c.0.s8 %v4021_v49 }
  0xd3   : > { %v983_v28 = vsel %vm967_vm3, 16843009, %v3641_v58  ;;  %v981_v33 = vsel %vm965_vm4, 16843009, %v3641_v58  ;;  %vm969_vm5 = vnez %v942_v27  ;;  %vm968_vm9 = vnez %v940_v38 }
  0xd4   : > { %v999_v35 = vunpack.c.0.s8 %v983_v28  ;;  %v997_v42 = vunpack.c.0.s8 %v981_v33  ;;  %v985_v45 = vsel %vm969_vm5, 16843009, %v3641_v58  ;;  %v982_v55 = vsel %vm966_vm7, 16843009, %v3641_v58 }
  0xd5   : > { %819 = vperm.xlu1 %3352, %v772_v63   ;;  %814 = vperm.xlu0 %3351, %v771_v0   ;;  %v1001_v56 = vunpack.c.0.s8 %v985_v45  ;;  %v984_v62 = vsel %vm968_vm9, 16843009, %v3641_v58  ;;  %v948_v63 = vpack.c.b8 %v947_v48, %v947_v48  ;;  %v927_v0 = vunpack.c.2.s8 %v4021_v49 }
  0xd6   : > { %vm4016_vm8 = vcmp.ne.s32.totalorder %v999_v35, 0  ;;  %vm4023_vm10 = vcmp.ne.s32.totalorder %v997_v42, 0  ;;  %vm971_vm12 = vnez %v946_v60  ;;  %v1000_v12 = vunpack.c.0.s8 %v984_v62 }
  0xd7   : > { %824 = vperm.xlu2 %3353, %v773_v1   ;;  %vm4043_vm11 = vcmp.ne.s32.totalorder %v1001_v56, 0  ;;  %vm972_vm13 = vnez %v948_v63  ;;  %v953_v13 = vpack.c.b16 %v927_v0, %v927_v0  ;;  %v987_v21 = vsel %vm971_vm12, 16843009, %v3641_v58 }
  0xd8   : > { %v988_v24 = vsel %vm972_vm13, 16843009, %v3641_v58  ;;  %v1003_v33 = vunpack.c.0.s8 %v987_v21  ;;  %vm4073_vm1 = vcmp.ne.s32.totalorder %v1000_v12, 0  ;;  %v949_v38 = vpack.c.b16 %v925_v22, %v925_v22 }
  0xd9   : > { %v954_v27 = vpack.c.b8 %v953_v13, %v953_v13  ;;  %v5337_v48 = vmov 0 }
  0xda   : > { %vm4081_vm4 = vcmp.ne.s32.totalorder %v1003_v33, 0 }
  0xdb   : > { %vm975_vm3 = vnez %v954_v27  ;;  %v5338_v48 = vsel %vm4081_vm4, 4294967295, %v5337_v48 }
  0xdc   : > { %5339 = vst [vmem:[#allocation12_spill] sm:$0xff] %v5338_v48 }
  0xdd   : > { %834 = vperm.xlu1 %3352, %v775_v2   ;;  %829 = vperm.xlu0 %3351, %v774_v3   ;;  %v998_v3 = vunpack.c.0.s8 %v982_v55  ;;  %v928_v55 = vunpack.c.3.s8 %v4021_v49 }
  0xdf   : > { %839 = vperm.xlu2 %3353, %v776_v4   ;;  %v943_v4 = vpack.c.b16 %v922_v52, %v922_v52  ;;  %vm4048_vm15 = vcmp.ne.s32.totalorder %v998_v3, 0 }
  0xe1   : > { %v944_v18 = vpack.c.b8 %v943_v4, %v943_v4 }
  0xe3   : > { %vm970_vm0 = vnez %v944_v18 }
  0xe4   : > { %v986_v42 = vsel %vm970_vm0, 16843009, %v3641_v58 }
  0xe5   : > { %849 = vperm.xlu1 %3352, %v778_v5   ;;  %844 = vperm.xlu0 %3351, %v777_v6   ;;  %v760_v5 = vld [vmem:[%s3910_s9 + $0x18] sm:$0xff]  ;;  %v1002_v60 = vunpack.c.0.s8 %v986_v42 }
  0xe6   : > { %vm764_vm14 = vnez %v760_v5 }
  0xe7   : > { %854 = vperm.xlu2 %3353, %v779_v7   ;;  %v4063_v26 = vsel %vm764_vm14, 16843009, %v3641_v58  ;;  %vm4111_vm6 = vcmp.ne.s32.totalorder %v1002_v60, 0 }
  0xe8   : > { %v929_v28 = vunpack.c.0.s8 %v4063_v26  ;;  %v930_v29 = vunpack.c.1.s8 %v4063_v26  ;;  %v932_v0 = vunpack.c.3.s8 %v4063_v26 }
  0xed   : > { %1593 = vperm.xlu1 %3352, %v3089_v8   ;;  %859 = vperm.xlu0 %3351, %v780_v9  }
  0xef   : > { %1588 = vperm.xlu2 %3353, %v3088_v10   ;;  %v5330_v10 = vmov 0 }
  0xf0   : > { %v5331_v10 = vsel %vm4043_vm11, 4294967295, %v5330_v10 }
  0xf1   : > { %5332 = vst [vmem:[#allocation11_spill] sm:$0xff] %v5331_v10 }
  0xf5   : > { %1598 = vperm.xlu0 %3351, %v3090_v11   ;;  %v951_v11 = vpack.c.b16 %v926_v61, %v926_v61  ;;  %v991_v61 = vsel %vm975_vm3, 16843009, %v3641_v58 }
  0xf7   : > { %v952_v25 = vpack.c.b8 %v951_v11, %v951_v11  ;;  %v955_v11 = vpack.c.b16 %v928_v55, %v928_v55 }
  0xf9   : > { %vm974_vm2 = vnez %v952_v25 }
  0xfa   : > { %v990_v52 = vsel %vm974_vm2, 16843009, %v3641_v58 }
 0x121   : > { %v805_v37 = vpop.permute.xlu2 %804 }
 0x122   : > { %v869_v39 = vadd.f32 %v4009_v32, %v805_v37  ;;  %v1004_v37 = vunpack.c.0.s8 %v988_v24 }
 0x124   : > { %v885_v53 = vmul.f32 0.01, %v869_v39  ;;  %vm4085_vm5 = vcmp.ne.s32.totalorder %v1004_v37, 0 }
 0x126   : > { %v901_v8 = vmax.f32 %v869_v39, %v885_v53  ;;  %v950_v53 = vpack.c.b8 %v949_v38, %v949_v38 }
 0x128   : > { %v4057_v20 = vsel %vm4043_vm11, %v901_v8, -9e+15  ;;  %vm973_vm7 = vnez %v950_v53 }
 0x129   : > { %v810_v14 = vpop.permute.xlu2 %809  ;;  %v989_v24 = vsel %vm973_vm7, 16843009, %v3641_v58 }
 0x12a   : > { %v4053_v19 = vadd.f32 %v4009_v32, %v810_v14  ;;  %v5343_v14 = vmov 0 }
 0x12b   : > { %v5344_v14 = vsel %vm4111_vm6, 4294967295, %v5343_v14 }
 0x12c   : > { %v886_v39 = vmul.f32 0.01, %v4053_v19  ;;  %5345 = vst [vmem:[#allocation14_spill] sm:$0xff] %v5344_v14 }
 0x12e   : > { %v902_v8 = vmax.f32 %v4053_v19, %v886_v39 }
 0x130   : > { %v4122_v22 = vsel %vm4111_vm6, %v902_v8, -9e+15 }
 0x131   : > { %v825_v56 = vpop.permute.xlu2 %824 }
 0x137   : > { %v795_v40 = vpop.permute.xlu1 %794  ;;  %v785_v41 = vpop.permute.xlu0 %784 }
 0x138   : > { %v867_v43 = vadd.f32 %v4009_v32, %v795_v40  ;;  %v865_v44 = vadd.f32 %v4009_v32, %v785_v41 }
 0x139   : > { %v840_v37 = vpop.permute.xlu2 %839 }
 0x13a   : > { %v883_v50 = vmul.f32 0.01, %v867_v43  ;;  %v881_v51 = vmul.f32 0.01, %v865_v44 }
 0x13c   : > { %v899_v57 = vmax.f32 %v867_v43, %v883_v50  ;;  %v897_v59 = vmax.f32 %v865_v44, %v881_v51  ;;  %v957_v43 = vpack.c.b16 %v929_v28, %v929_v28  ;;  %v959_v44 = vpack.c.b16 %v930_v29, %v930_v29 }
 0x13d   : > { %v5340_v51 = vmov 0 }
 0x13e   : > { %v4033_v1 = vsel %vm4016_vm8, %v899_v57, -9e+15  ;;  %v4037_v2 = vsel %vm4023_vm10, %v897_v59, -9e+15  ;;  %v5341_v51 = vsel %vm4085_vm5, 4294967295, %v5340_v51  ;;  %v958_v62 = vpack.c.b8 %v957_v43, %v957_v43 }
 0x13f   : > { %v800_v6 = vpop.permute.xlu1 %799  ;;  %v790_v7 = vpop.permute.xlu0 %789  ;;  %1065 = vmax.xlane.f32.xlu0 %v4033_v1  ;;  %1061 = vmax.xlane.f32.xlu1 %v4037_v2  ;;  %5342 = vst [vmem:[#allocation13_spill] sm:$0xff] %v5341_v51  ;;  %v960_v63 = vpack.c.b8 %v959_v44, %v959_v44 }
 0x140   : > { %v866_v9 = vadd.f32 %v4009_v32, %v790_v7  ;;  %v868_v15 = vadd.f32 %v4009_v32, %v800_v6  ;;  %v1006_v7 = vunpack.c.0.s8 %v990_v52  ;;  %vm977_vm9 = vnez %v958_v62 }
 0x141   : > { %vm978_vm12 = vnez %v960_v63  ;;  %v993_v28 = vsel %vm977_vm9, 16843009, %v3641_v58  ;;  %v876_v52 = vadd.f32 %v4009_v32, %v840_v37  ;;  %v3092_v37 = vld [vmem:[%s3905_s11 + $0xa0] sm:$0xff] }
 0x142   : > { %v882_v16 = vmul.f32 0.01, %v866_v9  ;;  %v884_v30 = vmul.f32 0.01, %v868_v15  ;;  %vm4116_vm13 = vcmp.ne.s32.totalorder %v1006_v7, 0  ;;  %v1009_v43 = vunpack.c.0.s8 %v993_v28 }
 0x143   : > { %v994_v29 = vsel %vm978_vm12, 16843009, %v3641_v58 }
 0x144   : > { %v898_v23 = vmax.f32 %v866_v9, %v882_v16  ;;  %v900_v50 = vmax.f32 %v868_v15, %v884_v30  ;;  %v1007_v9 = vunpack.c.0.s8 %v991_v61  ;;  %v873_v15 = vadd.f32 %v4009_v32, %v825_v56 }
 0x145   : > { %v963_v16 = vpack.c.b16 %v932_v0, %v932_v0  ;;  %v1010_v44 = vunpack.c.0.s8 %v994_v29  ;;  %vm4150_vm7 = vcmp.ne.s32.totalorder %v1009_v43, 0  ;;  %v3091_v43 = vld [vmem:[%s3905_s11 + $0x98] sm:$0xff] }
 0x146   : > { %v4069_v31 = vsel %vm4048_vm15, %v898_v23, -9e+15  ;;  %v4099_v4 = vsel %vm4073_vm1, %v900_v50, -9e+15  ;;  %vm4124_vm14 = vcmp.ne.s32.totalorder %v1007_v9, 0 }
 0x147   : > { %v820_v34 = vpop.permute.xlu1 %819  ;;  %v815_v35 = vpop.permute.xlu0 %814  ;;  %1063 = vmax.xlane.f32.xlu2 %v4069_v31  ;;  %1069 = vmax.xlane.f32.xlu1 %v4057_v20  ;;  %v889_v30 = vmul.f32 0.01, %v873_v15  ;;  %v964_v33 = vpack.c.b8 %v963_v16, %v963_v16  ;;  %vm4154_vm9 = vcmp.ne.s32.totalorder %v1010_v44, 0  ;;  %v3101_v44 = vld [vmem:[%s3905_s11 + $0xe8] sm:$0xff] }
 0x148   : > { %v872_v40 = vadd.f32 %v4009_v32, %v820_v34  ;;  %v871_v41 = vadd.f32 %v4009_v32, %v815_v35  ;;  %v956_v34 = vpack.c.b8 %v955_v11, %v955_v11  ;;  %v931_v35 = vunpack.c.2.s8 %v4063_v26 }
 0x149   : > { %vm980_vm0 = vnez %v964_v33 }
 0x14a   : > { %v888_v45 = vmul.f32 0.01, %v872_v40  ;;  %v887_v46 = vmul.f32 0.01, %v871_v41  ;;  %vm976_vm2 = vnez %v956_v34  ;;  %v961_v50 = vpack.c.b16 %v931_v35, %v931_v35 }
 0x14b   : > { %v996_v62 = vsel %vm980_vm0, 16843009, %v3641_v58  ;;  %v992_v63 = vsel %vm976_vm2, 16843009, %v3641_v58 }
 0x14c   : > { %v903_v57 = vmax.f32 %v871_v41, %v887_v46  ;;  %v904_v59 = vmax.f32 %v872_v40, %v888_v45  ;;  %v1005_v40 = vunpack.c.0.s8 %v989_v24  ;;  %v905_v46 = vmax.f32 %v873_v15, %v889_v30  ;;  %v855_v15 = vpop.permute.xlu2 %854 }
 0x14d   : > { %v1012_v11 = vunpack.c.0.s8 %v996_v62  ;;  %v879_v16 = vadd.f32 %v4009_v32, %v855_v15  ;;  %v5357_v24 = vmov 0  ;;  %v1048_v15 = vld [vmem:[#allocation2 + $0x18] sm:$0xff] }
 0x14e   : > { %v4095_v3 = vsel %vm4081_vm4, %v903_v57, -9e+15  ;;  %v4103_v49 = vsel %vm4085_vm5, %v904_v59, -9e+15  ;;  %vm4146_vm3 = vcmp.ne.s32.totalorder %v1005_v40, 0  ;;  %v5354_v59 = vmov 0 }
 0x14f   : > { %v835_v5 = vpop.permute.xlu1 %834  ;;  %v830_v6 = vpop.permute.xlu0 %829  ;;  %1073 = vmax.xlane.f32.xlu0 %v4095_v3  ;;  %1067 = vmax.xlane.f32.xlu2 %v4099_v4  ;;  %v5355_v59 = vsel %vm4154_vm9, 4294967295, %v5354_v59  ;;  %v4162_v0 = vsel %vm4146_vm3, %v905_v46, -9e+15  ;;  %vm4177_vm0 = vcmp.ne.s32.totalorder %v1012_v11, 0  ;;  %v895_v29 = vmul.f32 0.01, %v879_v16 }
 0x150   : > { %v875_v12 = vadd.f32 %v4009_v32, %v835_v5  ;;  %v874_v13 = vadd.f32 %v4009_v32, %v830_v6  ;;  %1075 = vmax.xlane.f32.xlu1 %v4103_v49  ;;  %5356 = vst [vmem:[#allocation15_spill] sm:$0xff] %v5355_v59  ;;  %v962_v5 = vpack.c.b8 %v961_v50, %v961_v50  ;;  %v892_v6 = vmul.f32 0.01, %v876_v52  ;;  %v3096_v40 = vld [vmem:[%s3905_s11 + $0xc0] sm:$0xff]  ;;  %v4216_v50 = vld [vmem:[#allocation2 + $0x10] sm:$0xff] }
 0x151   : > { %v5358_v24 = vsel %vm4177_vm0, 4294967295, %v5357_v24  ;;  %v911_v34 = vmax.f32 %v879_v16, %v895_v29  ;;  %v4245_v16 = vld [vmem:[#allocation2 + $0x38] sm:$0xff] }
 0x152   : > { %v891_v18 = vmul.f32 0.01, %v875_v12  ;;  %v890_v19 = vmul.f32 0.01, %v874_v13  ;;  %vm979_vm12 = vnez %v962_v5  ;;  %5359 = vst [vmem:[#allocation16_spill] sm:$0xff] %v5358_v24  ;;  %v4229_v5 = vld [vmem:[#allocation2 + $0x20] sm:$0xff] }
 0x153   : > { %v995_v28 = vsel %vm979_vm12, 16843009, %v3641_v58  ;;  %v5362_v58 = vmov 0 }
 0x154   : > { %v906_v25 = vmax.f32 %v874_v13, %v890_v19  ;;  %v907_v27 = vmax.f32 %v875_v12, %v891_v18  ;;  %v1008_v12 = vunpack.c.0.s8 %v992_v63  ;;  %v908_v19 = vmax.f32 %v876_v52, %v892_v6  ;;  %v1045_v52 = vld [vmem:[#allocation2] sm:$0xff]  ;;  %v4227_v63 = vld [vmem:[#allocation2 + $0x8] sm:$0xff] }
 0x155   : > { %v1011_v33 = vunpack.c.0.s8 %v995_v28 }
 0x156   : > { %v4134_v38 = vsel %vm4116_vm13, %v906_v25, -9e+15  ;;  %v4138_v39 = vsel %vm4124_vm14, %v907_v27, -9e+15  ;;  %vm4181_vm2 = vcmp.ne.s32.totalorder %v1008_v12, 0 }
 0x157   : > { %v850_v41 = vpop.permute.xlu1 %849  ;;  %v845_v42 = vpop.permute.xlu0 %844  ;;  %1079 = vmax.xlane.f32.xlu0 %v4134_v38  ;;  %1071 = vmax.xlane.f32.xlu2 %v4122_v22  ;;  %v4192_v30 = vsel %vm4181_vm2, %v908_v19, -9e+15  ;;  %vm4196_vm12 = vcmp.ne.s32.totalorder %v1011_v33, 0 }
 0x158   : > { %v878_v26 = vadd.f32 %v4009_v32, %v850_v41  ;;  %v877_v45 = vadd.f32 %v4009_v32, %v845_v42  ;;  %1081 = vmax.xlane.f32.xlu1 %v4138_v39  ;;  %v5363_v58 = vsel %vm4196_vm12, 4294967295, %v5362_v58  ;;  %v4202_v35 = vsel %vm4196_vm12, %v911_v34, -9e+15  ;;  %v3098_v41 = vld [vmem:[%s3905_s11 + $0xd0] sm:$0xff]  ;;  %v3099_v42 = vld [vmem:[%s3905_s11 + $0xd8] sm:$0xff]  ;;  %v4259_v34 = vld [vmem:[#allocation2 + $0x48] sm:$0xff] }
 0x159   : > { %5364 = vst [vmem:[#allocation17_spill] sm:$0xff] %v5363_v58 }
 0x15a   : > { %v894_v53 = vmul.f32 0.01, %v878_v26  ;;  %v893_v55 = vmul.f32 0.01, %v877_v45 }
 0x15c   : > { %v909_v60 = vmax.f32 %v877_v45, %v893_v55  ;;  %v910_v61 = vmax.f32 %v878_v26, %v894_v53  ;;  %v3097_v26 = vld [vmem:[%s3905_s11 + $0xc8] sm:$0xff]  ;;  %v4218_v53 = vpop.permute.xlu2 %1588 }
 0x15e   : > { %v4166_v7 = vsel %vm4150_vm7, %v909_v60, -9e+15  ;;  %v4170_v8 = vsel %vm4154_vm9, %v910_v61, -9e+15 }
 0x15f   : > { %v860_v9 = vpop.permute.xlu0 %859  ;;  %1085 = vmax.xlane.f32.xlu0 %v4166_v7  ;;  %1077 = vmax.xlane.f32.xlu2 %v4162_v0  ;;  %v4212_v45 = vpop.permute.xlu1 %1593 }
 0x160   : > { %v880_v13 = vadd.f32 %v4009_v32, %v860_v9  ;;  %1087 = vmax.xlane.f32.xlu1 %v4170_v8 }
 0x162   : > { %v896_v18 = vmul.f32 0.01, %v880_v13 }
 0x164   : > { %v912_v27 = vmax.f32 %v880_v13, %v896_v18  ;;  %v4243_v13 = vld [vmem:[#allocation2 + $0x30] sm:$0xff] }
 0x166   : > { %v4188_v32 = vsel %vm4177_vm0, %v912_v27, -9e+15  ;;  %vm1550_vm0 = vcmask 7168  }
 0x167   : > { %1091 = vmax.xlane.f32.xlu0 %v4188_v32  ;;  %1083 = vmax.xlane.f32.xlu2 %v4192_v30  ;;  %v4214_v46 = vpop.permute.xlu0 %1598 }
 0x16f   : > { %1089 = vmax.xlane.f32.xlu2 %v4202_v35 }
 0x179   : > { %1608 = vperm.xlu1 %3352, %v3092_v37   ;;  %v4261_v37 = vld [vmem:[#allocation2 + $0x28] sm:$0xff] }
 0x17b   : > { %1628 = vperm.xlu0 %3351, %v3096_v40   ;;  %v4263_v40 = vld [vmem:[#allocation2 + $0x50] sm:$0xff] }
 0x181   : > { %1638 = vperm.xlu1 %3352, %v3098_v41  }
 0x183   : > { %1643 = vperm.xlu0 %3351, %v3099_v42  }
 0x187   : > { %1603 = vperm.xlu2 %3353, %v3091_v43  }
 0x18b   : > { %1653 = vperm.xlu0 %3351, %v3101_v44  }
 0x18f   : > { %1633 = vperm.xlu2 %3353, %v3097_v26  }
 0x1b2   : > { %v1066_v55 = vpop.xlane.xlu0 %1065  ;;  %v1062_v60 = vpop.xlane.xlu1 %1061 }
 0x1b3   : > { %v4221_v61 = vmax.f32 %v4216_v50, %v1066_v55  ;;  %v1093_v62 = vmax.f32 %v1045_v52, %v1062_v60 }
 0x1b5   : > { %1553 = vst.msk [vmem:[#allocation2 + $0x10] sm:$0xff] %vm1550_vm0, %v4221_v61  ;;  %1169 = vperm.xlu0 %3351, %v4221_v61   ;;  %1159 = vperm.xlu1 %3352, %v1093_v62   ;;  %v1109_v60 = vsub.f32 %v1045_v52, %v1093_v62 }
 0x1b6   : > { %1551 = vst.msk [vmem:[#allocation2] sm:$0xff] %vm1550_vm0, %v1093_v62 }
 0x1ba   : > { %v1064_v6 = vpop.xlane.xlu2 %1063  ;;  %v1070_v9 = vpop.xlane.xlu1 %1069 }
 0x1bb   : > { %v4232_v11 = vmax.f32 %v4227_v63, %v1064_v6  ;;  %v4235_v12 = vmax.f32 %v4229_v5, %v1070_v9  ;;  %v4283_v6 = vld [vmem:[#allocation2 + $0x60] sm:$0xff] }
 0x1bc   : > { %v4285_v9 = vld [vmem:[#allocation2 + $0x40] sm:$0xff] }
 0x1bd   : > { %1552 = vst.msk [vmem:[#allocation2 + $0x8] sm:$0xff] %vm1550_vm0, %v4232_v11  ;;  %1164 = vperm.xlu2 %3353, %v4232_v11   ;;  %1179 = vperm.xlu0 %3351, %v4235_v12  }
 0x1be   : > { %1555 = vst.msk [vmem:[#allocation2 + $0x20] sm:$0xff] %vm1550_vm0, %v4235_v12 }
 0x1c2   : > { %v1074_v18 = vpop.xlane.xlu0 %1073  ;;  %v1068_v19 = vpop.xlane.xlu2 %1067 }
 0x1c3   : > { %v4248_v27 = vmax.f32 %v4243_v13, %v1074_v18  ;;  %v1096_v28 = vmax.f32 %v1048_v15, %v1068_v19  ;;  %v1076_v29 = vpop.xlane.xlu1 %1075  ;;  %v4287_v18 = vld [vmem:[#allocation2 + $0x68] sm:$0xff] }
 0x1c4   : > { %v4251_v33 = vmax.f32 %v4245_v16, %v1076_v29 }
 0x1c5   : > { %1557 = vst.msk [vmem:[#allocation2 + $0x30] sm:$0xff] %vm1550_vm0, %v4248_v27  ;;  %1174 = vperm.xlu1 %3352, %v1096_v28   ;;  %v1112_v62 = vsub.f32 %v1048_v15, %v1096_v28  ;;  %v1110_v15 = vsub.f32 %v4227_v63, %v4232_v11  ;;  %v1113_v63 = vsub.f32 %v4229_v5, %v4235_v12 }
 0x1c6   : > { %1554 = vst.msk [vmem:[#allocation2 + $0x18] sm:$0xff] %vm1550_vm0, %v1096_v28  ;;  %1194 = vperm.xlu0 %3351, %v4251_v33   ;;  %v1115_v28 = vsub.f32 %v4243_v13, %v4248_v27 }
 0x1c7   : > { %1558 = vst.msk [vmem:[#allocation2 + $0x38] sm:$0xff] %vm1550_vm0, %v4251_v33  ;;  %v1131_v58 = vmul.f32 1.442695, %v1112_v62  ;;  %v4325_v62 = vld [vmem:[#allocation2 + $0x70] sm:$0xff]  ;;  %v1133_v11 = vmul.f32 1.442695, %v1113_v63 }
 0x1ca   : > { %v1080_v41 = vpop.xlane.xlu0 %1079  ;;  %v1072_v42 = vpop.xlane.xlu2 %1071 }
 0x1cb   : > { %v4266_v43 = vmax.f32 %v4259_v34, %v1080_v41  ;;  %v4269_v44 = vmax.f32 %v4261_v37, %v1072_v42  ;;  %v1082_v26 = vpop.xlane.xlu1 %1081  ;;  %v1125_v41 = vmul.f32 1.442695, %v1109_v60  ;;  %v4307_v60 = vld [vmem:[#allocation2 + $0x78] sm:$0xff] }
 0x1cc   : > { %v4272_v55 = vmax.f32 %v4263_v40, %v1082_v26 }
 0x1cd   : > { %1560 = vst.msk [vmem:[#allocation2 + $0x48] sm:$0xff] %vm1550_vm0, %v4266_v43  ;;  %1184 = vperm.xlu2 %3353, %v4269_v44   ;;  %1189 = vperm.xlu1 %3352, %v4248_v27   ;;  %3356 = vpow2.f32 %v1125_v41  ;;  %v1111_v41 = vsub.f32 %v4216_v50, %v4221_v61  ;;  %v1127_v50 = vmul.f32 1.442695, %v1110_v15  ;;  %v1116_v15 = vsub.f32 %v4245_v16, %v4251_v33 }
 0x1ce   : > { %1556 = vst.msk [vmem:[#allocation2 + $0x28] sm:$0xff] %vm1550_vm0, %v4269_v44  ;;  %1209 = vperm.xlu0 %3351, %v4272_v55   ;;  %3358 = vpow2.f32 %v1131_v58  ;;  %v1118_v58 = vsub.f32 %v4259_v34, %v4266_v43 }
 0x1cf   : > { %1561 = vst.msk [vmem:[#allocation2 + $0x50] sm:$0xff] %vm1550_vm0, %v4272_v55 }
 0x1d0   : > { %v1143_v12 = vmul.f32 1.442695, %v1118_v58  ;;  %v3231_v58 = vld [vmem:[%s3908_s8 + $0x28] sm:$0xff] }
 0x1d2   : > { %v1086_v19 = vpop.xlane.xlu0 %1085  ;;  %v1078_v29 = vpop.xlane.xlu2 %1077 }
 0x1d3   : > { %v4290_v42 = vmax.f32 %v4283_v6, %v1086_v19  ;;  %v4293_v26 = vmax.f32 %v4285_v9, %v1078_v29  ;;  %v1088_v24 = vpop.xlane.xlu1 %1087  ;;  %v3357_v10 = vpop.eup %3356 }
 0x1d4   : > { %v4296_v52 = vmax.f32 %v4287_v18, %v1088_v24  ;;  %v4309_v24 = vld [vmem:[#allocation2 + $0x58] sm:$0xff]  ;;  %v3359_v59 = vpop.eup %3358 }
 0x1d5   : > { %1563 = vst.msk [vmem:[#allocation2 + $0x60] sm:$0xff] %vm1550_vm0, %v4290_v42  ;;  %1199 = vperm.xlu2 %3353, %v4293_v26   ;;  %1204 = vperm.xlu1 %3352, %v4266_v43   ;;  %v1121_v34 = vsub.f32 %v4283_v6, %v4290_v42 }
 0x1d6   : > { %1559 = vst.msk [vmem:[#allocation2 + $0x40] sm:$0xff] %vm1550_vm0, %v4293_v26  ;;  %1224 = vperm.xlu0 %3351, %v4296_v52  }
 0x1d7   : > { %1564 = vst.msk [vmem:[#allocation2 + $0x68] sm:$0xff] %vm1550_vm0, %v4296_v52 }
 0x1da   : > { %v1092_v19 = vpop.xlane.xlu0 %1091  ;;  %v1084_v29 = vpop.xlane.xlu2 %1083 }
 0x1db   : > { %v4312_v51 = vmax.f32 %v4307_v60, %v1092_v19  ;;  %v1104_v14 = vmax.f32 %v4309_v24, %v1084_v29  ;;  %v1129_v19 = vmul.f32 1.442695, %v1111_v41  ;;  %v1137_v29 = vmul.f32 1.442695, %v1115_v28  ;;  %v3233_v28 = vld [vmem:[%s3908_s8 + $0x38] sm:$0xff] }
 0x1dc   : > { %1469 = vmatpush.bf16.msra.mxu0 %v3233_v28  ;;  %3243 = vmatpush.bf16.msra.mxu2 %v3233_v28 }
 0x1dd   : > { %1566 = vst.msk [vmem:[#allocation2 + $0x78] sm:$0xff] %vm1550_vm0, %v4312_v51  ;;  %1214 = vperm.xlu2 %3353, %v1104_v14   ;;  %1219 = vperm.xlu1 %3352, %v4290_v42   ;;  %3360 = vpow2.f32 %v1129_v19  ;;  %v1149_v19 = vmul.f32 1.442695, %v1121_v34  ;;  %v1124_v6 = vsub.f32 %v4307_v60, %v4312_v51  ;;  %v4369_v34 = vld [vmem:[%s634_s29 + $0x1] ss:$0 sm:$0xff] }
 0x1de   : > { %1562 = vst.msk [vmem:[#allocation2 + $0x58] sm:$0xff] %vm1550_vm0, %v1104_v14  ;;  %1311 = vperm.xlu0 %3351, %v3357_v10   ;;  %3362 = vpow2.f32 %v1127_v50  ;;  %v1114_v10 = vsub.f32 %v4261_v37, %v4269_v44  ;;  %v1139_v37 = vmul.f32 1.442695, %v1116_v15  ;;  %v1119_v50 = vsub.f32 %v4263_v40, %v4272_v55  ;;  %v3230_v55 = vld [vmem:[%s3908_s8 + $0x20] sm:$0xff] }
 0x1df   : > { %3364 = vpow2.f32 %v1137_v29  ;;  %v1155_v63 = vmul.f32 1.442695, %v1124_v6 }
 0x1e0   : > { %v1135_v13 = vmul.f32 1.442695, %v1114_v10  ;;  %3366 = vpow2.f32 %v1133_v11  ;;  %v1145_v42 = vmul.f32 1.442695, %v1119_v50 }
 0x1e2   : > { %v1090_v61 = vpop.xlane.xlu2 %1089  ;;  %3368 = vpow2.f32 %v1135_v13 }
 0x1e3   : > { %v4328_v48 = vmax.f32 %v4325_v62, %v1090_v61  ;;  %v3361_v5 = vpop.eup %3360  ;;  %3370 = vpow2.f32 %v1143_v12  ;;  %v3232_v61 = vld [vmem:[%s3908_s8 + $0x30] sm:$0xff]  ;;  %v3227_v12 = vld [vmem:[%s3908_s8 + $0x8] sm:$0xff] }
 0x1e4   : > { %v3363_v27 = vpop.eup %3362  ;;  %3372 = vpow2.f32 %v1139_v37  ;;  %1470 = vmatpush.bf16.msra.mxu0 %v3232_v61  ;;  %3244 = vmatpush.bf16.msra.mxu2 %v3232_v61 }
 0x1e5   : > { %1565 = vst.msk [vmem:[#allocation2 + $0x70] sm:$0xff] %vm1550_vm0, %v4328_v48  ;;  %1229 = vperm.xlu2 %3353, %v4328_v48   ;;  %1234 = vperm.xlu1 %3352, %v4312_v51   ;;  %v3365_v41 = vpop.eup %3364  ;;  %v1123_v51 = vsub.f32 %v4325_v62, %v4328_v48  ;;  %v3228_v48 = vld [vmem:[%s3908_s8 + $0x10] sm:$0xff] }
 0x1e6   : > { %1326 = vperm.xlu0 %3351, %v3359_v59   ;;  %v1117_v59 = vsub.f32 %v4285_v9, %v4293_v26  ;;  %v3367_v44 = vpop.eup %3366  ;;  %v1120_v9 = vsub.f32 %v4309_v24, %v1104_v14  ;;  %v1122_v14 = vsub.f32 %v4287_v18, %v4296_v52 }
 0x1e7   : > { %v1153_v24 = vmul.f32 1.442695, %v1123_v51 }
 0x1e8   : > { %v1141_v43 = vmul.f32 1.442695, %v1117_v59  ;;  %v3369_v16 = vpop.eup %3368  ;;  %v1147_v26 = vmul.f32 1.442695, %v1120_v9  ;;  %1471 = vmatpush.bf16.msra.mxu0 %v3231_v58  ;;  %3245 = vmatpush.bf16.msra.mxu2 %v3231_v58  ;;  %v1151_v60 = vmul.f32 1.442695, %v1122_v14 }
 0x1e9   : > { %v3371_v33 = vpop.eup %3370 }
 0x1ea   : > { %3374 = vpow2.f32 %v1141_v43  ;;  %v3373_v29 = vpop.eup %3372 }
 0x1eb   : > { %3376 = vpow2.f32 %v1149_v19  ;;  %v4365_v28 = vpop.permute.xlu1 %1608  ;;  %v1669_v19 = vadd.f32 %v4369_v34, %v4218_v53 }
 0x1ec   : > { %3378 = vpow2.f32 %v1145_v42  ;;  %1472 = vmatpush.bf16.msra.mxu0 %v3230_v55  ;;  %3246 = vmatpush.bf16.msra.mxu2 %v3230_v55 }
 0x1ed   : > { %1316 = vperm.xlu2 %3353, %v3363_v27   ;;  %1321 = vperm.xlu1 %3352, %v3361_v5   ;;  %3380 = vpow2.f32 %v1147_v26  ;;  %v3229_v5 = vld [vmem:[%s3908_s8 + $0x18] sm:$0xff]  ;;  %v4362_v27 = vpop.permute.xlu2 %1603  ;;  %v1629_v15 = vpop.permute.xlu0 %1628 }
 0x1ee   : > { %1341 = vperm.xlu0 %3351, %v3365_v41   ;;  %3382 = vpow2.f32 %v1155_v63  ;;  %v3226_v41 = vld [vmem:[%s3908_s8] sm:$0xff]  ;;  %v1677_v9 = vadd.f32 %v4369_v34, %v1629_v15 }
 0x1ef   : > { %3384 = vpow2.f32 %v1151_v60 }
 0x1f0   : > { %v3375_v10 = vpop.eup %3374  ;;  %3386 = vpow2.f32 %v1153_v24  ;;  %1473 = vmatpush.bf16.msra.mxu0 %v3229_v5  ;;  %3247 = vmatpush.bf16.msra.mxu2 %v3229_v5  ;;  %v1693_v58 = vmul.f32 0.01, %v1677_v9 }
 0x1f1   : > { %v3377_v40 = vpop.eup %3376 }
 0x1f2   : > { %v3379_v11 = vpop.eup %3378  ;;  %v1709_v51 = vmax.f32 %v1677_v9, %v1693_v58 }
 0x1f3   : > { %v3381_v13 = vpop.eup %3380  ;;  %v1639_v43 = vpop.permute.xlu1 %1638 }
 0x1f4   : > { %v3383_v18 = vpop.eup %3382  ;;  %1474 = vmatpush.bf16.msra.mxu0 %v3228_v48  ;;  %3248 = vmatpush.bf16.msra.mxu2 %v3228_v48 }
 0x1f5   : > { %1336 = vperm.xlu1 %3352, %v3369_v16   ;;  %1331 = vperm.xlu2 %3353, %v3367_v44   ;;  %v3385_v52 = vpop.eup %3384  ;;  %v1634_v59 = vpop.permute.xlu2 %1633 }
 0x1f6   : > { %1356 = vperm.xlu0 %3351, %v3371_v33   ;;  %v3387_v62 = vpop.eup %3386  ;;  %v1644_v37 = vpop.permute.xlu0 %1643  ;;  %v1685_v33 = vmul.f32 0.01, %v1669_v19  ;;  %v1678_v61 = vadd.f32 %v4369_v34, %v1634_v59 }
 0x1f7   : > { %v1680_v55 = vadd.f32 %v4369_v34, %v1644_v37 }
 0x1f8   : > { %1475 = vmatpush.bf16.msra.mxu0 %v3227_v12  ;;  %3249 = vmatpush.bf16.msra.mxu2 %v3227_v12  ;;  %v1694_v53 = vmul.f32 0.01, %v1678_v61 }
 0x1fa   : > { %v1710_v60 = vmax.f32 %v1678_v61, %v1694_v53 }
 0x1fc   : > { %1476 = vmatpush.bf16.msra.mxu0 %v3226_v41  ;;  %3250 = vmatpush.bf16.msra.mxu2 %v3226_v41  ;;  %v4398_v12 = vsel %vm4116_vm13, %v1710_v60, -9e+15  ;;  %v3093_v60 = vld [vmem:[%s3905_s11 + $0xa8] sm:$0xff] }
 0x1fd   : > { %1351 = vperm.xlu1 %3352, %v3375_v10   ;;  %1346 = vperm.xlu2 %3353, %v3373_v29   ;;  %v1679_v29 = vadd.f32 %v4369_v34, %v1639_v43  ;;  %v1701_v10 = vmax.f32 %v1669_v19, %v1685_v33 }
 0x1fe   : > { %1371 = vperm.xlu0 %3351, %v3377_v40   ;;  %v4375_v6 = vpop.permute.xlu0 %1653 }
 0x1ff   : > { %v4382_v40 = vsel %vm4023_vm10, %v1701_v10, -9e+15 }
 0x205   : > { %1366 = vperm.xlu1 %3352, %v3381_v13   ;;  %1361 = vperm.xlu2 %3353, %v3379_v11   ;;  %v1671_v11 = vadd.f32 %v4369_v34, %v4214_v46 }
 0x206   : > { %1386 = vperm.xlu0 %3351, %v3383_v18  }
 0x207   : > { %v1687_v41 = vmul.f32 0.01, %v1671_v11 }
 0x20d   : > { %1381 = vperm.xlu1 %3352, %v3387_v62   ;;  %1376 = vperm.xlu2 %3353, %v3385_v52   ;;  %v4393_v62 = vsel %vm4146_vm3, %v1709_v51, -9e+15 }
 0x217   : > { %v1165_v44 = vpop.permute.xlu2 %1164 }
 0x218   : > { %v1238_v16 = vsub.f32 %v4069_v31, %v1165_v44  ;;  %v1695_v31 = vmul.f32 0.01, %v1679_v29  ;;  %v1703_v44 = vmax.f32 %v1671_v11, %v1687_v41 }
 0x21a   : > { %v1255_v42 = vmul.f32 1.442695, %v1238_v16  ;;  %v1711_v13 = vmax.f32 %v1679_v29, %v1695_v31 }
 0x21c   : > { %3388 = vpow2.f32 %v1255_v42 }
 0x222   : > { %v3389_v24 = vpop.eup %3388 }
 0x227   : > { %v1160_v50 = vpop.permute.xlu1 %1159  ;;  %v1170_v14 = vpop.permute.xlu0 %1169 }
 0x228   : > { %v1237_v26 = vsub.f32 %v4037_v2, %v1160_v50  ;;  %v1670_v2 = vadd.f32 %v4369_v34, %v4212_v45  ;;  %v1239_v54 = vsub.f32 %v4033_v1, %v1170_v14  ;;  %v1185_v48 = vpop.permute.xlu2 %1184  ;;  %v1696_v45 = vmul.f32 0.01, %v1680_v55 }
 0x229   : > { %v4403_v1 = vsel %vm4124_vm14, %v1711_v13, -9e+15  ;;  %v1242_v61 = vsub.f32 %v4122_v22, %v1185_v48  ;;  %v3100_v13 = vld [vmem:[%s3905_s11 + $0xe0] sm:$0xff] }
 0x22a   : > { %v1253_v63 = vmul.f32 1.442695, %v1237_v26  ;;  %v1686_v18 = vmul.f32 0.01, %v1670_v2  ;;  %v1257_v15 = vmul.f32 1.442695, %v1239_v54  ;;  %v1712_v43 = vmax.f32 %v1680_v55, %v1696_v45 }
 0x22b   : > { %v1263_v58 = vmul.f32 1.442695, %v1242_v61 }
 0x22c   : > { %3390 = vpow2.f32 %v1253_v63  ;;  %v1702_v59 = vmax.f32 %v1670_v2, %v1686_v18  ;;  %v4414_v23 = vsel %vm4181_vm2, %v1712_v43, -9e+15 }
 0x22d   : > { %3392 = vpow2.f32 %v1257_v15 }
 0x22e   : > { %v4409_v19 = vsel %vm4048_vm15, %v1702_v59, -9e+15 }
 0x22f   : > { %v1180_v21 = vpop.permute.xlu0 %1179 }
 0x230   : > { %1750 = vmax.xlane.f32.xlu0 %v4382_v40  ;;  %v1200_v16 = vpop.permute.xlu2 %1199  ;;  %v1241_v9 = vsub.f32 %v4057_v20, %v1180_v21 }
 0x231   : > { %v1245_v17 = vsub.f32 %v4162_v0, %v1200_v16 }
 0x232   : > { %v3391_v5 = vpop.eup %3390  ;;  %v1261_v63 = vmul.f32 1.442695, %v1241_v9 }
 0x233   : > { %v1285_v52 = vpack.c.bf16 %v3389_v24, %v3391_v5  ;;  %v3393_v50 = vpop.eup %3392  ;;  %v1269_v29 = vmul.f32 1.442695, %v1245_v17 }
 0x235   : > { %1477 = vmatmul.bf16.vlgmr.msra.gmra.mxu0 %v1285_v52  ;;  %v3094_v52 = vld [vmem:[%s3905_s11 + $0xb0] sm:$0xff] }
 0x236   : > { %1766 = vmax.xlane.f32.xlu2 %v4393_v62 }
 0x237   : > { %1768 = vmax.xlane.f32.xlu1 %v4398_v12  ;;  %v1175_v46 = vpop.permute.xlu1 %1174 }
 0x238   : > { %1770 = vmax.xlane.f32.xlu0 %v4403_v1  ;;  %v1240_v56 = vsub.f32 %v4099_v4, %v1175_v46  ;;  %v4419_v4 = vsel %vm4016_vm8, %v1703_v44, -9e+15  ;;  %v1195_v26 = vpop.permute.xlu0 %1194  ;;  %v1215_v31 = vpop.permute.xlu2 %1214 }
 0x239   : > { %v1248_v51 = vsub.f32 %v4192_v30, %v1215_v31  ;;  %v1244_v5 = vsub.f32 %v4103_v49, %v1195_v26  ;;  %v3095_v30 = vld [vmem:[%s3905_s11 + $0xb8] sm:$0xff] }
 0x23a   : > { %v1259_v37 = vmul.f32 1.442695, %v1240_v56 }
 0x23b   : > { %v1275_v54 = vmul.f32 1.442695, %v1248_v51 }
 0x23c   : > { %3394 = vpow2.f32 %v1259_v37 }
 0x23d   : > { %3396 = vpow2.f32 %v1269_v29 }
 0x23e   : > { %1752 = vmax.xlane.f32.xlu2 %v4409_v19  ;;  %3398 = vpow2.f32 %v1261_v63  ;;  %v1672_v63 = vadd.f32 %v4369_v34, %v4362_v27 }
 0x23f   : > { %1772 = vmax.xlane.f32.xlu1 %v4414_v23  ;;  %v1190_v33 = vpop.permute.xlu1 %1189 }
 0x240   : > { %1754 = vmax.xlane.f32.xlu0 %v4419_v4  ;;  %v1210_v20 = vpop.permute.xlu0 %1209  ;;  %v1243_v24 = vsub.f32 %v4095_v3, %v1190_v33  ;;  %v1230_v33 = vpop.permute.xlu2 %1229 }
 0x241   : > { %v1247_v22 = vsub.f32 %v4138_v39, %v1210_v20  ;;  %v1267_v39 = vmul.f32 1.442695, %v1244_v5 }
 0x242   : > { %v3395_v42 = vpop.eup %3394  ;;  %v1265_v48 = vmul.f32 1.442695, %v1243_v24 }
 0x243   : > { %v1286_v25 = vpack.c.bf16 %v3395_v42, %v3393_v50  ;;  %v3397_v0 = vpop.eup %3396  ;;  %v1273_v18 = vmul.f32 1.442695, %v1247_v22 }
 0x244   : > { %v3399_v2 = vpop.eup %3398 }
 0x245   : > { %1482 = vmatmul.bf16.gmra.mxu0 %v1286_v25 }
 0x247   : > { %v1205_v10 = vpop.permute.xlu1 %1204 }
 0x248   : > { %v1246_v47 = vsub.f32 %v4134_v38, %v1205_v10  ;;  %v1225_v3 = vpop.permute.xlu0 %1224  ;;  %v1317_v29 = vpop.permute.xlu2 %1316 }
 0x249   : > { %v1250_v37 = vsub.f32 %v4170_v8, %v1225_v3  ;;  %v1251_v8 = vsub.f32 %v4202_v35, %v1230_v33 }
 0x24a   : > { %v1271_v53 = vmul.f32 1.442695, %v1246_v47 }
 0x24b   : > { %v1279_v44 = vmul.f32 1.442695, %v1250_v37  ;;  %v1281_v61 = vmul.f32 1.442695, %v1251_v8  ;;  %v4511_v37 = vld [vmem:[#allocation2 + $0x90] sm:$0xff] }
 0x24c   : > { %3400 = vpow2.f32 %v1271_v53 }
 0x24d   : > { %3402 = vpow2.f32 %v1263_v58  ;;  %v1688_v58 = vmul.f32 0.01, %v1672_v63 }
 0x24e   : > { %3404 = vpow2.f32 %v1273_v18  ;;  %v4482_v18 = vld [vmem:[#allocation2 + $0xc0] sm:$0xff] }
 0x24f   : > { %3406 = vpow2.f32 %v1275_v54  ;;  %v1220_v45 = vpop.permute.xlu1 %1219  ;;  %v1704_v20 = vmax.f32 %v1672_v63, %v1688_v58  ;;  %v4484_v54 = vld [vmem:[#allocation2 + $0xc8] sm:$0xff] }
 0x250   : > { %3408 = vpow2.f32 %v1265_v48  ;;  %v1249_v56 = vsub.f32 %v4166_v7, %v1220_v45  ;;  %v4436_v16 = vpop.permute.xlu0 %1311 }
 0x251   : > { %3410 = vpow2.f32 %v1267_v39  ;;  %v4486_v39 = vld [vmem:[#allocation2 + $0xd0] sm:$0xff] }
 0x252   : > { %v3401_v14 = vpop.eup %3400  ;;  %v1277_v21 = vmul.f32 1.442695, %v1249_v56  ;;  %v1293_v56 = vld [vmem:[%s3912_s12] sm:$0xff] }
 0x253   : > { %v1289_v55 = vpack.c.bf16 %v3401_v14, %v3397_v0  ;;  %v3403_v38 = vpop.eup %3402  ;;  %v4448_v0 = vpop.permute.xlu2 %1331 }
 0x254   : > { %v1287_v11 = vpack.c.bf16 %v3403_v38, %v3399_v2  ;;  %v3405_v41 = vpop.eup %3404  ;;  %3412 = vpow2.f32 %v1277_v21  ;;  %v4454_v2 = vsel %vm4073_vm1, %v1704_v20, -9e+15 }
 0x255   : > { %1497 = vmatmul.bf16.vlgmr.msra.gmra.mxu2 %v1289_v55  ;;  %v3407_v46 = vpop.eup %3406  ;;  %3414 = vpow2.f32 %v1279_v44  ;;  %v1389_v44 = vmul.f32 %v4436_v16, %v1293_v56  ;;  %v1294_v16 = vld [vmem:[%s3912_s12 + $0x8] sm:$0xff] }
 0x256   : > { %1613 = vperm.xlu2 %3353, %v3093_v60   ;;  %1487 = vmatmul.bf16.gmra.mxu0 %v1287_v11  ;;  %v3409_v49 = vpop.eup %3408  ;;  %v1290_v15 = vpack.c.bf16 %v3407_v46, %v3405_v41 }
 0x257   : > { %v3411_v59 = vpop.eup %3410  ;;  %v1235_v17 = vpop.permute.xlu1 %1234 }
 0x258   : > { %1648 = vperm.xlu1 %3352, %v3100_v13   ;;  %v1288_v43 = vpack.c.bf16 %v3411_v59, %v3409_v49  ;;  %v1252_v42 = vsub.f32 %v4188_v32, %v1235_v17  ;;  %v4439_v7 = vpop.permute.xlu0 %1326  ;;  %v4506_v49 = vld [vmem:[#allocation2 + $0x88] sm:$0xff] }
 0x25a   : > { %v3413_v50 = vpop.eup %3412  ;;  %v1283_v25 = vmul.f32 1.442695, %v1252_v42 }
 0x25b   : > { %v3415_v9 = vpop.eup %3414  ;;  %v4459_v14 = vpop.permute.xlu2 %1346 }
 0x25c   : > { %v1291_v26 = vpack.c.bf16 %v3415_v9, %v3413_v50  ;;  %3416 = vpow2.f32 %v1283_v25 }
 0x25d   : > { %3418 = vpow2.f32 %v1281_v61  ;;  %v1295_v61 = vld [vmem:[%s3912_s12 + $0x10] sm:$0xff] }
 0x25e   : > { %1623 = vperm.xlu2 %3353, %v3095_v30  }
 0x25f   : > { %v4444_v10 = vpop.permute.xlu1 %1321 }
 0x260   : > { %1618 = vperm.xlu1 %3352, %v3094_v52   ;;  %v4446_v47 = vpop.permute.xlu0 %1341  ;;  %v1391_v63 = vmul.f32 %v4444_v10, %v1295_v61  ;;  %v1297_v10 = vld [vmem:[%s3912_s12 + $0x20] sm:$0xff]  ;;  %v1298_v61 = vld [vmem:[%s3912_s12 + $0x28] sm:$0xff] }
 0x262   : > { %v3417_v32 = vpop.eup %3416 }
 0x263   : > { %v3419_v53 = vpop.eup %3418  ;;  %v4465_v55 = vpop.permute.xlu2 %1361 }
 0x264   : > { %v1292_v35 = vpack.c.bf16 %v3417_v32, %v3419_v53  ;;  %v1296_v53 = vld [vmem:[%s3912_s12 + $0x18] sm:$0xff] }
 0x265   : > { %1502 = vmatmul.bf16.gmra.mxu2 %v1290_v15  ;;  %v4509_v15 = vld [vmem:[#allocation2 + $0xd8] sm:$0xff] }
 0x266   : > { %1492 = vmatmul.bf16.gmra.mxu0 %v1288_v43 }
 0x267   : > { %v4450_v31 = vpop.permute.xlu1 %1336 }
 0x268   : > { %v4456_v27 = vpop.permute.xlu0 %1356 }
 0x26b   : > { %v4471_v24 = vpop.permute.xlu2 %1376 }
 0x26f   : > { %v4461_v22 = vpop.permute.xlu1 %1351 }
 0x270   : > { %v4463_v51 = vpop.permute.xlu0 %1371 }
 0x275   : > { %1507 = vmatmul.bf16.gmra.mxu2 %v1291_v26  ;;  %v1390_v26 = vmul.f32 %v1317_v29, %v1294_v16  ;;  %v1682_v29 = vadd.f32 %v4369_v34, %v4375_v6  ;;  %v1301_v6 = vld [vmem:[%s3912_s12 + $0x40] sm:$0xff] }
 0x276   : > { %v1397_v57 = vmul.f32 %v4461_v22, %v1301_v6  ;;  %v1394_v22 = vmul.f32 %v4450_v31, %v1298_v61 }
 0x277   : > { %v4467_v60 = vpop.permute.xlu1 %1366 }
 0x278   : > { %v4469_v38 = vpop.permute.xlu0 %1386 }
 0x27f   : > { %v4475_v11 = vpop.permute.xlu1 %1381 }
 0x285   : > { %1512 = vmatmul.bf16.gmra.mxu2 %v1292_v35  ;;  %v1392_v35 = vmul.f32 %v4439_v7, %v1296_v53 }
 0x287   : > { %1756 = vmax.xlane.f32.xlu2 %v4454_v2 }
 0x2a3   : > { %v1751_v13 = vpop.xlane.xlu0 %1750 }
 0x2a4   : > { %v4478_v5 = vmax.f32 %v4473_v36, %v1751_v13 }
 0x2a6   : > { %2241 = vst.msk [vmem:[#allocation2 + $0x80] sm:$0xff] %vm1550_vm0, %v4478_v5 }
 0x2a9   : > { %v1767_v48 = vpop.xlane.xlu2 %1766 }
 0x2aa   : > { %v4489_v30 = vmax.f32 %v4482_v18, %v1767_v48  ;;  %v1769_v52 = vpop.xlane.xlu1 %1768 }
 0x2ab   : > { %v1771_v3 = vpop.xlane.xlu0 %1770  ;;  %v4492_v45 = vmax.f32 %v4484_v54, %v1769_v52 }
 0x2ac   : > { %2249 = vst.msk [vmem:[#allocation2 + $0xc0] sm:$0xff] %vm1550_vm0, %v4489_v30  ;;  %v4497_v41 = vmax.f32 %v4486_v39, %v1771_v3 }
 0x2ad   : > { %v1807_v46 = vsub.f32 %v4484_v54, %v4492_v45  ;;  %2250 = vst.msk [vmem:[#allocation2 + $0xc8] sm:$0xff] %vm1550_vm0, %v4492_v45  ;;  %1893 = vperm.xlu1 %3352, %v4492_v45  }
 0x2ae   : > { %2251 = vst.msk [vmem:[#allocation2 + $0xd0] sm:$0xff] %vm1550_vm0, %v4497_v41 }
 0x2b1   : > { %v1753_v59 = vpop.xlane.xlu2 %1752 }
 0x2b2   : > { %v4514_v43 = vmax.f32 %v4506_v49, %v1753_v59  ;;  %v1773_v21 = vpop.xlane.xlu1 %1772  ;;  %v1478_v9 = vpop.f32.mrf.mxu0  ;;  %v1698_v59 = vmul.f32 0.01, %v1682_v29 }
 0x2b3   : > { %v1755_v33 = vpop.xlane.xlu0 %1754  ;;  %v4518_v17 = vmax.f32 %v4509_v15, %v1773_v21  ;;  %v1518_v42 = vadd.f32 %v1478_v9, %v1389_v44  ;;  %v1393_v44 = vmul.f32 %v4448_v0, %v1297_v10  ;;  %v1299_v10 = vld [vmem:[%s3912_s12 + $0x30] sm:$0xff] }
 0x2b4   : > { %2242 = vst.msk [vmem:[#allocation2 + $0x88] sm:$0xff] %vm1550_vm0, %v4514_v43  ;;  %v4523_v50 = vmax.f32 %v4511_v37, %v1755_v33  ;;  %v1395_v6 = vmul.f32 %v4446_v47, %v1299_v10  ;;  %v1306_v10 = vld [vmem:[%s3912_s12 + $0x68] sm:$0xff] }
 0x2b5   : > { %2252 = vst.msk [vmem:[#allocation2 + $0xd8] sm:$0xff] %vm1550_vm0, %v4518_v17 }
 0x2b6   : > { %2243 = vst.msk [vmem:[#allocation2 + $0x90] sm:$0xff] %vm1550_vm0, %v4523_v50 }
 0x2b7   : > { %1534 = vst [vmem:[%s3912_s12] sm:$0xff] %v1518_v42  ;;  %v1673_v42 = vadd.f32 %v4369_v34, %v4365_v28 }
 0x2b9   : > { %v1689_v0 = vmul.f32 0.01, %v1673_v42 }
 0x2ba   : > { %v1480_v8 = vpop.f32.mrf.mxu0 }
 0x2bb   : > { %v1519_v25 = vadd.f32 %v1480_v8, %v1390_v26  ;;  %v1714_v8 = vmax.f32 %v1682_v29, %v1698_v59 }
 0x2bd   : > { %1535 = vst [vmem:[%s3912_s12 + $0x8] sm:$0xff] %v1519_v25  ;;  %v4557_v53 = vsel %vm4154_vm9, %v1714_v8, -9e+15  ;;  %v1300_v8 = vld [vmem:[%s3912_s12 + $0x38] sm:$0xff] }
 0x2be   : > { %v1396_v47 = vmul.f32 %v4459_v14, %v1300_v8  ;;  %v4596_v14 = vld [vmem:[#allocation2 + $0x98] sm:$0xff] }
 0x2c2   : > { %v1483_v58 = vpop.f32.mrf.mxu0 }
 0x2c3   : > { %v1520_v32 = vadd.f32 %v1483_v58, %v1391_v63 }
 0x2c5   : > { %1536 = vst [vmem:[%s3912_s12 + $0x10] sm:$0xff] %v1520_v32 }
 0x2ca   : > { %v1649_v20 = vpop.permute.xlu1 %1648  ;;  %v1485_v48 = vpop.f32.mrf.mxu0 }
 0x2cb   : > { %v1681_v13 = vadd.f32 %v4369_v34, %v1649_v20  ;;  %v1521_v52 = vadd.f32 %v1485_v48, %v1392_v35  ;;  %v1614_v35 = vpop.permute.xlu2 %1613 }
 0x2cc   : > { %v1674_v29 = vadd.f32 %v4369_v34, %v1614_v35 }
 0x2cd   : > { %v1697_v3 = vmul.f32 0.01, %v1681_v13  ;;  %1537 = vst [vmem:[%s3912_s12 + $0x18] sm:$0xff] %v1521_v52 }
 0x2cf   : > { %v1713_v56 = vmax.f32 %v1681_v13, %v1697_v3  ;;  %v1302_v13 = vld [vmem:[%s3912_s12 + $0x48] sm:$0xff]  ;;  %v1705_v3 = vmax.f32 %v1673_v42, %v1689_v0  ;;  %v1304_v0 = vld [vmem:[%s3912_s12 + $0x58] sm:$0xff] }
 0x2d0   : > { %v1400_v32 = vmul.f32 %v4467_v60, %v1304_v0  ;;  %v3102_v60 = vld [vmem:[%s3905_s11 + $0xf0] sm:$0xff]  ;;  %v4626_v0 = vld [vmem:[#allocation2 + $0xe0] sm:$0xff] }
 0x2d1   : > { %v4544_v21 = vsel %vm4150_vm7, %v1713_v56, -9e+15  ;;  %v1398_v56 = vmul.f32 %v4456_v27, %v1302_v13  ;;  %v4574_v31 = vsel %vm4043_vm11, %v1705_v3, -9e+15  ;;  %v1305_v13 = vld [vmem:[%s3912_s12 + $0x60] sm:$0xff] }
 0x2d2   : > { %1774 = vmax.xlane.f32.xlu0 %v4544_v21  ;;  %v1619_v7 = vpop.permute.xlu1 %1618 }
 0x2d3   : > { %v1675_v33 = vadd.f32 %v4369_v34, %v1619_v7  ;;  %v1488_v9 = vpop.f32.mrf.mxu0  ;;  %v1690_v7 = vmul.f32 0.01, %v1674_v29 }
 0x2d4   : > { %v1522_v16 = vadd.f32 %v1488_v9, %v1393_v44  ;;  %v1303_v9 = vld [vmem:[%s3912_s12 + $0x50] sm:$0xff] }
 0x2d5   : > { %v1691_v26 = vmul.f32 0.01, %v1675_v33 }
 0x2d6   : > { %1538 = vst [vmem:[%s3912_s12 + $0x20] sm:$0xff] %v1522_v16  ;;  %v1706_v16 = vmax.f32 %v1674_v29, %v1690_v7 }
 0x2d7   : > { %v1707_v25 = vmax.f32 %v1675_v33, %v1691_v26  ;;  %v1399_v26 = vmul.f32 %v4465_v55, %v1303_v9  ;;  %v3103_v33 = vld [vmem:[%s3905_s11 + $0xf8] sm:$0xff] }
 0x2d8   : > { %v1498_v63 = vpop.f32.mrf.mxu2 }
 0x2d9   : > { %v1526_v58 = vadd.f32 %v1498_v63, %v1397_v57  ;;  %v4561_v20 = vsel %vm4081_vm4, %v1707_v25, -9e+15  ;;  %v4585_v63 = vsel %vm4111_vm6, %v1706_v16, -9e+15  ;;  %v1308_v16 = vld [vmem:[%s3912_s12 + $0x78] sm:$0xff] }
 0x2da   : > { %1776 = vmax.xlane.f32.xlu0 %v4557_v53  ;;  %1762 = vmax.xlane.f32.xlu1 %v4561_v20 }
 0x2db   : > { %1542 = vst [vmem:[%s3912_s12 + $0x40] sm:$0xff] %v1526_v58  ;;  %v1490_v48 = vpop.f32.mrf.mxu0 }
 0x2dc   : > { %v1523_v52 = vadd.f32 %v1490_v48, %v1394_v22  ;;  %v1624_v22 = vpop.permute.xlu2 %1623  ;;  %v1401_v48 = vmul.f32 %v4463_v51, %v1305_v13  ;;  %v1402_v51 = vmul.f32 %v4471_v24, %v1306_v10  ;;  %v3240_v10 = vld [vmem:[%s3908_s8 + $0x70] sm:$0xff] }
 0x2de   : > { %1539 = vst [vmem:[%s3912_s12 + $0x28] sm:$0xff] %v1523_v52 }
 0x2e0   : > { %v1500_v59 = vpop.f32.mrf.mxu2 }
 0x2e1   : > { %v1527_v44 = vadd.f32 %v1500_v59, %v1398_v56 }
 0x2e2   : > { %1758 = vmax.xlane.f32.xlu0 %v4574_v31 }
 0x2e3   : > { %1543 = vst [vmem:[%s3912_s12 + $0x48] sm:$0xff] %v1527_v44  ;;  %v1493_v42 = vpop.f32.mrf.mxu0 }
 0x2e4   : > { %v1524_v27 = vadd.f32 %v1493_v42, %v1395_v6  ;;  %v1307_v6 = vld [vmem:[%s3912_s12 + $0x70] sm:$0xff] }
 0x2e5   : > { %v1403_v9 = vmul.f32 %v4475_v11, %v1307_v6 }
 0x2e6   : > { %1540 = vst [vmem:[%s3912_s12 + $0x30] sm:$0xff] %v1524_v27 }
 0x2e8   : > { %v1503_v57 = vpop.f32.mrf.mxu2 }
 0x2e9   : > { %v1528_v25 = vadd.f32 %v1503_v57, %v1399_v26  ;;  %v1404_v26 = vmul.f32 %v4469_v38, %v1308_v16  ;;  %v1676_v57 = vadd.f32 %v4369_v34, %v1624_v22  ;;  %v4640_v22 = vld [vmem:[#allocation2 + $0xb0] sm:$0xff] }
 0x2ea   : > { %1760 = vmax.xlane.f32.xlu0 %v4585_v63 }
 0x2eb   : > { %1544 = vst [vmem:[%s3912_s12 + $0x50] sm:$0xff] %v1528_v25  ;;  %v1495_v58 = vpop.f32.mrf.mxu0  ;;  %v1692_v25 = vmul.f32 0.01, %v1676_v57 }
 0x2ec   : > { %v1525_v55 = vadd.f32 %v1495_v58, %v1396_v47  ;;  %v3241_v58 = vld [vmem:[%s3908_s8 + $0x78] sm:$0xff] }
 0x2ed   : > { %v1708_v61 = vmax.f32 %v1676_v57, %v1692_v25  ;;  %3251 = vmatpush.bf16.msra.mxu3 %v3241_v58  ;;  %2160 = vmatpush.bf16.msra.mxu1 %v3241_v58  ;;  %v3236_v57 = vld [vmem:[%s3908_s8 + $0x50] sm:$0xff]  ;;  %v3235_v25 = vld [vmem:[%s3908_s8 + $0x48] sm:$0xff] }
 0x2ee   : > { %1541 = vst [vmem:[%s3912_s12 + $0x38] sm:$0xff] %v1525_v55 }
 0x2ef   : > { %v4623_v11 = vsel %vm4085_vm5, %v1708_v61, -9e+15  ;;  %v3234_v61 = vld [vmem:[%s3908_s8 + $0x40] sm:$0xff] }
 0x2f0   : > { %v1505_v28 = vpop.f32.mrf.mxu2 }
 0x2f1   : > { %v1529_v35 = vadd.f32 %v1505_v28, %v1400_v32  ;;  %v1799_v28 = vsub.f32 %v4506_v49, %v4514_v43  ;;  %3252 = vmatpush.bf16.msra.mxu3 %v3240_v10  ;;  %2161 = vmatpush.bf16.msra.mxu1 %v3240_v10 }
 0x2f3   : > { %1545 = vst [vmem:[%s3912_s12 + $0x58] sm:$0xff] %v1529_v35  ;;  %v4638_v35 = vld [vmem:[#allocation2 + $0xe8] sm:$0xff]  ;;  %v1816_v13 = vmul.f32 1.442695, %v1799_v28 }
 0x2f5   : > { %3420 = vpow2.f32 %v1816_v13 }
 0x2f8   : > { %v1508_v29 = vpop.f32.mrf.mxu2 }
 0x2f9   : > { %v1530_v52 = vadd.f32 %v1508_v29, %v1401_v48 }
 0x2fa   : > { %v1757_v3 = vpop.xlane.xlu2 %1756 }
 0x2fb   : > { %1546 = vst [vmem:[%s3912_s12 + $0x60] sm:$0xff] %v1530_v52  ;;  %v4600_v56 = vmax.f32 %v4596_v14, %v1757_v3 }
 0x2fd   : > { %v1801_v59 = vsub.f32 %v4596_v14, %v4600_v56  ;;  %2244 = vst.msk [vmem:[#allocation2 + $0x98] sm:$0xff] %vm1550_vm0, %v4600_v56  ;;  %1863 = vperm.xlu1 %3352, %v4600_v56  }
 0x2fe   : > { %1658 = vperm.xlu0 %3351, %v3102_v60  }
 0x300   : > { %v1510_v7 = vpop.f32.mrf.mxu2 }
 0x301   : > { %v1531_v44 = vadd.f32 %v1510_v7, %v1402_v51  ;;  %v3239_v7 = vld [vmem:[%s3908_s8 + $0x68] sm:$0xff] }
 0x302   : > { %3253 = vmatpush.bf16.msra.mxu3 %v3239_v7  ;;  %2162 = vmatpush.bf16.msra.mxu1 %v3239_v7 }
 0x303   : > { %1547 = vst [vmem:[%s3912_s12 + $0x68] sm:$0xff] %v1531_v44 }
 0x306   : > { %1663 = vperm.xlu0 %3351, %v3103_v33   ;;  %v3421_v33 = vpop.eup %3420 }
 0x308   : > { %v1513_v42 = vpop.f32.mrf.mxu2 }
 0x309   : > { %v1532_v27 = vadd.f32 %v1513_v42, %v1403_v9  ;;  %v4665_v42 = vld [vmem:[#allocation2 + $0xa8] sm:$0xff] }
 0x30b   : > { %1548 = vst [vmem:[%s3912_s12 + $0x70] sm:$0xff] %v1532_v27  ;;  %v3238_v27 = vld [vmem:[%s3908_s8 + $0x60] sm:$0xff] }
 0x30c   : > { %3254 = vmatpush.bf16.msra.mxu3 %v3238_v27  ;;  %2163 = vmatpush.bf16.msra.mxu1 %v3238_v27 }
 0x30e   : > { %1888 = vperm.xlu0 %3351, %v4489_v30  }
 0x310   : > { %v1515_v8 = vpop.f32.mrf.mxu2 }
 0x311   : > { %v1533_v24 = vadd.f32 %v1515_v8, %v1404_v26  ;;  %v3237_v26 = vld [vmem:[%s3908_s8 + $0x58] sm:$0xff] }
 0x312   : > { %3255 = vmatpush.bf16.msra.mxu3 %v3237_v26  ;;  %2164 = vmatpush.bf16.msra.mxu1 %v3237_v26 }
 0x313   : > { %1549 = vst [vmem:[%s3912_s12 + $0x78] sm:$0xff] %v1533_v24 }
 0x316   : > { %1853 = vperm.xlu0 %3351, %v4514_v43   ;;  %v1738_v43 = vld [vmem:[#allocation2 + $0xa0] sm:$0xff]  ;;  %3256 = vmatpush.bf16.msra.mxu3 %v3236_v57 }
 0x317   : > { %2165 = vmatpush.bf16.msra.mxu1 %v3236_v57 }
 0x31a   : > { %3257 = vmatpush.bf16.msra.mxu3 %v3235_v25 }
 0x31b   : > { %2166 = vmatpush.bf16.msra.mxu1 %v3235_v25 }
 0x31e   : > { %3258 = vmatpush.bf16.msra.mxu3 %v3234_v61 }
 0x31f   : > { %v4629_v55 = vpop.permute.xlu1 %1893  ;;  %2167 = vmatpush.bf16.msra.mxu1 %v3234_v61 }
 0x340   : > { %1764 = vmax.xlane.f32.xlu0 %v4623_v11 }
 0x345   : > { %v1775_v38 = vpop.xlane.xlu0 %1774 }
 0x346   : > { %v4632_v32 = vmax.f32 %v4626_v0, %v1775_v38 }
 0x348   : > { %2253 = vst.msk [vmem:[#allocation2 + $0xe0] sm:$0xff] %vm1550_vm0, %v4632_v32 }
 0x34d   : > { %v1777_v48 = vpop.xlane.xlu0 %1776  ;;  %v1763_v29 = vpop.xlane.xlu1 %1762 }
 0x34e   : > { %v4643_v52 = vmax.f32 %v4638_v35, %v1777_v48  ;;  %v4646_v3 = vmax.f32 %v4640_v22, %v1763_v29 }
 0x350   : > { %v1811_v60 = vsub.f32 %v4638_v35, %v4643_v52  ;;  %2254 = vst.msk [vmem:[#allocation2 + $0xe8] sm:$0xff] %vm1550_vm0, %v4643_v52  ;;  %v1804_v49 = vsub.f32 %v4640_v22, %v4646_v3  ;;  %1878 = vperm.xlu1 %3352, %v4646_v3   ;;  %v1800_v35 = vsub.f32 %v4511_v37, %v4523_v50  ;;  %v1820_v37 = vmul.f32 1.442695, %v1801_v59 }
 0x351   : > { %2247 = vst.msk [vmem:[#allocation2 + $0xb0] sm:$0xff] %vm1550_vm0, %v4646_v3 }
 0x352   : > { %v1840_v13 = vmul.f32 1.442695, %v1811_v60  ;;  %v1826_v56 = vmul.f32 1.442695, %v1804_v49 }
 0x354   : > { %1913 = vperm.xlu0 %3351, %v4643_v52   ;;  %v4717_v52 = vld [vmem:[#allocation2 + $0xf8] sm:$0xff] }
 0x355   : > { %v1759_v51 = vpop.xlane.xlu0 %1758 }
 0x356   : > { %v4660_v44 = vmax.f32 %v1738_v43, %v1759_v51  ;;  %v1935_v51 = vsub.f32 %v4398_v12, %v4629_v55  ;;  %v1741_v55 = vld [vmem:[#allocation2 + $0xb8] sm:$0xff] }
 0x358   : > { %v1802_v6 = vsub.f32 %v1738_v43, %v4660_v44  ;;  %2245 = vst.msk [vmem:[#allocation2 + $0xa0] sm:$0xff] %vm1550_vm0, %v4660_v44  ;;  %2006 = vperm.xlu1 %3352, %v3421_v33   ;;  %v5371_v33 = vld [vmem:[#allocation16_spill] sm:$0xff] }
 0x359   : > { %vm5372_vm8 = vnez %v5371_v33 }
 0x35a   : > { %v1822_v9 = vmul.f32 1.442695, %v1802_v6 }
 0x35c   : > { %3422 = vpow2.f32 %v1822_v9  ;;  %v1960_v9 = vmul.f32 1.442695, %v1935_v51  ;;  %v1818_v51 = vmul.f32 1.442695, %v1800_v35 }
 0x35d   : > { %v1761_v16 = vpop.xlane.xlu0 %1760 }
 0x35e   : > { %v4670_v8 = vmax.f32 %v4665_v42, %v1761_v16  ;;  %3424 = vpow2.f32 %v1960_v9 }
 0x360   : > { %2246 = vst.msk [vmem:[#allocation2 + $0xa8] sm:$0xff] %vm1550_vm0, %v4670_v8 }
 0x362   : > { %v3423_v24 = vpop.eup %3422 }
 0x363   : > { %2021 = vperm.xlu1 %3352, %v3423_v24  }
 0x364   : > { %v3425_v24 = vpop.eup %3424 }
 0x36f   : > { %v1864_v3 = vpop.permute.xlu1 %1863 }
 0x370   : > { %v1659_v47 = vpop.permute.xlu0 %1658 }
 0x371   : > { %v1683_v58 = vadd.f32 %v4369_v34, %v1659_v47 }
 0x373   : > { %v1699_v38 = vmul.f32 0.01, %v1683_v58 }
 0x375   : > { %v1715_v28 = vmax.f32 %v1683_v58, %v1699_v38  ;;  %v1808_v58 = vsub.f32 %v4486_v39, %v4497_v41 }
 0x377   : > { %v4680_v48 = vsel %vm4196_vm12, %v1715_v28, -9e+15  ;;  %v1834_v38 = vmul.f32 1.442695, %v1808_v58 }
 0x378   : > { %1778 = vmax.xlane.f32.xlu2 %v4680_v48  ;;  %v1664_v29 = vpop.permute.xlu0 %1663 }
 0x379   : > { %v1684_v43 = vadd.f32 %v4369_v34, %v1664_v29 }
 0x37b   : > { %v1700_v10 = vmul.f32 0.01, %v1684_v43 }
 0x37d   : > { %v1716_v7 = vmax.f32 %v1684_v43, %v1700_v10  ;;  %v4705_v10 = vld [vmem:[#allocation2 + $0xf0] sm:$0xff] }
 0x37f   : > { %v4688_v6 = vsel %vm5372_vm8, %v1716_v7, -9e+15 }
 0x380   : > { %1780 = vmax.xlane.f32.xlu2 %v4688_v6  ;;  %v1889_v27 = vpop.permute.xlu0 %1888 }
 0x381   : > { %v1934_v16 = vsub.f32 %v4393_v62, %v1889_v27 }
 0x383   : > { %v1958_v26 = vmul.f32 1.442695, %v1934_v16 }
 0x385   : > { %3426 = vpow2.f32 %v1958_v26 }
 0x388   : > { %v1854_v12 = vpop.permute.xlu0 %1853 }
 0x38b   : > { %v3427_v34 = vpop.eup %3426 }
 0x38c   : > { %v1978_v57 = vpack.c.bf16 %v3425_v24, %v3427_v34 }
 0x38e   : > { %2188 = vmatmul.bf16.vlgmr.msra.gmra.mxu3 %v1978_v57 }
 0x398   : > { %1848 = vperm.xlu2 %3353, %v4478_v5  }
 0x3a0   : > { %1898 = vperm.xlu2 %3353, %v4497_v41  }
 0x3a8   : > { %1903 = vperm.xlu2 %3353, %v4518_v17  }
 0x3b0   : > { %1858 = vperm.xlu2 %3353, %v4523_v50  }
 0x3b3   : > { %v1765_v25 = vpop.xlane.xlu0 %1764 }
 0x3b4   : > { %v1789_v61 = vmax.f32 %v1741_v55, %v1765_v25 }
 0x3b6   : > { %v1805_v62 = vsub.f32 %v1741_v55, %v1789_v61  ;;  %2248 = vst.msk [vmem:[#allocation2 + $0xb8] sm:$0xff] %vm1550_vm0, %v1789_v61  ;;  %v1832_v55 = vmul.f32 1.442695, %v1807_v46 }
 0x3b8   : > { %v1828_v47 = vmul.f32 1.442695, %v1805_v62  ;;  %1908 = vperm.xlu2 %3353, %v4632_v32  }
 0x3ba   : > { %3428 = vpow2.f32 %v1828_v47 }
 0x3bb   : > { %3430 = vpow2.f32 %v1834_v38 }
 0x3bc   : > { %3432 = vpow2.f32 %v1840_v13 }
 0x3c0   : > { %v3429_v28 = vpop.eup %3428  ;;  %1868 = vperm.xlu2 %3353, %v4660_v44   ;;  %v1798_v44 = vsub.f32 %v4473_v36, %v4478_v5  ;;  %v1803_v36 = vsub.f32 %v4665_v42, %v4670_v8  ;;  %v1927_v5 = vsub.f32 %v4409_v19, %v1854_v12 }
 0x3c1   : > { %2036 = vperm.xlu1 %3352, %v3429_v28   ;;  %v3431_v29 = vpop.eup %3430 }
 0x3c2   : > { %v3433_v43 = vpop.eup %3432  ;;  %v1814_v60 = vmul.f32 1.442695, %v1798_v44  ;;  %v1824_v50 = vmul.f32 1.442695, %v1803_v36  ;;  %v1944_v9 = vmul.f32 1.442695, %v1927_v5 }
 0x3c4   : > { %3434 = vpow2.f32 %v1814_v60 }
 0x3c5   : > { %3436 = vpow2.f32 %v1818_v51 }
 0x3c6   : > { %3438 = vpow2.f32 %v1820_v37 }
 0x3c7   : > { %3440 = vpow2.f32 %v1824_v50 }
 0x3c8   : > { %1873 = vperm.xlu2 %3353, %v4670_v8   ;;  %v1806_v8 = vsub.f32 %v4482_v18, %v4489_v30  ;;  %3442 = vpow2.f32 %v1944_v9  ;;  %v1809_v18 = vsub.f32 %v4509_v15, %v4518_v17  ;;  %v1810_v15 = vsub.f32 %v4626_v0, %v4632_v32 }
 0x3c9   : > { %2051 = vperm.xlu1 %3352, %v3431_v29  }
 0x3ca   : > { %v3435_v16 = vpop.eup %3434  ;;  %v1830_v19 = vmul.f32 1.442695, %v1806_v8  ;;  %v1836_v22 = vmul.f32 1.442695, %v1809_v18  ;;  %v1838_v45 = vmul.f32 1.442695, %v1810_v15 }
 0x3cb   : > { %v3437_v42 = vpop.eup %3436 }
 0x3cc   : > { %v3439_v14 = vpop.eup %3438 }
 0x3cd   : > { %v3441_v34 = vpop.eup %3440 }
 0x3d1   : > { %2066 = vperm.xlu1 %3352, %v3433_v43  }
 0x3eb   : > { %v1779_v39 = vpop.xlane.xlu2 %1778 }
 0x3ec   : > { %v4708_v41 = vmax.f32 %v4705_v10, %v1779_v39 }
 0x3ee   : > { %2255 = vst.msk [vmem:[#allocation2 + $0xf0] sm:$0xff] %vm1550_vm0, %v4708_v41  ;;  %1918 = vperm.xlu0 %3351, %v4708_v41   ;;  %v1812_v54 = vsub.f32 %v4705_v10, %v4708_v41 }
 0x3f0   : > { %v1842_v38 = vmul.f32 1.442695, %v1812_v54 }
 0x3f3   : > { %v1781_v7 = vpop.xlane.xlu2 %1780 }
 0x3f4   : > { %v4720_v33 = vmax.f32 %v4717_v52, %v1781_v7 }
 0x3f6   : > { %2256 = vst.msk [vmem:[#allocation2 + $0xf8] sm:$0xff] %vm1550_vm0, %v4720_v33  ;;  %1923 = vperm.xlu2 %3353, %v4720_v33   ;;  %1883 = vperm.xlu0 %3351, %v1789_v61   ;;  %v1813_v10 = vsub.f32 %v4717_v52, %v4720_v33 }
 0x3f8   : > { %v1844_v35 = vmul.f32 1.442695, %v1813_v10  ;;  %v3106_v10 = vld [vmem:[%s3912_s12 + $0x88] sm:$0xff] }
 0x3fb   : > { %v1849_v27 = vpop.permute.xlu2 %1848 }
 0x3fc   : > { %v1926_v26 = vsub.f32 %v4382_v40, %v1849_v27  ;;  %v3443_v40 = vpop.eup %3442 }
 0x3fe   : > { %v1942_v24 = vmul.f32 1.442695, %v1926_v26  ;;  %2001 = vperm.xlu2 %3353, %v3435_v16   ;;  %2011 = vperm.xlu0 %3351, %v3437_v42  }
 0x400   : > { %3444 = vpow2.f32 %v1942_v24 }
 0x401   : > { %3446 = vpow2.f32 %v1830_v19 }
 0x402   : > { %3448 = vpow2.f32 %v1826_v56 }
 0x403   : > { %v1899_v59 = vpop.permute.xlu2 %1898  ;;  %3450 = vpow2.f32 %v1832_v55 }
 0x404   : > { %v1936_v30 = vsub.f32 %v4403_v1, %v1899_v59  ;;  %3452 = vpow2.f32 %v1836_v22  ;;  %v1929_v1 = vsub.f32 %v4454_v2, %v1864_v3 }
 0x406   : > { %v3445_v57 = vpop.eup %3444  ;;  %2016 = vperm.xlu2 %3353, %v3439_v14   ;;  %2026 = vperm.xlu0 %3351, %v3441_v34   ;;  %v1962_v49 = vmul.f32 1.442695, %v1936_v30  ;;  %v1948_v46 = vmul.f32 1.442695, %v1929_v1 }
 0x407   : > { %v1974_v12 = vpack.c.bf16 %v3443_v40, %v3445_v57  ;;  %v3447_v61 = vpop.eup %3446  ;;  %v1879_v57 = vpop.permute.xlu1 %1878 }
 0x408   : > { %v3449_v47 = vpop.eup %3448  ;;  %3454 = vpow2.f32 %v1962_v49 }
 0x409   : > { %2168 = vmatmul.bf16.vlgmr.msra.gmra.mxu1 %v1974_v12  ;;  %v3451_v58 = vpop.eup %3450 }
 0x40a   : > { %v3453_v13 = vpop.eup %3452 }
 0x40b   : > { %v1904_v25 = vpop.permute.xlu2 %1903 }
 0x40c   : > { %v1937_v62 = vsub.f32 %v4414_v23, %v1904_v25  ;;  %v1914_v23 = vpop.permute.xlu0 %1913 }
 0x40d   : > { %v1939_v29 = vsub.f32 %v4557_v53, %v1914_v23  ;;  %v3113_v23 = vld [vmem:[%s3912_s12 + $0xc0] sm:$0xff] }
 0x40e   : > { %v1964_v17 = vmul.f32 1.442695, %v1937_v62  ;;  %2041 = vperm.xlu0 %3351, %v3447_v61   ;;  %2031 = vperm.xlu2 %3353, %v3449_v47   ;;  %v3455_v32 = vpop.eup %3454 }
 0x40f   : > { %v1968_v41 = vmul.f32 1.442695, %v1939_v29 }
 0x410   : > { %3456 = vpow2.f32 %v1964_v17 }
 0x411   : > { %3458 = vpow2.f32 %v1838_v45  ;;  %v2189_v12 = vpop.f32.mrf.mxu3 }
 0x412   : > { %3460 = vpow2.f32 %v1948_v46 }
 0x413   : > { %v1859_v28 = vpop.permute.xlu2 %1858  ;;  %3462 = vpow2.f32 %v1842_v38 }
 0x414   : > { %v1928_v0 = vsub.f32 %v4419_v4, %v1859_v28 }
 0x416   : > { %v3457_v2 = vpop.eup %3456  ;;  %v1946_v43 = vmul.f32 1.442695, %v1928_v0  ;;  %2056 = vperm.xlu0 %3351, %v3453_v13   ;;  %2046 = vperm.xlu2 %3353, %v3451_v58   ;;  %v2007_v58 = vpop.permute.xlu1 %2006  ;;  %v3105_v13 = vld [vmem:[%s3912_s12 + $0x80] sm:$0xff] }
 0x417   : > { %v1979_v39 = vpack.c.bf16 %v3457_v2, %v3455_v32  ;;  %v3459_v44 = vpop.eup %3458 }
 0x418   : > { %3464 = vpow2.f32 %v1946_v43  ;;  %v3461_v60 = vpop.eup %3460 }
 0x419   : > { %2193 = vmatmul.bf16.gmra.mxu3 %v1979_v39  ;;  %v3463_v7 = vpop.eup %3462  ;;  %3466 = vpow2.f32 %v1968_v41  ;;  %v2191_v17 = vpop.f32.mrf.mxu3  ;;  %v2080_v39 = vmul.f32 %v3106_v10, %v2007_v58 }
 0x41a   : > { %3468 = vpow2.f32 %v1844_v35 }
 0x41b   : > { %v1909_v4 = vpop.permute.xlu2 %1908 }
 0x41c   : > { %v1938_v51 = vsub.f32 %v4544_v21, %v1909_v4  ;;  %v3115_v4 = vld [vmem:[%s3912_s12 + $0xd0] sm:$0xff] }
 0x41e   : > { %v3465_v36 = vpop.eup %3464  ;;  %v1966_v53 = vmul.f32 1.442695, %v1938_v51  ;;  %2071 = vperm.xlu0 %3351, %v3463_v7   ;;  %2061 = vperm.xlu2 %3353, %v3459_v44   ;;  %v2022_v2 = vpop.permute.xlu1 %2021  ;;  %v3107_v51 = vld [vmem:[%s3912_s12 + $0x90] sm:$0xff] }
 0x41f   : > { %v1975_v5 = vpack.c.bf16 %v3461_v60, %v3465_v36  ;;  %v3467_v33 = vpop.eup %3466 }
 0x420   : > { %3470 = vpow2.f32 %v1966_v53  ;;  %v3469_v37 = vpop.eup %3468 }
 0x421   : > { %2173 = vmatmul.bf16.gmra.mxu1 %v1975_v5 }
 0x423   : > { %v1869_v52 = vpop.permute.xlu2 %1868 }
 0x424   : > { %v1930_v9 = vsub.f32 %v4574_v31, %v1869_v52 }
 0x426   : > { %v3471_v50 = vpop.eup %3470  ;;  %2076 = vperm.xlu2 %3353, %v3469_v37   ;;  %v1950_v21 = vmul.f32 1.442695, %v1930_v9  ;;  %v3116_v37 = vld [vmem:[%s3912_s12 + $0xd8] sm:$0xff] }
 0x427   : > { %v1980_v27 = vpack.c.bf16 %v3467_v33, %v3471_v50  ;;  %v3108_v9 = vld [vmem:[%s3912_s12 + $0x98] sm:$0xff] }
 0x428   : > { %3472 = vpow2.f32 %v1950_v21 }
 0x429   : > { %2198 = vmatmul.bf16.gmra.mxu3 %v1980_v27 }
 0x42b   : > { %v1874_v16 = vpop.permute.xlu2 %1873 }
 0x42c   : > { %v1931_v26 = vsub.f32 %v4585_v63, %v1874_v16  ;;  %v1932_v63 = vsub.f32 %v4561_v20, %v1879_v57  ;;  %v3109_v57 = vld [vmem:[%s3912_s12 + $0xa0] sm:$0xff] }
 0x42e   : > { %v1952_v42 = vmul.f32 1.442695, %v1931_v26  ;;  %v3473_v8 = vpop.eup %3472  ;;  %v1954_v55 = vmul.f32 1.442695, %v1932_v63 }
 0x430   : > { %3474 = vpow2.f32 %v1952_v42 }
 0x433   : > { %v4771_v41 = vpop.permute.xlu1 %2036 }
 0x436   : > { %v3475_v24 = vpop.eup %3474 }
 0x437   : > { %v1976_v19 = vpack.c.bf16 %v3475_v24, %v3473_v8  ;;  %v3117_v24 = vld [vmem:[%s3912_s12 + $0xe0] sm:$0xff] }
 0x439   : > { %2178 = vmatmul.bf16.gmra.mxu1 %v1976_v19 }
 0x43b   : > { %v2052_v60 = vpop.permute.xlu1 %2051 }
 0x43c   : > { %v2089_v7 = vmul.f32 %v3115_v4, %v2052_v60 }
 0x450   : > { %v1924_v14 = vpop.permute.xlu2 %1923 }
 0x451   : > { %v1941_v59 = vsub.f32 %v4688_v6, %v1924_v14 }
 0x453   : > { %v1972_v34 = vmul.f32 1.442695, %v1941_v59 }
 0x455   : > { %3476 = vpow2.f32 %v1972_v34  ;;  %v3118_v34 = vld [vmem:[%s3912_s12 + $0xe8] sm:$0xff] }
 0x458   : > { %v2002_v56 = vpop.permute.xlu2 %2001 }
 0x459   : > { %v2079_v32 = vmul.f32 %v3105_v13, %v2002_v56 }
 0x45b   : > { %v3477_v49 = vpop.eup %3476 }
 0x460   : > { %v4757_v40 = vpop.permute.xlu2 %2016  ;;  %v1919_v31 = vpop.permute.xlu0 %1918 }
 0x461   : > { %v1940_v18 = vsub.f32 %v4680_v48, %v1919_v31  ;;  %v3114_v48 = vld [vmem:[%s3912_s12 + $0xc8] sm:$0xff]  ;;  %v2082_v16 = vmul.f32 %v3108_v9, %v4757_v40  ;;  %v2067_v31 = vpop.permute.xlu1 %2066 }
 0x462   : > { %v2092_v40 = vmul.f32 %v3118_v34, %v2067_v31 }
 0x463   : > { %v1970_v30 = vmul.f32 1.442695, %v1940_v18 }
 0x465   : > { %3478 = vpow2.f32 %v1970_v30  ;;  %v2083_v30 = vmul.f32 %v3109_v57, %v2022_v2 }
 0x466   : > { %3480 = vpow2.f32 %v1954_v55 }
 0x468   : > { %v1884_v22 = vpop.permute.xlu0 %1883  ;;  %v4761_v3 = vpop.permute.xlu2 %2031 }
 0x469   : > { %v1933_v6 = vsub.f32 %v4623_v11, %v1884_v22  ;;  %v3110_v22 = vld [vmem:[%s3912_s12 + $0xa8] sm:$0xff] }
 0x46b   : > { %v3479_v25 = vpop.eup %3478  ;;  %v1956_v61 = vmul.f32 1.442695, %v1933_v6 }
 0x46c   : > { %v1981_v62 = vpack.c.bf16 %v3477_v49, %v3479_v25  ;;  %v3481_v1 = vpop.eup %3480 }
 0x46d   : > { %3482 = vpow2.f32 %v1956_v61  ;;  %v3119_v61 = vld [vmem:[%s3912_s12 + $0xf0] sm:$0xff] }
 0x46e   : > { %2203 = vmatmul.bf16.gmra.mxu3 %v1981_v62 }
 0x470   : > { %v2012_v20 = vpop.permute.xlu0 %2011  ;;  %v2047_v47 = vpop.permute.xlu2 %2046 }
 0x471   : > { %v2088_v15 = vmul.f32 %v3114_v48, %v2047_v47  ;;  %v2081_v53 = vmul.f32 %v3107_v51, %v2012_v20  ;;  %v3111_v48 = vld [vmem:[%s3912_s12 + $0xb0] sm:$0xff] }
 0x473   : > { %v3483_v54 = vpop.eup %3482  ;;  %v2218_v45 = vadd.f32 %v2191_v17, %v2088_v15  ;;  %v2085_v15 = vmul.f32 %v3111_v48, %v4761_v3 }
 0x474   : > { %v1977_v11 = vpack.c.bf16 %v3483_v54, %v3481_v1 }
 0x475   : > { %3178 = vst [vmem:[%s3912_s12 + $0xc8] sm:$0xff] %v2218_v45  ;;  %v3120_v45 = vld [vmem:[%s3912_s12 + $0xf8] sm:$0xff] }
 0x476   : > { %2183 = vmatmul.bf16.gmra.mxu1 %v1977_v11 }
 0x478   : > { %v2027_v46 = vpop.permute.xlu0 %2026  ;;  %v2062_v19 = vpop.permute.xlu2 %2061 }
 0x479   : > { %v2091_v14 = vmul.f32 %v3117_v24, %v2062_v19  ;;  %v2084_v6 = vmul.f32 %v3110_v22, %v2027_v46  ;;  %v3112_v46 = vld [vmem:[%s3912_s12 + $0xb8] sm:$0xff] }
 0x480   : > { %v2042_v38 = vpop.permute.xlu0 %2041  ;;  %v2077_v11 = vpop.permute.xlu2 %2076 }
 0x481   : > { %v2087_v28 = vmul.f32 %v3113_v23, %v2042_v38  ;;  %v2094_v58 = vmul.f32 %v3120_v45, %v2077_v11  ;;  %v2086_v38 = vmul.f32 %v3112_v46, %v4771_v41 }
 0x483   : > { %v2217_v0 = vadd.f32 %v2189_v12, %v2087_v28 }
 0x485   : > { %3177 = vst [vmem:[%s3912_s12 + $0xc0] sm:$0xff] %v2217_v0 }
 0x486   : > { %v2169_v29 = vpop.f32.mrf.mxu1 }
 0x487   : > { %v2209_v43 = vadd.f32 %v2169_v29, %v2079_v32 }
 0x488   : > { %v2057_v50 = vpop.permute.xlu0 %2056 }
 0x489   : > { %3169 = vst [vmem:[%s3912_s12 + $0x80] sm:$0xff] %v2209_v43  ;;  %v2090_v27 = vmul.f32 %v3116_v37, %v2057_v50 }
 0x48e   : > { %v2171_v44 = vpop.f32.mrf.mxu1 }
 0x48f   : > { %v2210_v35 = vadd.f32 %v2171_v44, %v2080_v39 }
 0x490   : > { %v2072_v62 = vpop.permute.xlu0 %2071 }
 0x491   : > { %3170 = vst [vmem:[%s3912_s12 + $0x88] sm:$0xff] %v2210_v35  ;;  %v2093_v20 = vmul.f32 %v3119_v61, %v2072_v62 }
 0x49c   : > { %v2194_v36 = vpop.f32.mrf.mxu3 }
 0x49d   : > { %v2219_v5 = vadd.f32 %v2194_v36, %v2089_v7 }
 0x49e   : > { %v2174_v52 = vpop.f32.mrf.mxu1 }
 0x49f   : > { %3179 = vst [vmem:[%s3912_s12 + $0xd0] sm:$0xff] %v2219_v5  ;;  %v2211_v33 = vadd.f32 %v2174_v52, %v2081_v53 }
 0x4a1   : > { %3171 = vst [vmem:[%s3912_s12 + $0x90] sm:$0xff] %v2211_v33 }
 0x4a4   : > { %v2196_v21 = vpop.f32.mrf.mxu3 }
 0x4a5   : > { %v2220_v26 = vadd.f32 %v2196_v21, %v2090_v27 }
 0x4a6   : > { %v2176_v42 = vpop.f32.mrf.mxu1 }
 0x4a7   : > { %3180 = vst [vmem:[%s3912_s12 + $0xd8] sm:$0xff] %v2220_v26  ;;  %v2212_v8 = vadd.f32 %v2176_v42, %v2082_v16 }
 0x4a9   : > { %3172 = vst [vmem:[%s3912_s12 + $0x98] sm:$0xff] %v2212_v8 }
 0x4ac   : > { %v2199_v56 = vpop.f32.mrf.mxu3 }
 0x4ad   : > { %v2221_v59 = vadd.f32 %v2199_v56, %v2091_v14 }
 0x4af   : > { %3181 = vst [vmem:[%s3912_s12 + $0xe0] sm:$0xff] %v2221_v59 }
 0x4b4   : > { %v2201_v18 = vpop.f32.mrf.mxu3 }
 0x4b5   : > { %v2222_v63 = vadd.f32 %v2201_v18, %v2092_v40 }
 0x4b6   : > { %v2179_v12 = vpop.f32.mrf.mxu1 }
 0x4b7   : > { %3182 = vst [vmem:[%s3912_s12 + $0xe8] sm:$0xff] %v2222_v63  ;;  %v2213_v55 = vadd.f32 %v2179_v12, %v2083_v30 }
 0x4b9   : > { %3173 = vst [vmem:[%s3912_s12 + $0xa0] sm:$0xff] %v2213_v55 }
 0x4be   : > { %v2181_v49 = vpop.f32.mrf.mxu1 }
 0x4bf   : > { %v2214_v25 = vadd.f32 %v2181_v49, %v2084_v6 }
 0x4c1   : > { %3174 = vst [vmem:[%s3912_s12 + $0xa8] sm:$0xff] %v2214_v25 }
 0x4f1   : > { %v2204_v47 = vpop.f32.mrf.mxu3 }
 0x4f2   : > { %v2223_v1 = vadd.f32 %v2204_v47, %v2093_v20 }
 0x4f3   : > { %v2184_v17 = vpop.f32.mrf.mxu1 }
 0x4f4   : > { %3183 = vst [vmem:[%s3912_s12 + $0xf0] sm:$0xff] %v2223_v1  ;;  %v2215_v54 = vadd.f32 %v2184_v17, %v2085_v15 }
 0x4f6   : > { %3175 = vst [vmem:[%s3912_s12 + $0xb0] sm:$0xff] %v2215_v54 }
 0x4f9   : > { %v2206_v23 = vpop.f32.mrf.mxu3 }
 0x4fa   : > { %v2224_v28 = vadd.f32 %v2206_v23, %v2094_v58  ;;  %2260 = sbr.rel (%p3185_p5) target bundleno = 1588 (0x634), region = 195 }
 0x4fb   : > { %v2186_v13 = vpop.f32.mrf.mxu1 }
 0x4fc   : > { %3184 = vst [vmem:[%s3912_s12 + $0xf8] sm:$0xff] %v2224_v28  ;;  %v2216_v0 = vadd.f32 %v2186_v13, %v2086_v38 }
 0x4fe   : > { %3176 = vst [vmem:[%s3912_s12 + $0xb8] sm:$0xff] %v2216_v0 }
 0x4ff   : > { %v2277_v3 = vlaneseq  ;;  %v4803_v32 = vld [vmem:[%s3912_s12 + $0x20] sm:$0xff]  ;;  %v4808_v29 = vld [vmem:[%s3912_s12 + $0x10] sm:$0xff]  ;;  %v4824_v44 = vld [vmem:[%s3912_s12 + $0x28] sm:$0xff]  ;;  %v3642_v61 = vmov 0  }
 0x500   : > { %v4811_v43 = vld [vmem:[%s3912_s12] sm:$0xff]  ;;  %v4827_v35 = vld [vmem:[%s3912_s12 + $0x18] sm:$0xff]  ;;  %v4830_v4 = vld [vmem:[%s3912_s12 + $0x8] sm:$0xff]  ;;  %3484 = vset.pattern.permute.xlu1 %v3642_v61  ;;  %3486 = vset.pattern.permute.xlu0 %v3642_v61 }
 0x501   : > { %v4805_v2 = vand.u32 127, %v2277_v3  ;;  %v4842_v36 = vld [vmem:[%s3912_s12 + $0x40] sm:$0xff]  ;;  %v4845_v53 = vld [vmem:[%s3912_s12 + $0x38] sm:$0xff]  ;;  %v4848_v5 = vld [vmem:[%s3912_s12 + $0x30] sm:$0xff]  ;;  %3485 = vset.pattern.permute.xlu2 %v3642_v61 }
 0x502   : > { %v4860_v50 = vld [vmem:[%s3912_s12 + $0x58] sm:$0xff]  ;;  %v4863_v9 = vld [vmem:[%s3912_s12 + $0x50] sm:$0xff]  ;;  %v4866_v27 = vld [vmem:[%s3912_s12 + $0x48] sm:$0xff] }
 0x503   : > { %vm2279_vm10 = vcmp.eq.s32.totalorder %v4805_v2, 32  ;;  %v4878_v42 = vld [vmem:[%s3912_s12 + $0x70] sm:$0xff]  ;;  %v4881_v8 = vld [vmem:[%s3912_s12 + $0x68] sm:$0xff]  ;;  %v4884_v24 = vld [vmem:[%s3912_s12 + $0x60] sm:$0xff] }
 0x504   : > { %v2284_v10 = vsel %vm2279_vm10, %v4803_v32, -inf  ;;  %v2282_v39 = vsel %vm2279_vm10, %v4808_v29, -inf  ;;  %v2280_v41 = vsel %vm2279_vm10, %v4811_v43, -inf  ;;  %v2285_v60 = vsel %vm2279_vm10, %v4824_v44, -inf  ;;  %v4896_v59 = vld [vmem:[%s3912_s12 + $0x80] sm:$0xff]  ;;  %v4899_v34 = vld [vmem:[%s3912_s12 + $0x88] sm:$0xff] }
 0x505   : > { %2304 = vmax.xlane.f32.xlu2 %v2284_v10  ;;  %2300 = vmax.xlane.f32.xlu1 %v2282_v39  ;;  %v2283_v51 = vsel %vm2279_vm10, %v4827_v35, -inf  ;;  %v2281_v7 = vsel %vm2279_vm10, %v4830_v4, -inf  ;;  %v2288_v52 = vsel %vm2279_vm10, %v4842_v36, -inf  ;;  %v2287_v33 = vsel %vm2279_vm10, %v4845_v53, -inf  ;;  %v4902_v31 = vld [vmem:[%s3912_s12 + $0x78] sm:$0xff]  ;;  %v4917_v63 = vld [vmem:[%s3912_s12 + $0xa0] sm:$0xff] }
 0x506   : > { %2296 = vmax.xlane.f32.xlu0 %v2280_v41  ;;  %v2286_v37 = vsel %vm2279_vm10, %v4848_v5, -inf  ;;  %v2291_v21 = vsel %vm2279_vm10, %v4860_v50, -inf  ;;  %v2290_v16 = vsel %vm2279_vm10, %v4863_v9, -inf  ;;  %v2289_v26 = vsel %vm2279_vm10, %v4866_v27, -inf  ;;  %v4914_v30 = vld [vmem:[%s3912_s12 + $0x98] sm:$0xff]  ;;  %v4920_v12 = vld [vmem:[%s3912_s12 + $0x90] sm:$0xff] }
 0x507   : > { %v2294_v19 = vsel %vm2279_vm10, %v4878_v42, -inf  ;;  %v2293_v14 = vsel %vm2279_vm10, %v4881_v8, -inf  ;;  %v2292_v56 = vsel %vm2279_vm10, %v4884_v24, -inf  ;;  %v2520_v57 = vsel %vm2279_vm10, %v4896_v59, -inf  ;;  %v4932_v49 = vld [vmem:[%s3912_s12 + $0xa8] sm:$0xff]  ;;  %v4935_v25 = vld [vmem:[%s3912_s12 + $0xb8] sm:$0xff] }
 0x508   : > { %v2521_v40 = vsel %vm2279_vm10, %v4899_v34, -inf  ;;  %v2295_v18 = vsel %vm2279_vm10, %v4902_v31, -inf  ;;  %v2523_v55 = vsel %vm2279_vm10, %v4914_v30, -inf  ;;  %v2524_v22 = vsel %vm2279_vm10, %v4917_v63, -inf  ;;  %v4940_v62 = vld [vmem:[%s3912_s12 + $0xb0] sm:$0xff]  ;;  %v4953_v15 = vld [vmem:[%s3912_s12 + $0xc0] sm:$0xff] }
 0x509   : > { %v2522_v6 = vsel %vm2279_vm10, %v4920_v12, -inf  ;;  %v2525_v48 = vsel %vm2279_vm10, %v4932_v49, -inf  ;;  %v2527_v20 = vsel %vm2279_vm10, %v4935_v25, -inf  ;;  %v2526_v47 = vsel %vm2279_vm10, %v4940_v62, -inf  ;;  %v4956_v1 = vld [vmem:[%s3912_s12 + $0xd0] sm:$0xff]  ;;  %v4959_v17 = vld [vmem:[%s3912_s12 + $0xc8] sm:$0xff] }
 0x50a   : > { %5373 = vst [vmem:[#allocation18_spill] sm:$0xff] %v4959_v17  ;;  %v2528_v54 = vsel %vm2279_vm10, %v4953_v15, -inf  ;;  %v2530_v45 = vsel %vm2279_vm10, %v4956_v1, -inf  ;;  %v2529_v11 = vsel %vm2279_vm10, %v4959_v17, -inf  ;;  %v4971_v46 = vld [vmem:[%s3912_s12 + $0xd8] sm:$0xff]  ;;  %v4974_v58 = vld [vmem:[%s3912_s12 + $0xe8] sm:$0xff] }
 0x50b   : > { %5374 = vst [vmem:[#allocation19_spill] sm:$0xff] %v4974_v58  ;;  %v4977_v23 = vld [vmem:[%s3912_s12 + $0xe0] sm:$0xff]  ;;  %v2531_v38 = vsel %vm2279_vm10, %v4971_v46, -inf  ;;  %v2533_v28 = vsel %vm2279_vm10, %v4974_v58, -inf  ;;  %v4989_v0 = vld [vmem:[%s3912_s12 + $0xf0] sm:$0xff]  ;;  %v4992_v3 = vld [vmem:[%s3912_s12 + $0xf8] sm:$0xff] }
 0x50c   : > { %5375 = vst [vmem:[#allocation20_spill] sm:$0xff] %v4977_v23  ;;  %v2532_v13 = vsel %vm2279_vm10, %v4977_v23, -inf  ;;  %v2534_v10 = vsel %vm2279_vm10, %v4989_v0, -inf  ;;  %v2535_v39 = vsel %vm2279_vm10, %v4992_v3, -inf  ;;  %v2344_v41 = vld [vmem:[#allocation2] sm:$0xff] }
 0x50d   : > { %2306 = vmax.xlane.f32.xlu2 %v2285_v60  ;;  %2302 = vmax.xlane.f32.xlu1 %v2283_v51  ;;  %5376 = vst [vmem:[#allocation21_spill] sm:$0xff] %v4989_v0  ;;  %vm2360_vm11 = vcmp.gt.f32.partialorder %v2344_v41, -4.5e+15  ;;  %v2346_v60 = vld [vmem:[#allocation2 + $0x10] sm:$0xff] }
 0x50e   : > { %2298 = vmax.xlane.f32.xlu0 %v2281_v7  ;;  %5377 = vst [vmem:[#allocation22_spill] sm:$0xff] %v4992_v3  ;;  %v2392_v51 = vsel %vm2360_vm11, 1, %v3642_v61  ;;  %vm2362_vm15 = vcmp.gt.f32.partialorder %v2346_v60, -4.5e+15  ;;  %v2345_v7 = vld [vmem:[#allocation2 + $0x8] sm:$0xff] }
 0x50f   : > { %vm2361_vm1 = vcmp.gt.f32.partialorder %v2345_v7, -4.5e+15  ;;  %v2358_v7 = vld [vmem:[#allocation2 + $0x70] sm:$0xff] }
 0x510   : > { %v2393_v2 = vsel %vm2361_vm1, 1, %v3642_v61  ;;  %vm2374_vm10 = vcmp.gt.f32.partialorder %v2358_v7, -4.5e+15  ;;  %v2589_v7 = vld [vmem:[#allocation2 + $0xa8] sm:$0xff] }
 0x515   : > { %2312 = vmax.xlane.f32.xlu2 %v2288_v52  ;;  %2310 = vmax.xlane.f32.xlu1 %v2287_v33  ;;  %v2348_v52 = vld [vmem:[#allocation2 + $0x20] sm:$0xff]  ;;  %v2394_v33 = vsel %vm2362_vm15, 1, %v3642_v61 }
 0x516   : > { %2308 = vmax.xlane.f32.xlu0 %v2286_v37  ;;  %vm2364_vm4 = vcmp.gt.f32.partialorder %v2348_v52, -4.5e+15  ;;  %v2353_v37 = vld [vmem:[#allocation2 + $0x48] sm:$0xff] }
 0x517   : > { %vm2369_vm5 = vcmp.gt.f32.partialorder %v2353_v37, -4.5e+15  ;;  %v2588_v37 = vld [vmem:[#allocation2 + $0xa0] sm:$0xff] }
 0x518   : > { %vm2604_vm11 = vcmp.gt.f32.partialorder %v2588_v37, -4.5e+15 }
 0x51d   : > { %2318 = vmax.xlane.f32.xlu2 %v2291_v21  ;;  %2316 = vmax.xlane.f32.xlu1 %v2290_v16  ;;  %v2396_v21 = vsel %vm2364_vm4, 1, %v3642_v61  ;;  %v2347_v16 = vld [vmem:[#allocation2 + $0x18] sm:$0xff] }
 0x51e   : > { %2314 = vmax.xlane.f32.xlu0 %v2289_v26  ;;  %v2350_v26 = vld [vmem:[#allocation2 + $0x30] sm:$0xff]  ;;  %vm2363_vm6 = vcmp.gt.f32.partialorder %v2347_v16, -4.5e+15 }
 0x51f   : > { %vm2366_vm13 = vcmp.gt.f32.partialorder %v2350_v26, -4.5e+15  ;;  %v2406_v26 = vsel %vm2374_vm10, 1, %v3642_v61 }
 0x525   : > { %2324 = vmax.xlane.f32.xlu2 %v2294_v19  ;;  %2322 = vmax.xlane.f32.xlu1 %v2293_v14  ;;  %v2401_v19 = vsel %vm2369_vm5, 1, %v3642_v61  ;;  %v2356_v14 = vld [vmem:[#allocation2 + $0x60] sm:$0xff] }
 0x526   : > { %2320 = vmax.xlane.f32.xlu0 %v2292_v56  ;;  %v2395_v56 = vsel %vm2363_vm6, 1, %v3642_v61  ;;  %vm2372_vm14 = vcmp.gt.f32.partialorder %v2356_v14, -4.5e+15  ;;  %v2584_v14 = vld [vmem:[#allocation2 + $0x80] sm:$0xff] }
 0x527   : > { %vm2600_vm1 = vcmp.gt.f32.partialorder %v2584_v14, -4.5e+15 }
 0x52d   : > { %2536 = vmax.xlane.f32.xlu2 %v2520_v57  ;;  %2538 = vmax.xlane.f32.xlu1 %v2521_v40  ;;  %v2398_v57 = vsel %vm2366_vm13, 1, %v3642_v61  ;;  %v2349_v40 = vld [vmem:[#allocation2 + $0x28] sm:$0xff] }
 0x52e   : > { %2326 = vmax.xlane.f32.xlu0 %v2295_v18  ;;  %v2352_v18 = vld [vmem:[#allocation2 + $0x40] sm:$0xff]  ;;  %vm2365_vm3 = vcmp.gt.f32.partialorder %v2349_v40, -4.5e+15  ;;  %v2591_v40 = vld [vmem:[#allocation2 + $0xb8] sm:$0xff] }
 0x52f   : > { %vm2368_vm7 = vcmp.gt.f32.partialorder %v2352_v18, -4.5e+15  ;;  %vm2607_vm4 = vcmp.gt.f32.partialorder %v2591_v40, -4.5e+15 }
 0x535   : > { %2542 = vmax.xlane.f32.xlu2 %v2523_v55  ;;  %2544 = vmax.xlane.f32.xlu1 %v2524_v22  ;;  %v2404_v55 = vsel %vm2372_vm14, 1, %v3642_v61  ;;  %vm2605_vm14 = vcmp.gt.f32.partialorder %v2589_v7, -4.5e+15  ;;  %v2595_v7 = vld [vmem:[#allocation2 + $0xd8] sm:$0xff] }
 0x536   : > { %2540 = vmax.xlane.f32.xlu0 %v2522_v6 }
 0x53d   : > { %2546 = vmax.xlane.f32.xlu2 %v2525_v48  ;;  %2550 = vmax.xlane.f32.xlu1 %v2527_v20  ;;  %v2359_v48 = vld [vmem:[#allocation2 + $0x78] sm:$0xff] }
 0x53e   : > { %2548 = vmax.xlane.f32.xlu0 %v2526_v47  ;;  %v2397_v47 = vsel %vm2365_vm3, 1, %v3642_v61  ;;  %vm2375_vm9 = vcmp.gt.f32.partialorder %v2359_v48, -4.5e+15  ;;  %v2632_v48 = vsel %vm2600_vm1, 1, %v3642_v61 }
 0x545   : > { %2552 = vmax.xlane.f32.xlu2 %v2528_v54  ;;  %2556 = vmax.xlane.f32.xlu1 %v2530_v45  ;;  %v2400_v54 = vsel %vm2368_vm7, 1, %v3642_v61  ;;  %v2351_v45 = vld [vmem:[#allocation2 + $0x38] sm:$0xff] }
 0x546   : > { %2554 = vmax.xlane.f32.xlu0 %v2529_v11  ;;  %v2355_v11 = vld [vmem:[#allocation2 + $0x58] sm:$0xff]  ;;  %vm2367_vm0 = vcmp.gt.f32.partialorder %v2351_v45, -4.5e+15 }
 0x547   : > { %vm2371_vm2 = vcmp.gt.f32.partialorder %v2355_v11, -4.5e+15  ;;  %v2399_v41 = vsel %vm2367_vm0, 1, %v3642_v61  ;;  %v2587_v45 = vld [vmem:[#allocation2 + $0x98] sm:$0xff]  ;;  %v2639_v11 = vsel %vm2607_vm4, 1, %v3642_v61 }
 0x548   : > { %v2403_v60 = vsel %vm2371_vm2, 1, %v3642_v61  ;;  %vm2603_vm6 = vcmp.gt.f32.partialorder %v2587_v45, -4.5e+15  ;;  %vm2611_vm2 = vcmp.gt.f32.partialorder %v2595_v7, -4.5e+15 }
 0x54d   : > { %2558 = vmax.xlane.f32.xlu2 %v2531_v38  ;;  %2562 = vmax.xlane.f32.xlu1 %v2533_v28  ;;  %v2407_v38 = vsel %vm2375_vm9, 1, %v3642_v61 }
 0x54e   : > { %2560 = vmax.xlane.f32.xlu0 %v2532_v13 }
 0x555   : > { %2564 = vmax.xlane.f32.xlu2 %v2534_v10  ;;  %v2586_v10 = vld [vmem:[#allocation2 + $0x90] sm:$0xff] }
 0x556   : > { %2566 = vmax.xlane.f32.xlu0 %v2535_v39  ;;  %vm2602_vm12 = vcmp.gt.f32.partialorder %v2586_v10, -4.5e+15  ;;  %v2594_v10 = vld [vmem:[#allocation2 + $0xd0] sm:$0xff] }
 0x557   : > { %v2634_v52 = vsel %vm2602_vm12, 1, %v3642_v61  ;;  %vm2610_vm13 = vcmp.gt.f32.partialorder %v2594_v10, -4.5e+15 }
 0x566   : > { %2409 = vperm.xlu1 %3484, %v2392_v51   ;;  %v2354_v51 = vld [vmem:[#allocation2 + $0x50] sm:$0xff] }
 0x567   : > { %vm2370_vm8 = vcmp.gt.f32.partialorder %v2354_v51, -4.5e+15  ;;  %v2635_v51 = vsel %vm2603_vm6, 1, %v3642_v61 }
 0x568   : > { %v2402_v16 = vsel %vm2370_vm8, 1, %v3642_v61 }
 0x56a   : > { %2415 = vperm.xlu0 %3486, %v2394_v33  }
 0x56d   : > { %2412 = vperm.xlu2 %3485, %v2393_v2  }
 0x56e   : > { %2421 = vperm.xlu1 %3484, %v2396_v21  }
 0x572   : > { %2436 = vperm.xlu0 %3486, %v2401_v19   ;;  %v2357_v19 = vld [vmem:[#allocation2 + $0x68] sm:$0xff] }
 0x573   : > { %vm2373_vm15 = vcmp.gt.f32.partialorder %v2357_v19, -4.5e+15  ;;  %v2597_v19 = vld [vmem:[#allocation2 + $0xe8] sm:$0xff] }
 0x574   : > { %vm2613_vm7 = vcmp.gt.f32.partialorder %v2597_v19, -4.5e+15 }
 0x575   : > { %2418 = vperm.xlu2 %3485, %v2395_v56   ;;  %v2636_v56 = vsel %vm2604_vm11, 1, %v3642_v61 }
 0x576   : > { %2427 = vperm.xlu1 %3484, %v2398_v57  }
 0x578   : > { %v5008_v22 = vpop.xlane.xlu2 %2304  ;;  %v5010_v6 = vpop.xlane.xlu1 %2300 }
 0x579   : > { %v5012_v20 = vpop.xlane.xlu0 %2296 }
 0x57a   : > { %2445 = vperm.xlu0 %3486, %v2404_v55   ;;  %v2405_v55 = vsel %vm2373_vm15, 1, %v3642_v61 }
 0x57d   : > { %2424 = vperm.xlu2 %3485, %v2397_v47  }
 0x57e   : > { %2433 = vperm.xlu1 %3484, %v2400_v54   ;;  %v2585_v54 = vld [vmem:[#allocation2 + $0x88] sm:$0xff] }
 0x57f   : > { %vm2601_vm5 = vcmp.gt.f32.partialorder %v2585_v54, -4.5e+15  ;;  %v2645_v54 = vsel %vm2613_vm7, 1, %v3642_v61 }
 0x580   : > { %v5017_v28 = vpop.xlane.xlu2 %2306  ;;  %v5019_v13 = vpop.xlane.xlu1 %2302 }
 0x581   : > { %v5021_v39 = vpop.xlane.xlu0 %2298 }
 0x582   : > { %2454 = vperm.xlu0 %3486, %v2407_v38   ;;  %3487 = vrcp.f32 %v5021_v39 }
 0x583   : > { %3489 = vrcp.f32 %v5012_v20 }
 0x584   : > { %3491 = vrcp.f32 %v5019_v13 }
 0x585   : > { %2430 = vperm.xlu2 %3485, %v2399_v41   ;;  %3493 = vrcp.f32 %v5010_v6 }
 0x586   : > { %2442 = vperm.xlu1 %3484, %v2403_v60   ;;  %v2633_v60 = vsel %vm2601_vm5, 1, %v3642_v61  ;;  %3495 = vrcp.f32 %v5008_v22 }
 0x587   : > { %3497 = vrcp.f32 %v5017_v28 }
 0x588   : > { %v5026_v33 = vpop.xlane.xlu2 %2312  ;;  %v5030_v21 = vpop.xlane.xlu1 %2310 }
 0x589   : > { %v5028_v2 = vpop.xlane.xlu0 %2308 }
 0x58a   : > { %2655 = vperm.xlu0 %3486, %v2634_v52   ;;  %v2590_v52 = vld [vmem:[#allocation2 + $0xb0] sm:$0xff] }
 0x58b   : > { %vm2606_vm3 = vcmp.gt.f32.partialorder %v2590_v52, -4.5e+15  ;;  %v2596_v52 = vld [vmem:[#allocation2 + $0xe0] sm:$0xff] }
 0x58c   : > { %v2638_v40 = vsel %vm2606_vm3, 1, %v3642_v61  ;;  %vm2612_vm12 = vcmp.gt.f32.partialorder %v2596_v52, -4.5e+15 }
 0x58d   : > { %2439 = vperm.xlu2 %3485, %v2402_v16   ;;  %v2642_v16 = vsel %vm2610_vm13, 1, %v3642_v61 }
 0x58e   : > { %2451 = vperm.xlu1 %3484, %v2406_v26  }
 0x590   : > { %v5035_v57 = vpop.xlane.xlu2 %2318  ;;  %v5041_v47 = vpop.xlane.xlu1 %2316 }
 0x591   : > { %v5037_v18 = vpop.xlane.xlu0 %2314 }
 0x592   : > { %2661 = vperm.xlu0 %3486, %v2636_v56   ;;  %v2637_v56 = vsel %vm2605_vm14, 1, %v3642_v61  ;;  %3499 = vrcp.f32 %v5037_v18 }
 0x593   : > { %3501 = vrcp.f32 %v5030_v21 }
 0x594   : > { %3503 = vrcp.f32 %v5028_v2 }
 0x595   : > { %2448 = vperm.xlu2 %3485, %v2405_v55   ;;  %v2592_v55 = vld [vmem:[#allocation2 + $0xc0] sm:$0xff] }
 0x596   : > { %2649 = vperm.xlu1 %3484, %v2632_v48   ;;  %v2593_v48 = vld [vmem:[#allocation2 + $0xc8] sm:$0xff]  ;;  %vm2608_vm9 = vcmp.gt.f32.partialorder %v2592_v55, -4.5e+15 }
 0x597   : > { %vm2609_vm0 = vcmp.gt.f32.partialorder %v2593_v48, -4.5e+15  ;;  %v2640_v10 = vsel %vm2608_vm9, 1, %v3642_v61  ;;  %v2598_v48 = vld [vmem:[#allocation2 + $0xf0] sm:$0xff] }
 0x598   : > { %v5044_v38 = vpop.xlane.xlu2 %2324  ;;  %v5050_v37 = vpop.xlane.xlu1 %2322  ;;  %vm2614_vm8 = vcmp.gt.f32.partialorder %v2598_v48, -4.5e+15 }
 0x599   : > { %v5046_v41 = vpop.xlane.xlu0 %2320 }
 0x59a   : > { %2670 = vperm.xlu0 %3486, %v2639_v11   ;;  %3505 = vrcp.f32 %v5046_v41 }
 0x59b   : > { %3507 = vrcp.f32 %v5026_v33 }
 0x59c   : > { %3509 = vrcp.f32 %v5041_v47 }
 0x59d   : > { %2652 = vperm.xlu2 %3485, %v2633_v60  }
 0x59e   : > { %2658 = vperm.xlu1 %3484, %v2635_v51   ;;  %v2641_v51 = vsel %vm2609_vm0, 1, %v3642_v61 }
 0x5a0   : > { %v5053_v26 = vpop.xlane.xlu2 %2536  ;;  %v5060_v45 = vpop.xlane.xlu1 %2538 }
 0x5a1   : > { %v5055_v14 = vpop.xlane.xlu0 %2326 }
 0x5a2   : > { %2679 = vperm.xlu0 %3486, %v2642_v16   ;;  %3511 = vrcp.f32 %v5055_v14 }
 0x5a3   : > { %3513 = vrcp.f32 %v5035_v57 }
 0x5a4   : > { %3515 = vrcp.f32 %v5050_v37 }
 0x5a5   : > { %2664 = vperm.xlu2 %3485, %v2637_v56   ;;  %v2643_v56 = vsel %vm2611_vm2, 1, %v3642_v61 }
 0x5a6   : > { %2667 = vperm.xlu1 %3484, %v2638_v40   ;;  %v2644_v40 = vsel %vm2612_vm12, 1, %v3642_v61 }
 0x5a8   : > { %v5062_v11 = vpop.xlane.xlu2 %2542  ;;  %v5070_v19 = vpop.xlane.xlu1 %2544 }
 0x5a9   : > { %v5065_v60 = vpop.xlane.xlu0 %2540 }
 0x5aa   : > { %2688 = vperm.xlu0 %3486, %v2645_v54   ;;  %v2599_v54 = vld [vmem:[#allocation2 + $0xf8] sm:$0xff]  ;;  %3517 = vrcp.f32 %v5065_v60 }
 0x5ab   : > { %vm2615_vm10 = vcmp.gt.f32.partialorder %v2599_v54, -4.5e+15  ;;  %v3488_v54 = vpop.eup %3487  ;;  %3519 = vrcp.f32 %v5044_v38 }
 0x5ac   : > { %v2647_v7 = vsel %vm2615_vm10, 1, %v3642_v61  ;;  %v3490_v39 = vpop.eup %3489  ;;  %3521 = vrcp.f32 %v5060_v45 }
 0x5ad   : > { %2673 = vperm.xlu2 %3485, %v2640_v10  }
 0x5ae   : > { %2676 = vperm.xlu1 %3484, %v2641_v51   ;;  %v2646_v51 = vsel %vm2614_vm8, 1, %v3642_v61 }
 0x5b0   : > { %v5068_v16 = vpop.xlane.xlu2 %2546  ;;  %v5080_v52 = vpop.xlane.xlu1 %2550 }
 0x5b1   : > { %v5074_v55 = vpop.xlane.xlu0 %2548 }
 0x5b5   : > { %2682 = vperm.xlu2 %3485, %v2643_v56  }
 0x5b6   : > { %2685 = vperm.xlu1 %3484, %v2644_v40  }
 0x5b8   : > { %v5076_v10 = vpop.xlane.xlu2 %2552  ;;  %v5086_v56 = vpop.xlane.xlu1 %2556 }
 0x5b9   : > { %v5082_v3 = vpop.xlane.xlu0 %2554 }
 0x5bd   : > { %2691 = vperm.xlu2 %3485, %v2646_v51  }
 0x5be   : > { %2694 = vperm.xlu1 %3484, %v2647_v7   ;;  %v2377_v7 = vmul.f32 %v3488_v54, %v4830_v4  ;;  %v2376_v4 = vmul.f32 %v3490_v39, %v4811_v43 }
 0x5c0   : > { %v5084_v23 = vpop.xlane.xlu2 %2558  ;;  %v5095_v61 = vpop.xlane.xlu1 %2562 }
 0x5c1   : > { %v5091_v48 = vpop.xlane.xlu0 %2560 }
 0x5c2   : > { %5378 = vst [vmem:[#allocation23_spill] sm:$0xff] %v5091_v48  ;;  %v3492_v48 = vpop.eup %3491  ;;  %3523 = vrcp.f32 %v5070_v19 }
 0x5c3   : > { %v2379_v13 = vmul.f32 %v3492_v48, %v4827_v35  ;;  %v3494_v54 = vpop.eup %3493  ;;  %3525 = vrcp.f32 %v5053_v26 }
 0x5c4   : > { %v2378_v22 = vmul.f32 %v3494_v54, %v4808_v29 }
 0x5c8   : > { %v5089_v40 = vpop.xlane.xlu2 %2564 }
 0x5c9   : > { %v5098_v0 = vpop.xlane.xlu0 %2566 }
 0x5d0   : > { %v2413_v51 = vpop.permute.xlu2 %2412 }
 0x5d1   : > { %vm2457_vm11 = vcmp.eq.s32.totalorder %v2413_v51, 1 }
 0x5d2   : > { %v2473_v17 = vsel %vm2457_vm11, %v2377_v7, 0.0 }
 0x5d3   : > { %2489 = vst [vmem:[%s3912_s12 + $0x8] sm:$0xff] %v2473_v17  ;;  %v3496_v17 = vpop.eup %3495  ;;  %3527 = vrcp.f32 %v5068_v16 }
 0x5d4   : > { %v3498_v7 = vpop.eup %3497  ;;  %v2380_v18 = vmul.f32 %v3496_v17, %v4803_v32  ;;  %3529 = vrcp.f32 %v5080_v52 }
 0x5d5   : > { %v2381_v35 = vmul.f32 %v3498_v7, %v4824_v44  ;;  %v3500_v39 = vpop.eup %3499  ;;  %3531 = vrcp.f32 %v5062_v11 }
 0x5d6   : > { %v3502_v21 = vpop.eup %3501  ;;  %v2385_v2 = vmul.f32 %v3500_v39, %v4866_v27  ;;  %3533 = vrcp.f32 %v5076_v10 }
 0x5d7   : > { %v2383_v54 = vmul.f32 %v3502_v21, %v4845_v53 }
 0x5d8   : > { %v2419_v20 = vpop.permute.xlu2 %2418  ;;  %v2410_v58 = vpop.permute.xlu1 %2409 }
 0x5d9   : > { %vm2459_vm15 = vcmp.eq.s32.totalorder %v2419_v20, 1  ;;  %vm2456_vm1 = vcmp.eq.s32.totalorder %v2410_v58, 1 }
 0x5da   : > { %v2475_v6 = vsel %vm2459_vm15, %v2379_v13, 0.0  ;;  %v2472_v51 = vsel %vm2456_vm1, %v2376_v4, 0.0  ;;  %v3504_v4 = vpop.eup %3503  ;;  %3535 = vrcp.f32 %v5086_v56 }
 0x5db   : > { %2491 = vst [vmem:[%s3912_s12 + $0x18] sm:$0xff] %v2475_v6  ;;  %v2382_v6 = vmul.f32 %v3504_v4, %v4848_v5 }
 0x5dc   : > { %2488 = vst [vmem:[%s3912_s12] sm:$0xff] %v2472_v51  ;;  %v2416_v28 = vpop.permute.xlu0 %2415  ;;  %v3506_v51 = vpop.eup %3505  ;;  %3537 = vrcp.f32 %v5074_v55 }
 0x5dd   : > { %vm2458_vm4 = vcmp.eq.s32.totalorder %v2416_v28, 1  ;;  %v3508_v33 = vpop.eup %3507  ;;  %v2388_v47 = vmul.f32 %v3506_v51, %v4884_v24  ;;  %3539 = vrcp.f32 %v5084_v23 }
 0x5de   : > { %v2474_v43 = vsel %vm2458_vm4, %v2378_v22, 0.0  ;;  %v3510_v28 = vpop.eup %3509  ;;  %v2384_v14 = vmul.f32 %v3508_v33, %v4842_v36  ;;  %3541 = vrcp.f32 %v5095_v61 }
 0x5df   : > { %2490 = vst [vmem:[%s3912_s12 + $0x10] sm:$0xff] %v2474_v43  ;;  %v2386_v7 = vmul.f32 %v3510_v28, %v4863_v9 }
 0x5e0   : > { %v2425_v58 = vpop.permute.xlu2 %2424  ;;  %v2422_v48 = vpop.permute.xlu1 %2421 }
 0x5e1   : > { %vm2461_vm5 = vcmp.eq.s32.totalorder %v2425_v58, 1  ;;  %vm2460_vm6 = vcmp.eq.s32.totalorder %v2422_v48, 1 }
 0x5e2   : > { %v2477_v29 = vsel %vm2461_vm5, %v2381_v35, 0.0  ;;  %v2476_v20 = vsel %vm2460_vm6, %v2380_v18, 0.0  ;;  %v3512_v35 = vpop.eup %3511  ;;  %3543 = vrcp.f32 %v5082_v3  ;;  %v5379_v3 = vld [vmem:[#allocation19_spill] sm:$0xff] }
 0x5e3   : > { %2493 = vst [vmem:[%s3912_s12 + $0x28] sm:$0xff] %v2477_v29  ;;  %v3514_v57 = vpop.eup %3513  ;;  %v2391_v37 = vmul.f32 %v3512_v35, %v4902_v31  ;;  %3545 = vrcp.f32 %v5089_v40 }
 0x5e4   : > { %2492 = vst [vmem:[%s3912_s12 + $0x20] sm:$0xff] %v2476_v20  ;;  %v2437_v13 = vpop.permute.xlu0 %2436  ;;  %v3516_v48 = vpop.eup %3515  ;;  %v2387_v60 = vmul.f32 %v3514_v57, %v4860_v50 }
 0x5e5   : > { %vm2465_vm13 = vcmp.eq.s32.totalorder %v2437_v13, 1  ;;  %v2389_v39 = vmul.f32 %v3516_v48, %v4881_v8  ;;  %v3518_v20 = vpop.eup %3517 }
 0x5e6   : > { %v2481_v32 = vsel %vm2465_vm13, %v2385_v2, 0.0  ;;  %v3520_v38 = vpop.eup %3519  ;;  %v2618_v45 = vmul.f32 %v3518_v20, %v4920_v12 }
 0x5e7   : > { %2497 = vst [vmem:[%s3912_s12 + $0x48] sm:$0xff] %v2481_v32  ;;  %v3522_v13 = vpop.eup %3521  ;;  %v2390_v19 = vmul.f32 %v3520_v38, %v4878_v42 }
 0x5e8   : > { %v2431_v44 = vpop.permute.xlu2 %2430  ;;  %v2428_v41 = vpop.permute.xlu1 %2427  ;;  %v2617_v4 = vmul.f32 %v3522_v13, %v4899_v34 }
 0x5e9   : > { %vm2463_vm14 = vcmp.eq.s32.totalorder %v2431_v44, 1  ;;  %vm2462_vm3 = vcmp.eq.s32.totalorder %v2428_v41, 1  ;;  %v3524_v44 = vpop.eup %3523 }
 0x5ea   : > { %v2479_v27 = vsel %vm2463_vm14, %v2383_v54, 0.0  ;;  %v2478_v17 = vsel %vm2462_vm3, %v2382_v6, 0.0  ;;  %v3526_v26 = vpop.eup %3525  ;;  %v2620_v16 = vmul.f32 %v3524_v44, %v4917_v63 }
 0x5eb   : > { %2495 = vst [vmem:[%s3912_s12 + $0x38] sm:$0xff] %v2479_v27  ;;  %v3528_v6 = vpop.eup %3527  ;;  %v2616_v52 = vmul.f32 %v3526_v26, %v4896_v59 }
 0x5ec   : > { %2494 = vst [vmem:[%s3912_s12 + $0x30] sm:$0xff] %v2478_v17  ;;  %v2446_v22 = vpop.permute.xlu0 %2445  ;;  %v2621_v34 = vmul.f32 %v3528_v6, %v4932_v49  ;;  %v3530_v17 = vpop.eup %3529 }
 0x5ed   : > { %vm2468_vm7 = vcmp.eq.s32.totalorder %v2446_v22, 1  ;;  %v3532_v11 = vpop.eup %3531  ;;  %v2623_v10 = vmul.f32 %v3530_v17, %v4935_v25 }
 0x5ee   : > { %v2484_v53 = vsel %vm2468_vm7, %v2388_v47, 0.0  ;;  %v3534_v22 = vpop.eup %3533  ;;  %v2619_v56 = vmul.f32 %v3532_v11, %v4914_v30 }
 0x5ef   : > { %2500 = vst [vmem:[%s3912_s12 + $0x60] sm:$0xff] %v2484_v53  ;;  %v2624_v49 = vmul.f32 %v3534_v22, %v4953_v15 }
 0x5f0   : > { %v2440_v5 = vpop.permute.xlu2 %2439  ;;  %v2434_v43 = vpop.permute.xlu1 %2433 }
 0x5f1   : > { %vm2466_vm9 = vcmp.eq.s32.totalorder %v2440_v5, 1  ;;  %vm2464_vm0 = vcmp.eq.s32.totalorder %v2434_v43, 1  ;;  %v3536_v5 = vpop.eup %3535 }
 0x5f2   : > { %v2482_v24 = vsel %vm2466_vm9, %v2386_v7, 0.0  ;;  %v2480_v58 = vsel %vm2464_vm0, %v2384_v14, 0.0  ;;  %v3538_v55 = vpop.eup %3537  ;;  %v2626_v23 = vmul.f32 %v3536_v5, %v4956_v1 }
 0x5f3   : > { %2498 = vst [vmem:[%s3912_s12 + $0x50] sm:$0xff] %v2482_v24  ;;  %v3540_v15 = vpop.eup %3539  ;;  %v2622_v24 = vmul.f32 %v3538_v55, %v4940_v62  ;;  %v5381_v62 = vld [vmem:[#allocation21_spill] sm:$0xff] }
 0x5f4   : > { %2496 = vst [vmem:[%s3912_s12 + $0x40] sm:$0xff] %v2480_v58  ;;  %v2455_v18 = vpop.permute.xlu0 %2454  ;;  %v2627_v43 = vmul.f32 %v3540_v15, %v4971_v46  ;;  %v3542_v58 = vpop.eup %3541 }
 0x5f5   : > { %vm2471_vm2 = vcmp.eq.s32.totalorder %v2455_v18, 1  ;;  %v2629_v18 = vmul.f32 %v3542_v58, %v5379_v3 }
 0x5f6   : > { %v2487_v36 = vsel %vm2471_vm2, %v2391_v37, 0.0  ;;  %v3544_v37 = vpop.eup %3543 }
 0x5f7   : > { %2503 = vst [vmem:[%s3912_s12 + $0x78] sm:$0xff] %v2487_v36  ;;  %v3546_v48 = vpop.eup %3545  ;;  %v5380_v36 = vld [vmem:[#allocation23_spill] sm:$0xff] }
 0x5f8   : > { %v2449_v9 = vpop.permute.xlu2 %2448  ;;  %v2443_v29 = vpop.permute.xlu1 %2442  ;;  %3547 = vrcp.f32 %v5380_v36 }
 0x5f9   : > { %vm2469_vm12 = vcmp.eq.s32.totalorder %v2449_v9, 1  ;;  %vm2467_vm8 = vcmp.eq.s32.totalorder %v2443_v29, 1  ;;  %v2630_v9 = vmul.f32 %v3546_v48, %v5381_v62  ;;  %v5382_v29 = vld [vmem:[#allocation18_spill] sm:$0xff]  ;;  %3549 = vrcp.f32 %v5098_v0 }
 0x5fa   : > { %v2485_v31 = vsel %vm2469_vm12, %v2389_v39, 0.0  ;;  %v2483_v21 = vsel %vm2467_vm8, %v2387_v60, 0.0  ;;  %v2625_v20 = vmul.f32 %v3544_v37, %v5382_v29 }
 0x5fb   : > { %2501 = vst [vmem:[%s3912_s12 + $0x68] sm:$0xff] %v2485_v31 }
 0x5fc   : > { %2499 = vst [vmem:[%s3912_s12 + $0x58] sm:$0xff] %v2483_v21  ;;  %v2656_v2 = vpop.permute.xlu0 %2655 }
 0x5fd   : > { %vm2698_vm10 = vcmp.eq.s32.totalorder %v2656_v2, 1  ;;  %v5383_v2 = vld [vmem:[#allocation20_spill] sm:$0xff] }
 0x5fe   : > { %v2714_v50 = vsel %vm2698_vm10, %v2618_v45, 0.0  ;;  %v3548_v38 = vpop.eup %3547 }
 0x5ff   : > { %3204 = vst [vmem:[%s3912_s12 + $0x90] sm:$0xff] %v2714_v50  ;;  %v2628_v13 = vmul.f32 %v3548_v38, %v5383_v2 }
 0x600   : > { %v2653_v8 = vpop.permute.xlu2 %2652  ;;  %v2452_v32 = vpop.permute.xlu1 %2451 }
 0x601   : > { %vm2697_vm11 = vcmp.eq.s32.totalorder %v2653_v8, 1  ;;  %vm2470_vm15 = vcmp.eq.s32.totalorder %v2452_v32, 1  ;;  %v3550_v8 = vpop.eup %3549 }
 0x602   : > { %v2713_v12 = vsel %vm2697_vm11, %v2617_v4, 0.0  ;;  %v2486_v54 = vsel %vm2470_vm15, %v2390_v19, 0.0  ;;  %v5384_v19 = vld [vmem:[#allocation22_spill] sm:$0xff] }
 0x603   : > { %3203 = vst [vmem:[%s3912_s12 + $0x88] sm:$0xff] %v2713_v12  ;;  %v2631_v32 = vmul.f32 %v3550_v8, %v5384_v19 }
 0x604   : > { %2502 = vst [vmem:[%s3912_s12 + $0x70] sm:$0xff] %v2486_v54  ;;  %v2662_v41 = vpop.permute.xlu0 %2661 }
 0x605   : > { %vm2700_vm1 = vcmp.eq.s32.totalorder %v2662_v41, 1 }
 0x606   : > { %v2716_v42 = vsel %vm2700_vm1, %v2620_v16, 0.0 }
 0x607   : > { %3206 = vst [vmem:[%s3912_s12 + $0xa0] sm:$0xff] %v2716_v42 }
 0x608   : > { %v2665_v51 = vpop.permute.xlu2 %2664  ;;  %v2650_v27 = vpop.permute.xlu1 %2649 }
 0x609   : > { %vm2701_vm4 = vcmp.eq.s32.totalorder %v2665_v51, 1  ;;  %vm2696_vm5 = vcmp.eq.s32.totalorder %v2650_v27, 1 }
 0x60a   : > { %v2717_v63 = vsel %vm2701_vm4, %v2621_v34, 0.0  ;;  %v2712_v33 = vsel %vm2696_vm5, %v2616_v52, 0.0 }
 0x60b   : > { %3207 = vst [vmem:[%s3912_s12 + $0xa8] sm:$0xff] %v2717_v63 }
 0x60c   : > { %3202 = vst [vmem:[%s3912_s12 + $0x80] sm:$0xff] %v2712_v33  ;;  %v2671_v47 = vpop.permute.xlu0 %2670 }
 0x60d   : > { %vm2703_vm6 = vcmp.eq.s32.totalorder %v2671_v47, 1 }
 0x60e   : > { %v2719_v59 = vsel %vm2703_vm6, %v2623_v10, 0.0 }
 0x60f   : > { %3209 = vst [vmem:[%s3912_s12 + $0xb8] sm:$0xff] %v2719_v59 }
 0x610   : > { %v2674_v28 = vpop.permute.xlu2 %2673  ;;  %v2659_v53 = vpop.permute.xlu1 %2658 }
 0x611   : > { %vm2704_vm13 = vcmp.eq.s32.totalorder %v2674_v28, 1  ;;  %vm2699_vm14 = vcmp.eq.s32.totalorder %v2659_v53, 1 }
 0x612   : > { %v2720_v25 = vsel %vm2704_vm13, %v2624_v49, 0.0  ;;  %v2715_v7 = vsel %vm2699_vm14, %v2619_v56, 0.0 }
 0x613   : > { %3210 = vst [vmem:[%s3912_s12 + $0xc0] sm:$0xff] %v2720_v25 }
 0x614   : > { %3205 = vst [vmem:[%s3912_s12 + $0x98] sm:$0xff] %v2715_v7  ;;  %v2680_v14 = vpop.permute.xlu0 %2679 }
 0x615   : > { %vm2706_vm3 = vcmp.eq.s32.totalorder %v2680_v14, 1 }
 0x616   : > { %v2722_v30 = vsel %vm2706_vm3, %v2626_v23, 0.0 }
 0x617   : > { %3212 = vst [vmem:[%s3912_s12 + $0xd0] sm:$0xff] %v2722_v30 }
 0x618   : > { %v2683_v35 = vpop.permute.xlu2 %2682  ;;  %v2668_v61 = vpop.permute.xlu1 %2667 }
 0x619   : > { %vm2707_vm7 = vcmp.eq.s32.totalorder %v2683_v35, 1  ;;  %vm2702_vm9 = vcmp.eq.s32.totalorder %v2668_v61, 1 }
 0x61a   : > { %v2723_v1 = vsel %vm2707_vm7, %v2627_v43, 0.0  ;;  %v2718_v57 = vsel %vm2702_vm9, %v2622_v24, 0.0 }
 0x61b   : > { %3213 = vst [vmem:[%s3912_s12 + $0xd8] sm:$0xff] %v2723_v1 }
 0x61c   : > { %3208 = vst [vmem:[%s3912_s12 + $0xb0] sm:$0xff] %v2718_v57  ;;  %v2689_v40 = vpop.permute.xlu0 %2688 }
 0x61d   : > { %vm2709_vm0 = vcmp.eq.s32.totalorder %v2689_v40, 1 }
 0x61e   : > { %v2725_v46 = vsel %vm2709_vm0, %v2629_v18, 0.0 }
 0x61f   : > { %3215 = vst [vmem:[%s3912_s12 + $0xe8] sm:$0xff] %v2725_v46 }
 0x620   : > { %v2692_v39 = vpop.permute.xlu2 %2691  ;;  %v2677_v60 = vpop.permute.xlu1 %2676 }
 0x621   : > { %vm2710_vm2 = vcmp.eq.s32.totalorder %v2692_v39, 1  ;;  %vm2705_vm12 = vcmp.eq.s32.totalorder %v2677_v60, 1 }
 0x622   : > { %v2726_v31 = vsel %vm2710_vm2, %v2630_v9, 0.0  ;;  %v2721_v21 = vsel %vm2705_vm12, %v2625_v20, 0.0 }
 0x623   : > { %3216 = vst [vmem:[%s3912_s12 + $0xf0] sm:$0xff] %v2726_v31 }
 0x624   : > { %3211 = vst [vmem:[%s3912_s12 + $0xc8] sm:$0xff] %v2721_v21 }
 0x628   : > { %v2686_v45 = vpop.permute.xlu1 %2685 }
 0x629   : > { %vm2708_vm8 = vcmp.eq.s32.totalorder %v2686_v45, 1 }
 0x62a   : > { %v2724_v50 = vsel %vm2708_vm8, %v2628_v13, 0.0 }
 0x62b   : > { %3214 = vst [vmem:[%s3912_s12 + $0xe0] sm:$0xff] %v2724_v50 }
 0x630   : > { %v2695_v4 = vpop.permute.xlu1 %2694 }
 0x631   : > { %vm2711_vm10 = vcmp.eq.s32.totalorder %v2695_v4, 1 }
 0x632   : > { %v2727_v44 = vsel %vm2711_vm10, %v2631_v32, 0.0 }
 0x633   : > { %3217 = vst [vmem:[%s3912_s12 + $0xf8] sm:$0xff] %v2727_v44 }
 0x634 PF: > { %2750 = sbr.rel (!%p3778_p13) target bundleno = 1622 (0x656), region = 199  ;;  %s3242_s15 = sshll.u32 (%p3778_p13), %s3625_s22, 7  ;;  %v2844_v0 = vld [vmem:[%s3912_s12] sm:$0xff] (%p3778_p13)  ;;  %v2846_v12 = vld [vmem:[%s3912_s12 + $0x8] sm:$0xff] (%p3778_p13)  ;;  %v2848_v54 = vld [vmem:[%s3912_s12 + $0x10] sm:$0xff] (%p3778_p13) }
 0x635   : > { %s5200_s21 = scalar_lea.vmem (%p3778_p13), %s5301_s4, %s3242_s15  ;;  %v2850_v26 = vld [vmem:[%s3912_s12 + $0x18] sm:$0xff] (%p3778_p13)  ;;  %v2852_v16 = vld [vmem:[%s3912_s12 + $0x20] sm:$0xff] (%p3778_p13)  ;;  %v2854_v41 = vld [vmem:[%s3912_s12 + $0x28] sm:$0xff] (%p3778_p13) }
 0x636   : > { %2845 = vst [vmem:[%s5200_s21] sm:$0xff] (%p3778_p13), %v2844_v0  ;;  %v2856_v6 = vld [vmem:[%s3912_s12 + $0x30] sm:$0xff] (%p3778_p13)  ;;  %v2858_v42 = vld [vmem:[%s3912_s12 + $0x38] sm:$0xff] (%p3778_p13)  ;;  %v2860_v34 = vld [vmem:[%s3912_s12 + $0x40] sm:$0xff] (%p3778_p13) }
 0x637   : > { %2847 = vst [vmem:[%s5200_s21 + $0x8] sm:$0xff] (%p3778_p13), %v2846_v12  ;;  %v2862_v51 = vld [vmem:[%s3912_s12 + $0x48] sm:$0xff] (%p3778_p13)  ;;  %v2864_v52 = vld [vmem:[%s3912_s12 + $0x50] sm:$0xff] (%p3778_p13)  ;;  %v2866_v27 = vld [vmem:[%s3912_s12 + $0x58] sm:$0xff] (%p3778_p13) }
 0x638   : > { %2849 = vst [vmem:[%s5200_s21 + $0x10] sm:$0xff] (%p3778_p13), %v2848_v54  ;;  %v2868_v17 = vld [vmem:[%s3912_s12 + $0x60] sm:$0xff] (%p3778_p13)  ;;  %v2870_v63 = vld [vmem:[%s3912_s12 + $0x68] sm:$0xff] (%p3778_p13)  ;;  %v2872_v33 = vld [vmem:[%s3912_s12 + $0x70] sm:$0xff] (%p3778_p13) }
 0x639   : > { %2851 = vst [vmem:[%s5200_s21 + $0x18] sm:$0xff] %v2850_v26  ;;  %v2874_v11 = vld [vmem:[%s3912_s12 + $0x78] sm:$0xff]  ;;  %v2876_v10 = vld [vmem:[%s3912_s12 + $0x80] sm:$0xff]  ;;  %v2878_v47 = vld [vmem:[%s3912_s12 + $0x88] sm:$0xff] }
 0x63a   : > { %2853 = vst [vmem:[%s5200_s21 + $0x20] sm:$0xff] %v2852_v16  ;;  %v2880_v22 = vld [vmem:[%s3912_s12 + $0x90] sm:$0xff]  ;;  %v2882_v59 = vld [vmem:[%s3912_s12 + $0x98] sm:$0xff]  ;;  %v2884_v49 = vld [vmem:[%s3912_s12 + $0xa0] sm:$0xff] }
 0x63b   : > { %2855 = vst [vmem:[%s5200_s21 + $0x28] sm:$0xff] %v2854_v41  ;;  %v2886_v28 = vld [vmem:[%s3912_s12 + $0xa8] sm:$0xff]  ;;  %v2888_v56 = vld [vmem:[%s3912_s12 + $0xb0] sm:$0xff]  ;;  %v2890_v53 = vld [vmem:[%s3912_s12 + $0xb8] sm:$0xff] }
 0x63c   : > { %2857 = vst [vmem:[%s5200_s21 + $0x30] sm:$0xff] %v2856_v6  ;;  %v2892_v5 = vld [vmem:[%s3912_s12 + $0xc0] sm:$0xff]  ;;  %v2894_v25 = vld [vmem:[%s3912_s12 + $0xc8] sm:$0xff]  ;;  %v2896_v7 = vld [vmem:[%s3912_s12 + $0xd0] sm:$0xff] }
 0x63d   : > { %2859 = vst [vmem:[%s5200_s21 + $0x38] sm:$0xff] %v2858_v42  ;;  %v2898_v55 = vld [vmem:[%s3912_s12 + $0xd8] sm:$0xff]  ;;  %v2900_v23 = vld [vmem:[%s3912_s12 + $0xe0] sm:$0xff]  ;;  %v2902_v14 = vld [vmem:[%s3912_s12 + $0xe8] sm:$0xff] }
 0x63e   : > { %2861 = vst [vmem:[%s5200_s21 + $0x40] sm:$0xff] %v2860_v34  ;;  %v2904_v15 = vld [vmem:[%s3912_s12 + $0xf0] sm:$0xff]  ;;  %v2906_v30 = vld [vmem:[%s3912_s12 + $0xf8] sm:$0xff] }
 0x63f   : > { %2863 = vst [vmem:[%s5200_s21 + $0x48] sm:$0xff] %v2862_v51 }
 0x640   : > { %2865 = vst [vmem:[%s5200_s21 + $0x50] sm:$0xff] %v2864_v52 }
 0x641   : > { %2867 = vst [vmem:[%s5200_s21 + $0x58] sm:$0xff] %v2866_v27 }
 0x642   : > { %2869 = vst [vmem:[%s5200_s21 + $0x60] sm:$0xff] %v2868_v17 }
 0x643   : > { %2871 = vst [vmem:[%s5200_s21 + $0x68] sm:$0xff] %v2870_v63 }
 0x644   : > { %2873 = vst [vmem:[%s5200_s21 + $0x70] sm:$0xff] %v2872_v33 }
 0x645   : > { %2875 = vst [vmem:[%s5200_s21 + $0x78] sm:$0xff] %v2874_v11 }
 0x646   : > { %2877 = vst [vmem:[%s5200_s21 + $0x100] sm:$0xff] %v2876_v10 }
 0x647   : > { %2879 = vst [vmem:[%s5200_s21 + $0x108] sm:$0xff] %v2878_v47 }
 0x648   : > { %2881 = vst [vmem:[%s5200_s21 + $0x110] sm:$0xff] %v2880_v22 }
 0x649   : > { %2883 = vst [vmem:[%s5200_s21 + $0x118] sm:$0xff] %v2882_v59 }
 0x64a   : > { %2885 = vst [vmem:[%s5200_s21 + $0x120] sm:$0xff] %v2884_v49 }
 0x64b   : > { %2887 = vst [vmem:[%s5200_s21 + $0x128] sm:$0xff] %v2886_v28 }
 0x64c   : > { %2889 = vst [vmem:[%s5200_s21 + $0x130] sm:$0xff] %v2888_v56 }
 0x64d   : > { %2891 = vst [vmem:[%s5200_s21 + $0x138] sm:$0xff] %v2890_v53 }
 0x64e   : > { %2893 = vst [vmem:[%s5200_s21 + $0x140] sm:$0xff] %v2892_v5 }
 0x64f   : > { %2895 = vst [vmem:[%s5200_s21 + $0x148] sm:$0xff] %v2894_v25 }
 0x650   : > { %2897 = vst [vmem:[%s5200_s21 + $0x150] sm:$0xff] %v2896_v7 }
 0x651   : > { %2899 = vst [vmem:[%s5200_s21 + $0x158] sm:$0xff] %v2898_v55 }
 0x652   : > { %2901 = vst [vmem:[%s5200_s21 + $0x160] sm:$0xff] %v2900_v23 }
 0x653   : > { %2903 = vst [vmem:[%s5200_s21 + $0x168] sm:$0xff] %v2902_v14 }
 0x654   : > { %2905 = vst [vmem:[%s5200_s21 + $0x170] sm:$0xff] %v2904_v15 }
 0x655   : > { %2907 = vst [vmem:[%s5200_s21 + $0x178] sm:$0xff] %v2906_v30 }
 0x656 PF: > { %s14_s25 = sadd.s32 1, %s3637_s25   ;;  %s5385_s22 = sld [smem:[#allocation10_spill]] }
 0x657   : > { %p11_p6 = scmp.ge.s32.totalorder %s14_s25, 6   ;;  %s5386_s30 = sld [smem:[#allocation8_spill]] }
 0x658   : > { %s5387_s26 = sld [smem:[#allocation9_spill]]  ;;  %s5388_s15 = smov %s3601_s16 }
 0x659   : > { %s5389_s16 = smov %s3767_s13  ;;  %s5390_s17 = smov %s3609_s18 }
 0x65a   : > { %s5391_s18 = smov %s3748_s7  ;;  %s5392_s19 = smov %s3617_s20 }
 0x65b   : > { %s5394_s21 = smov %s3629_s23  ;;  %13 = sbr.rel (!%p11_p6) target bundleno = 8 (0x8), region = 297 }
 0x65c   : > { %s5393_s20 = smov %s5385_s22  ;;  %s5395_s22 = smov %s3633_s24 }
 0x65d   : > { %s5396_s23 = smov %s5386_s30 }
 0x65e   : > { %s5397_s24 = smov %s5387_s26 }

</bundles_post_ra>
